<compile_context>
chip_gen: v7x
topology: tpu7x:2x2x1
jax: 0.10.0
libtpu: 0.0.40
codegen_flags: <defaults>
</compile_context>

<pallas_src>
import functools

import jax
import jax.numpy as jnp
from jax.experimental import pallas as pl
from jax.experimental.pallas import tpu as pltpu


# ----------------------------------------------------------------------------
# Fused kernel: expand + depthwise + SE + project (+ residual), B images/step.
# ----------------------------------------------------------------------------
def _mbconv_fused_kernel(x_ref, rmask_ref, ew_ref, b0_ref, wdw_ref, b1_ref,
                         red_ref, brd_ref, exp_ref, bep_ref, pw_ref, b2_ref,
                         o_ref, *, B, H, Hp, C, k, expand, skip):
    pb = (k - 1) // 2
    xin = x_ref[...].astype(jnp.float32)                 # (B*Hp, W*Cin), row-padded

    # ---- expand 1x1 conv (block-diag packed, bf16 MXU, f32 acc) + BN0 + swish ----
    if expand:
        h = jnp.dot(xin.astype(jnp.bfloat16), ew_ref[...],
                    preferred_element_type=jnp.float32)  # (B*Hp, W*C)
        h = h + b0_ref[...]
        h = h * jax.nn.sigmoid(h)                        # swish
        h = h * rmask_ref[...]                           # keep per-image pad rows == 0
    else:
        h = xin                                          # pad rows already zero

    WC = h.shape[1]

    # ---- depthwise kxk conv (stride 1, 'same') + folded BN1 + swish --------------
    # x-taps: shift the packed tile by (dx-pb) pixels = (dx-pb)*C lanes with zero
    # fill at the x edges (pltpu.roll(h, shift, axis=-1) is the 1-op alternative);
    # y-taps: per-image sublane slices; weights are k*k broadcast FMAs.
    def shift_x(v, d):
        if d == 0:
            return v
        z = jnp.zeros((v.shape[0], abs(d) * C), v.dtype)
        if d > 0:
            return jnp.concatenate([v[:, d * C:], z], axis=1)
        return jnp.concatenate([z, v[:, :d * C]], axis=1)

    h_sh = [shift_x(h, dx - pb) for dx in range(k)]      # k shifted full-width copies

    per_image = []
    for i in range(B):
        base = i * Hp
        acc_i = None
        for dy in range(k):
            for dx in range(k):
                w = wdw_ref[dy * k + dx:dy * k + dx + 1, :]          # (1, W*C)
                t = h_sh[dx][base + dy:base + dy + H, :] * w
                acc_i = t if acc_i is None else acc_i + t
        per_image.append(acc_i)
    acc = jnp.concatenate(per_image, axis=0)             # (B*H, W*C), valid rows only
    acc = acc + b1_ref[...]
    acc = acc * jax.nn.sigmoid(acc)                      # swish

    # ---- squeeze-and-excite: pool -> reduce -> swish -> expand -> sigmoid gate ---
    col = jnp.concatenate(
        [jnp.sum(acc[i * H:(i + 1) * H, :], axis=0, keepdims=True) for i in range(B)],
        axis=0)                                          # (B, W*C) per-image sum
    s = jnp.dot(col, red_ref[...], preferred_element_type=jnp.float32) + brd_ref[...]
    s = s * jax.nn.sigmoid(s)                            # (B, csq)
    glog = jnp.dot(s, exp_ref[...], preferred_element_type=jnp.float32) + bep_ref[...]
    gate = jax.nn.sigmoid(glog)                          # (B, W*C) per-image gate
    gated = jnp.concatenate(
        [acc[i * H:(i + 1) * H, :] * gate[i:i + 1, :] for i in range(B)], axis=0)

    # ---- project 1x1 conv (block-diag packed, bf16 MXU) + folded BN2 (+ skip) ----
    out = jnp.dot(gated.astype(jnp.bfloat16), pw_ref[...],
                  preferred_element_type=jnp.float32)    # (B*H, W*Cout)
    out = out + b2_ref[...]
    if skip:
        xs = jnp.concatenate(
            [xin[i * Hp + pb:i * Hp + pb + H, :] for i in range(B)], axis=0)
        out = out + xs                                   # W*Cin == W*Cout here
    o_ref[...] = out.astype(o_ref.dtype)                 # lane-dense (B*H, W*Cout)


def _pick_images_per_step(n_images, h, hp, row_cap=256):
    """Largest per-step image count whose packed blocks satisfy the (8,128) rule."""
    candidates = [b for b in range(1, n_images + 1)
                  if n_images % b == 0 and (b * hp) % 8 == 0 and (b * h) % 8 == 0
                  and b * hp <= row_cap]
    if not candidates:
        return n_images            # single block == full array dims (always legal)
    multi = [b for b in candidates if n_images // b >= 2]   # keep >=2 steps (v7x TCs)
    return max(multi) if multi else max(candidates)


def _mbconv_pallas(xp2, rmask, pk, *, B, H, Hp, C, k, expand, skip):
    rows, WCin = xp2.shape
    N = rows // Hp
    WCout = pk["pw"].shape[1]
    kernel = functools.partial(_mbconv_fused_kernel, B=B, H=H, Hp=Hp, C=C, k=k,
                               expand=expand, skip=skip)

    def const(a):
        return pl.BlockSpec(a.shape, lambda n: (0,) * a.ndim)

    in_specs = [
        pl.BlockSpec((B * Hp, WCin), lambda n: (n, 0)),      # per-step image slab
        const(rmask), const(pk["ew"]), const(pk["b0"]), const(pk["wdw"]),
        const(pk["b1"]), const(pk["red"]), const(pk["brd"]), const(pk["exp"]),
        const(pk["bep"]), const(pk["pw"]), const(pk["b2"]),
    ]
    return pl.pallas_call(
        kernel,
        grid=(N // B,),
        in_specs=in_specs,
        out_specs=pl.BlockSpec((B * H, WCout), lambda n: (n, 0)),
        out_shape=jax.ShapeDtypeStruct((N * H, WCout), xp2.dtype),
        compiler_params=pltpu.CompilerParams(
            dimension_semantics=("parallel",)),
    )(xp2, rmask, pk["ew"], pk["b0"], pk["wdw"], pk["b1"], pk["red"], pk["brd"],
      pk["exp"], pk["bep"], pk["pw"], pk["b2"])


# ----------------------------------------------------------------------------
# Parameter packing (done once, outside the kernel): fold BN, build packed mats.
# ----------------------------------------------------------------------------
def pack_params(p, *, H, W, kernel_size, expand_ratio):
    k = kernel_size
    f32 = jnp.float32
    eye_w = jnp.eye(W, dtype=f32)

    pk = {}
    if expand_ratio != 1:
        ew = (p["expand_w"] * p["bn0_scale"]).astype(f32)        # (Cin, C), BN0 folded
        C = ew.shape[1]
        pk["ew"] = jnp.kron(eye_w, ew).astype(jnp.bfloat16)      # (W*Cin, W*C)
        pk["b0"] = jnp.tile(p["bn0_bias"], (1, W)).astype(f32)   # (1, W*C)
    else:
        C = p["dw_w"].shape[-1]
        pk["ew"] = jnp.zeros((8, 128), jnp.bfloat16)             # unused placeholders
        pk["b0"] = jnp.zeros((1, 128), f32)

    # depthwise: per-tap channel weight rows (BN1 scale folded), tiled over W.
    dwf = (p["dw_w"] * p["bn1_scale"][0]).astype(f32)            # (k, k, C)
    rows = [jnp.tile(dwf[dy, dx], (W,)) for dy in range(k) for dx in range(k)]
    pk["wdw"] = jnp.stack(rows, axis=0)                          # (k*k, W*C)
    pk["b1"] = jnp.tile(p["bn1_bias"], (1, W)).astype(f32)       # (1, W*C)

    # squeeze-excite packed over W; the 1/(H*W) pooling factor folded into reduce.
    pk["red"] = (jnp.tile(p["se_red_w"], (W, 1)) / (H * W)).astype(f32)   # (W*C, csq)
    pk["brd"] = p["se_red_b"].astype(f32)                                  # (1, csq)
    pk["exp"] = jnp.tile(p["se_exp_w"], (1, W)).astype(f32)                # (csq, W*C)
    pk["bep"] = jnp.tile(p["se_exp_b"], (1, W)).astype(f32)                # (1, W*C)

    # project: BN2 scale folded, block-diagonal over W, bf16 for the MXU.
    pw = (p["proj_w"] * p["bn2_scale"]).astype(f32)              # (C, Cout)
    pk["pw"] = jnp.kron(eye_w, pw).astype(jnp.bfloat16)          # (W*C, W*Cout)
    pk["b2"] = jnp.tile(p["bn2_bias"], (1, W)).astype(f32)       # (1, W*Cout)
    return pk


# ----------------------------------------------------------------------------
# Module forward (wrapper glue) and parameter init
# ----------------------------------------------------------------------------
def mbconv_forward(x_nchw, pk, *, expand_ratio, kernel_size, stride, id_skip):
    assert stride == 1  # TODO(synk): strided depthwise not implemented in-kernel
    N, Cin, H, W = x_nchw.shape
    k = kernel_size
    pb = (k - 1) // 2
    pe = (k - 1) - pb
    Hp = H + k - 1
    C = pk["wdw"].shape[1] // W
    Cout = pk["pw"].shape[1] // W
    expand = expand_ratio != 1
    skip = bool(id_skip) and stride == 1 and Cin == Cout
    if skip:
        assert Cin * W == pk["pw"].shape[1], "identity skip needs matching packed layouts"

    # NCHW -> lane-dense packed rows (N*Hp, W*Cin); per-image (k-1) zero pad rows.
    xp = jnp.transpose(x_nchw, (0, 2, 3, 1)).reshape(N, H, W * Cin)
    xp = jnp.pad(xp, ((0, 0), (pb, pe), (0, 0))).reshape(N * Hp, W * Cin)

    B = _pick_images_per_step(N, H, Hp)
    ridx = jnp.arange(Hp)
    rmask1 = ((ridx >= pb) & (ridx < pb + H)).astype(jnp.float32)
    rmask = jnp.tile(rmask1, (B,))[:, None]                  # (B*Hp, 1) valid-row mask

    y = _mbconv_pallas(xp, rmask, pk, B=B, H=H, Hp=Hp, C=C, k=k,
                       expand=expand, skip=skip)
    y = y.reshape(N, H, W, Cout)
    return jnp.transpose(y, (0, 3, 1, 2))                    # NHWC -> NCHW


def init_params(key, inp, oup, k, csq, cout, eps):
    ks = jax.random.split(key, 19)

    def nrm(kk, shape, scale=0.1):
        return scale * jax.random.normal(kk, shape, jnp.float32)

    def bn(k1, k2, k3, k4, c):
        gamma = 1.0 + 0.1 * jax.random.normal(k1, (c,), jnp.float32)
        beta = 0.1 * jax.random.normal(k2, (c,), jnp.float32)
        mean = 0.1 * jax.random.normal(k3, (c,), jnp.float32)
        var = 1.0 + 0.2 * jax.random.uniform(k4, (c,), jnp.float32)
        scale = gamma / jnp.sqrt(var + eps)
        bias = beta - mean * scale
        return scale[None, :], bias[None, :]

    p = {}
    p["expand_w"] = nrm(ks[0], (inp, oup))            # torch (oup, inp, 1, 1) transposed
    p["bn0_scale"], p["bn0_bias"] = bn(ks[1], ks[2], ks[3], ks[4], oup)
    p["dw_w"] = nrm(ks[5], (k, k, oup))               # torch (oup, 1, k, k) permuted
    p["bn1_scale"], p["bn1_bias"] = bn(ks[6], ks[7], ks[8], ks[9], oup)
    p["se_red_w"] = nrm(ks[10], (oup, csq))
    p["se_red_b"] = nrm(ks[11], (1, csq))
    p["se_exp_w"] = nrm(ks[12], (csq, oup))
    p["se_exp_b"] = nrm(ks[13], (1, oup))
    p["proj_w"] = nrm(ks[14], (oup, cout))
    p["bn2_scale"], p["bn2_bias"] = bn(ks[15], ks[16], ks[17], ks[18], cout)
    return p


# ----------------------------------------------------------------------------
# Pure-JAX reference (independent, uses lax.conv for the depthwise step)
# ----------------------------------------------------------------------------
def mbconv_reference(x_nchw, p, *, expand_ratio, kernel_size, stride, id_skip):
    x = jnp.transpose(x_nchw, (0, 2, 3, 1))
    inputs = x
    h = x
    if expand_ratio != 1:
        h = jnp.einsum("nhwc,cd->nhwd", h, p["expand_w"])
        h = h * p["bn0_scale"][0] + p["bn0_bias"][0]
        h = h * jax.nn.sigmoid(h)
    k = kernel_size
    pb = (k - 1) // 2
    pe = (k - 1) - pb
    C = h.shape[-1]
    dw = p["dw_w"].reshape(k, k, 1, C)
    h = jax.lax.conv_general_dilated(
        h, dw, window_strides=(stride, stride), padding=[(pb, pe), (pb, pe)],
        dimension_numbers=("NHWC", "HWIO", "NHWC"), feature_group_count=C)
    h = h * p["bn1_scale"][0] + p["bn1_bias"][0]
    h = h * jax.nn.sigmoid(h)
    pooled = h.mean(axis=(1, 2))
    s = pooled @ p["se_red_w"] + p["se_red_b"][0]
    s = s * jax.nn.sigmoid(s)
    g = jax.nn.sigmoid(s @ p["se_exp_w"] + p["se_exp_b"][0])
    h = h * g[:, None, None, :]
    y = jnp.einsum("nhwc,cd->nhwd", h, p["proj_w"])
    y = y * p["bn2_scale"][0] + p["bn2_bias"][0]
    if id_skip and stride == 1 and x_nchw.shape[1] == y.shape[-1]:
        y = y + inputs
    return jnp.transpose(y, (0, 3, 1, 2))


# ----------------------------------------------------------------------------
if __name__ == "__main__":
    key = jax.random.PRNGKey(0)
    kx, kp = jax.random.split(key)

    # block_args: input_filters=8, output_filters=8, expand_ratio=4,
    #             kernel_size=3, stride=1, se_ratio=0.25, id_skip=True
    N, Cin, H, W = 8, 8, 16, 16          # N=8 -> 4 images/grid-step, grid=2
    expand_ratio, k, stride, se_ratio, Cout = 4, 3, 1, 0.25, 8
    oup = Cin * expand_ratio
    csq = max(1, int(Cin * se_ratio))
    bn_eps = 1e-3

    params = init_params(kp, Cin, oup, k, csq, Cout, bn_eps)
    x = jax.random.normal(kx, (N, Cin, H, W), jnp.float32)

    packed = pack_params(params, H=H, W=W, kernel_size=k, expand_ratio=expand_ratio)

    fwd = jax.jit(functools.partial(mbconv_forward, expand_ratio=expand_ratio,
                                    kernel_size=k, stride=stride, id_skip=True))
    out = jax.block_until_ready(fwd(x, packed))

    ref = mbconv_reference(x, params, expand_ratio=expand_ratio, kernel_size=k,
                           stride=stride, id_skip=True)
    assert out.shape == (N, Cout, H, W), out.shape
    err = float(jnp.max(jnp.abs(out - ref)))
    # Tolerance accounts for bf16 MXU operands (f32 accumulation) in the two 1x1 convs.
    assert err < 2.5e-2, f"max abs err {err}"
    print("KERNEL_OK")
</pallas_src>

<mosaic_0001>
module attributes {stable_mosaic.version = 11 : i64} {
  func.func @_mbconv_fused_kernel(%arg0: i32, %arg1: memref<72x128xf32, #tpu.memory_space<vmem>>, %arg2: memref<72x1xf32, #tpu.memory_space<vmem>>, %arg3: memref<128x512xbf16, #tpu.memory_space<vmem>>, %arg4: memref<1x512xf32, #tpu.memory_space<vmem>>, %arg5: memref<9x512xf32, #tpu.memory_space<vmem>>, %arg6: memref<1x512xf32, #tpu.memory_space<vmem>>, %arg7: memref<512x2xf32, #tpu.memory_space<vmem>>, %arg8: memref<1x2xf32, #tpu.memory_space<vmem>>, %arg9: memref<2x512xf32, #tpu.memory_space<vmem>>, %arg10: memref<1x512xf32, #tpu.memory_space<vmem>>, %arg11: memref<512x128xbf16, #tpu.memory_space<vmem>>, %arg12: memref<1x128xf32, #tpu.memory_space<vmem>>, %arg13: memref<64x128xf32, #tpu.memory_space<vmem>>) attributes {dimension_semantics = [#tpu.dimension_semantics<parallel>], iteration_bounds = array<i64: 2>, scalar_prefetch = 0 : i64, scratch_operands = 0 : i64, tpu.core_type = #tpu.core_type<tc>, window_params = [{transform_indices = @transform_0, window_bounds = array<i64: 72, 128>}, {pipeline_mode = #tpu.pipeline_mode<synchronous>, transform_indices = @transform_1, window_bounds = array<i64: 72, 1>}, {pipeline_mode = #tpu.pipeline_mode<synchronous>, transform_indices = @transform_2, window_bounds = array<i64: 128, 512>}, {pipeline_mode = #tpu.pipeline_mode<synchronous>, transform_indices = @transform_3, window_bounds = array<i64: 1, 512>}, {pipeline_mode = #tpu.pipeline_mode<synchronous>, transform_indices = @transform_4, window_bounds = array<i64: 9, 512>}, {pipeline_mode = #tpu.pipeline_mode<synchronous>, transform_indices = @transform_5, window_bounds = array<i64: 1, 512>}, {pipeline_mode = #tpu.pipeline_mode<synchronous>, transform_indices = @transform_6, window_bounds = array<i64: 512, 2>}, {pipeline_mode = #tpu.pipeline_mode<synchronous>, transform_indices = @transform_7, window_bounds = array<i64: 1, 2>}, {pipeline_mode = #tpu.pipeline_mode<synchronous>, transform_indices = @transform_8, window_bounds = array<i64: 2, 512>}, {pipeline_mode = #tpu.pipeline_mode<synchronous>, transform_indices = @transform_9, window_bounds = array<i64: 1, 512>}, {pipeline_mode = #tpu.pipeline_mode<synchronous>, transform_indices = @transform_10, window_bounds = array<i64: 512, 128>}, {pipeline_mode = #tpu.pipeline_mode<synchronous>, transform_indices = @transform_11, window_bounds = array<i64: 1, 128>}, {transform_indices = @transform_12, window_bounds = array<i64: 64, 128>}]} {
    %c0 = arith.constant 0 : index
    %c0_0 = arith.constant 0 : index
    %0 = vector.load %arg1[%c0, %c0_0] : memref<72x128xf32, #tpu.memory_space<vmem>>, vector<72x128xf32>
    %1 = arith.truncf %0 : vector<72x128xf32> to vector<72x128xbf16>
    %c0_1 = arith.constant 0 : index
    %c0_2 = arith.constant 0 : index
    %2 = vector.load %arg3[%c0_1, %c0_2] : memref<128x512xbf16, #tpu.memory_space<vmem>>, vector<128x512xbf16>
    %cst = arith.constant dense<0.000000e+00> : vector<72x512xf32>
    %3 = tpu.matmul %1, %2, %cst {dimension_numbers = #tpu.dot_dimension_numbers<[1], [0], [0], [1], [0, 0, 1, 1], [], []>} : vector<72x128xbf16>, vector<128x512xbf16>, vector<72x512xf32> -> vector<72x512xf32>
    %c0_3 = arith.constant 0 : index
    %c0_4 = arith.constant 0 : index
    %4 = vector.load %arg4[%c0_3, %c0_4] : memref<1x512xf32, #tpu.memory_space<vmem>>, vector<1x512xf32>
    %5 = vector.broadcast %4 : vector<1x512xf32> to vector<72x512xf32>
    %6 = arith.addf %3, %5 : vector<72x512xf32>
    %7 = arith.negf %6 : vector<72x512xf32>
    %8 = math.exp %7 : vector<72x512xf32>
    %cst_5 = arith.constant 1.000000e+00 : f32
    %9 = vector.broadcast %cst_5 : f32 to vector<72x512xf32>
    %10 = arith.addf %9, %8 : vector<72x512xf32>
    %11 = arith.divf %9, %10 : vector<72x512xf32>
    %12 = arith.mulf %6, %11 : vector<72x512xf32>
    %c0_6 = arith.constant 0 : index
    %c0_7 = arith.constant 0 : index
    %13 = vector.load %arg2[%c0_6, %c0_7] : memref<72x1xf32, #tpu.memory_space<vmem>>, vector<72x1xf32>
    %14 = vector.broadcast %13 : vector<72x1xf32> to vector<72x512xf32>
    %15 = arith.mulf %12, %14 : vector<72x512xf32>
    %cst_8 = arith.constant 0.000000e+00 : f32
    %16 = vector.broadcast %cst_8 : f32 to vector<72x32xf32>
    %17 = vector.extract_strided_slice %15 {offsets = [0, 0], sizes = [72, 480], strides = [1, 1]} : vector<72x512xf32> to vector<72x480xf32>
    %18 = tpu.concatenate %16, %17 in 1 : vector<72x32xf32>, vector<72x480xf32> -> vector<72x512xf32>
    %cst_9 = arith.constant 0.000000e+00 : f32
    %19 = vector.broadcast %cst_9 : f32 to vector<72x32xf32>
    %20 = vector.extract_strided_slice %15 {offsets = [0, 32], sizes = [72, 480], strides = [1, 1]} : vector<72x512xf32> to vector<72x480xf32>
    %21 = tpu.concatenate %20, %19 in 1 : vector<72x480xf32>, vector<72x32xf32> -> vector<72x512xf32>
    %c0_10 = arith.constant 0 : index
    %c0_11 = arith.constant 0 : index
    %22 = vector.load %arg5[%c0_10, %c0_11] : memref<9x512xf32, #tpu.memory_space<vmem>>, vector<1x512xf32>
    %23 = vector.extract_strided_slice %18 {offsets = [0, 0], sizes = [16, 512], strides = [1, 1]} : vector<72x512xf32> to vector<16x512xf32>
    %24 = vector.broadcast %22 : vector<1x512xf32> to vector<16x512xf32>
    %25 = arith.mulf %23, %24 : vector<16x512xf32>
    %c1 = arith.constant 1 : index
    %c0_12 = arith.constant 0 : index
    %26 = vector.load %arg5[%c1, %c0_12] : memref<9x512xf32, #tpu.memory_space<vmem>>, vector<1x512xf32>
    %27 = vector.extract_strided_slice %15 {offsets = [0, 0], sizes = [16, 512], strides = [1, 1]} : vector<72x512xf32> to vector<16x512xf32>
    %28 = vector.broadcast %26 : vector<1x512xf32> to vector<16x512xf32>
    %29 = arith.mulf %27, %28 : vector<16x512xf32>
    %30 = arith.addf %25, %29 : vector<16x512xf32>
    %c2 = arith.constant 2 : index
    %c0_13 = arith.constant 0 : index
    %31 = vector.load %arg5[%c2, %c0_13] : memref<9x512xf32, #tpu.memory_space<vmem>>, vector<1x512xf32>
    %32 = vector.extract_strided_slice %21 {offsets = [0, 0], sizes = [16, 512], strides = [1, 1]} : vector<72x512xf32> to vector<16x512xf32>
    %33 = vector.broadcast %31 : vector<1x512xf32> to vector<16x512xf32>
    %34 = arith.mulf %32, %33 : vector<16x512xf32>
    %35 = arith.addf %30, %34 : vector<16x512xf32>
    %c3 = arith.constant 3 : index
    %c0_14 = arith.constant 0 : index
    %36 = vector.load %arg5[%c3, %c0_14] : memref<9x512xf32, #tpu.memory_space<vmem>>, vector<1x512xf32>
    %37 = vector.extract_strided_slice %18 {offsets = [1, 0], sizes = [16, 512], strides = [1, 1]} : vector<72x512xf32> to vector<16x512xf32>
    %38 = vector.broadcast %36 : vector<1x512xf32> to vector<16x512xf32>
    %39 = arith.mulf %37, %38 : vector<16x512xf32>
    %40 = arith.addf %35, %39 : vector<16x512xf32>
    %c4 = arith.constant 4 : index
    %c0_15 = arith.constant 0 : index
    %41 = vector.load %arg5[%c4, %c0_15] : memref<9x512xf32, #tpu.memory_space<vmem>>, vector<1x512xf32>
    %42 = vector.extract_strided_slice %15 {offsets = [1, 0], sizes = [16, 512], strides = [1, 1]} : vector<72x512xf32> to vector<16x512xf32>
    %43 = vector.broadcast %41 : vector<1x512xf32> to vector<16x512xf32>
    %44 = arith.mulf %42, %43 : vector<16x512xf32>
    %45 = arith.addf %40, %44 : vector<16x512xf32>
    %c5 = arith.constant 5 : index
    %c0_16 = arith.constant 0 : index
    %46 = vector.load %arg5[%c5, %c0_16] : memref<9x512xf32, #tpu.memory_space<vmem>>, vector<1x512xf32>
    %47 = vector.extract_strided_slice %21 {offsets = [1, 0], sizes = [16, 512], strides = [1, 1]} : vector<72x512xf32> to vector<16x512xf32>
    %48 = vector.broadcast %46 : vector<1x512xf32> to vector<16x512xf32>
    %49 = arith.mulf %47, %48 : vector<16x512xf32>
    %50 = arith.addf %45, %49 : vector<16x512xf32>
    %c6 = arith.constant 6 : index
    %c0_17 = arith.constant 0 : index
    %51 = vector.load %arg5[%c6, %c0_17] : memref<9x512xf32, #tpu.memory_space<vmem>>, vector<1x512xf32>
    %52 = vector.extract_strided_slice %18 {offsets = [2, 0], sizes = [16, 512], strides = [1, 1]} : vector<72x512xf32> to vector<16x512xf32>
    %53 = vector.broadcast %51 : vector<1x512xf32> to vector<16x512xf32>
    %54 = arith.mulf %52, %53 : vector<16x512xf32>
    %55 = arith.addf %50, %54 : vector<16x512xf32>
    %c7 = arith.constant 7 : index
    %c0_18 = arith.constant 0 : index
    %56 = vector.load %arg5[%c7, %c0_18] : memref<9x512xf32, #tpu.memory_space<vmem>>, vector<1x512xf32>
    %57 = vector.extract_strided_slice %15 {offsets = [2, 0], sizes = [16, 512], strides = [1, 1]} : vector<72x512xf32> to vector<16x512xf32>
    %58 = vector.broadcast %56 : vector<1x512xf32> to vector<16x512xf32>
    %59 = arith.mulf %57, %58 : vector<16x512xf32>
    %60 = arith.addf %55, %59 : vector<16x512xf32>
    %c8 = arith.constant 8 : index
    %c0_19 = arith.constant 0 : index
    %61 = vector.load %arg5[%c8, %c0_19] : memref<9x512xf32, #tpu.memory_space<vmem>>, vector<1x512xf32>
    %62 = vector.extract_strided_slice %21 {offsets = [2, 0], sizes = [16, 512], strides = [1, 1]} : vector<72x512xf32> to vector<16x512xf32>
    %63 = vector.broadcast %61 : vector<1x512xf32> to vector<16x512xf32>
    %64 = arith.mulf %62, %63 : vector<16x512xf32>
    %65 = arith.addf %60, %64 : vector<16x512xf32>
    %c0_20 = arith.constant 0 : index
    %c0_21 = arith.constant 0 : index
    %66 = vector.load %arg5[%c0_20, %c0_21] : memref<9x512xf32, #tpu.memory_space<vmem>>, vector<1x512xf32>
    %67 = vector.extract_strided_slice %18 {offsets = [18, 0], sizes = [16, 512], strides = [1, 1]} : vector<72x512xf32> to vector<16x512xf32>
    %68 = vector.broadcast %66 : vector<1x512xf32> to vector<16x512xf32>
    %69 = arith.mulf %67, %68 : vector<16x512xf32>
    %c1_22 = arith.constant 1 : index
    %c0_23 = arith.constant 0 : index
    %70 = vector.load %arg5[%c1_22, %c0_23] : memref<9x512xf32, #tpu.memory_space<vmem>>, vector<1x512xf32>
    %71 = vector.extract_strided_slice %15 {offsets = [18, 0], sizes = [16, 512], strides = [1, 1]} : vector<72x512xf32> to vector<16x512xf32>
    %72 = vector.broadcast %70 : vector<1x512xf32> to vector<16x512xf32>
    %73 = arith.mulf %71, %72 : vector<16x512xf32>
    %74 = arith.addf %69, %73 : vector<16x512xf32>
    %c2_24 = arith.constant 2 : index
    %c0_25 = arith.constant 0 : index
    %75 = vector.load %arg5[%c2_24, %c0_25] : memref<9x512xf32, #tpu.memory_space<vmem>>, vector<1x512xf32>
    %76 = vector.extract_strided_slice %21 {offsets = [18, 0], sizes = [16, 512], strides = [1, 1]} : vector<72x512xf32> to vector<16x512xf32>
    %77 = vector.broadcast %75 : vector<1x512xf32> to vector<16x512xf32>
    %78 = arith.mulf %76, %77 : vector<16x512xf32>
    %79 = arith.addf %74, %78 : vector<16x512xf32>
    %c3_26 = arith.constant 3 : index
    %c0_27 = arith.constant 0 : index
    %80 = vector.load %arg5[%c3_26, %c0_27] : memref<9x512xf32, #tpu.memory_space<vmem>>, vector<1x512xf32>
    %81 = vector.extract_strided_slice %18 {offsets = [19, 0], sizes = [16, 512], strides = [1, 1]} : vector<72x512xf32> to vector<16x512xf32>
    %82 = vector.broadcast %80 : vector<1x512xf32> to vector<16x512xf32>
    %83 = arith.mulf %81, %82 : vector<16x512xf32>
    %84 = arith.addf %79, %83 : vector<16x512xf32>
    %c4_28 = arith.constant 4 : index
    %c0_29 = arith.constant 0 : index
    %85 = vector.load %arg5[%c4_28, %c0_29] : memref<9x512xf32, #tpu.memory_space<vmem>>, vector<1x512xf32>
    %86 = vector.extract_strided_slice %15 {offsets = [19, 0], sizes = [16, 512], strides = [1, 1]} : vector<72x512xf32> to vector<16x512xf32>
    %87 = vector.broadcast %85 : vector<1x512xf32> to vector<16x512xf32>
    %88 = arith.mulf %86, %87 : vector<16x512xf32>
    %89 = arith.addf %84, %88 : vector<16x512xf32>
    %c5_30 = arith.constant 5 : index
    %c0_31 = arith.constant 0 : index
    %90 = vector.load %arg5[%c5_30, %c0_31] : memref<9x512xf32, #tpu.memory_space<vmem>>, vector<1x512xf32>
    %91 = vector.extract_strided_slice %21 {offsets = [19, 0], sizes = [16, 512], strides = [1, 1]} : vector<72x512xf32> to vector<16x512xf32>
    %92 = vector.broadcast %90 : vector<1x512xf32> to vector<16x512xf32>
    %93 = arith.mulf %91, %92 : vector<16x512xf32>
    %94 = arith.addf %89, %93 : vector<16x512xf32>
    %c6_32 = arith.constant 6 : index
    %c0_33 = arith.constant 0 : index
    %95 = vector.load %arg5[%c6_32, %c0_33] : memref<9x512xf32, #tpu.memory_space<vmem>>, vector<1x512xf32>
    %96 = vector.extract_strided_slice %18 {offsets = [20, 0], sizes = [16, 512], strides = [1, 1]} : vector<72x512xf32> to vector<16x512xf32>
    %97 = vector.broadcast %95 : vector<1x512xf32> to vector<16x512xf32>
    %98 = arith.mulf %96, %97 : vector<16x512xf32>
    %99 = arith.addf %94, %98 : vector<16x512xf32>
    %c7_34 = arith.constant 7 : index
    %c0_35 = arith.constant 0 : index
    %100 = vector.load %arg5[%c7_34, %c0_35] : memref<9x512xf32, #tpu.memory_space<vmem>>, vector<1x512xf32>
    %101 = vector.extract_strided_slice %15 {offsets = [20, 0], sizes = [16, 512], strides = [1, 1]} : vector<72x512xf32> to vector<16x512xf32>
    %102 = vector.broadcast %100 : vector<1x512xf32> to vector<16x512xf32>
    %103 = arith.mulf %101, %102 : vector<16x512xf32>
    %104 = arith.addf %99, %103 : vector<16x512xf32>
    %c8_36 = arith.constant 8 : index
    %c0_37 = arith.constant 0 : index
    %105 = vector.load %arg5[%c8_36, %c0_37] : memref<9x512xf32, #tpu.memory_space<vmem>>, vector<1x512xf32>
    %106 = vector.extract_strided_slice %21 {offsets = [20, 0], sizes = [16, 512], strides = [1, 1]} : vector<72x512xf32> to vector<16x512xf32>
    %107 = vector.broadcast %105 : vector<1x512xf32> to vector<16x512xf32>
    %108 = arith.mulf %106, %107 : vector<16x512xf32>
    %109 = arith.addf %104, %108 : vector<16x512xf32>
    %c0_38 = arith.constant 0 : index
    %c0_39 = arith.constant 0 : index
    %110 = vector.load %arg5[%c0_38, %c0_39] : memref<9x512xf32, #tpu.memory_space<vmem>>, vector<1x512xf32>
    %111 = vector.extract_strided_slice %18 {offsets = [36, 0], sizes = [16, 512], strides = [1, 1]} : vector<72x512xf32> to vector<16x512xf32>
    %112 = vector.broadcast %110 : vector<1x512xf32> to vector<16x512xf32>
    %113 = arith.mulf %111, %112 : vector<16x512xf32>
    %c1_40 = arith.constant 1 : index
    %c0_41 = arith.constant 0 : index
    %114 = vector.load %arg5[%c1_40, %c0_41] : memref<9x512xf32, #tpu.memory_space<vmem>>, vector<1x512xf32>
    %115 = vector.extract_strided_slice %15 {offsets = [36, 0], sizes = [16, 512], strides = [1, 1]} : vector<72x512xf32> to vector<16x512xf32>
    %116 = vector.broadcast %114 : vector<1x512xf32> to vector<16x512xf32>
    %117 = arith.mulf %115, %116 : vector<16x512xf32>
    %118 = arith.addf %113, %117 : vector<16x512xf32>
    %c2_42 = arith.constant 2 : index
    %c0_43 = arith.constant 0 : index
    %119 = vector.load %arg5[%c2_42, %c0_43] : memref<9x512xf32, #tpu.memory_space<vmem>>, vector<1x512xf32>
    %120 = vector.extract_strided_slice %21 {offsets = [36, 0], sizes = [16, 512], strides = [1, 1]} : vector<72x512xf32> to vector<16x512xf32>
    %121 = vector.broadcast %119 : vector<1x512xf32> to vector<16x512xf32>
    %122 = arith.mulf %120, %121 : vector<16x512xf32>
    %123 = arith.addf %118, %122 : vector<16x512xf32>
    %c3_44 = arith.constant 3 : index
    %c0_45 = arith.constant 0 : index
    %124 = vector.load %arg5[%c3_44, %c0_45] : memref<9x512xf32, #tpu.memory_space<vmem>>, vector<1x512xf32>
    %125 = vector.extract_strided_slice %18 {offsets = [37, 0], sizes = [16, 512], strides = [1, 1]} : vector<72x512xf32> to vector<16x512xf32>
    %126 = vector.broadcast %124 : vector<1x512xf32> to vector<16x512xf32>
    %127 = arith.mulf %125, %126 : vector<16x512xf32>
    %128 = arith.addf %123, %127 : vector<16x512xf32>
    %c4_46 = arith.constant 4 : index
    %c0_47 = arith.constant 0 : index
    %129 = vector.load %arg5[%c4_46, %c0_47] : memref<9x512xf32, #tpu.memory_space<vmem>>, vector<1x512xf32>
    %130 = vector.extract_strided_slice %15 {offsets = [37, 0], sizes = [16, 512], strides = [1, 1]} : vector<72x512xf32> to vector<16x512xf32>
    %131 = vector.broadcast %129 : vector<1x512xf32> to vector<16x512xf32>
    %132 = arith.mulf %130, %131 : vector<16x512xf32>
    %133 = arith.addf %128, %132 : vector<16x512xf32>
    %c5_48 = arith.constant 5 : index
    %c0_49 = arith.constant 0 : index
    %134 = vector.load %arg5[%c5_48, %c0_49] : memref<9x512xf32, #tpu.memory_space<vmem>>, vector<1x512xf32>
    %135 = vector.extract_strided_slice %21 {offsets = [37, 0], sizes = [16, 512], strides = [1, 1]} : vector<72x512xf32> to vector<16x512xf32>
    %136 = vector.broadcast %134 : vector<1x512xf32> to vector<16x512xf32>
    %137 = arith.mulf %135, %136 : vector<16x512xf32>
    %138 = arith.addf %133, %137 : vector<16x512xf32>
    %c6_50 = arith.constant 6 : index
    %c0_51 = arith.constant 0 : index
    %139 = vector.load %arg5[%c6_50, %c0_51] : memref<9x512xf32, #tpu.memory_space<vmem>>, vector<1x512xf32>
    %140 = vector.extract_strided_slice %18 {offsets = [38, 0], sizes = [16, 512], strides = [1, 1]} : vector<72x512xf32> to vector<16x512xf32>
    %141 = vector.broadcast %139 : vector<1x512xf32> to vector<16x512xf32>
    %142 = arith.mulf %140, %141 : vector<16x512xf32>
    %143 = arith.addf %138, %142 : vector<16x512xf32>
    %c7_52 = arith.constant 7 : index
    %c0_53 = arith.constant 0 : index
    %144 = vector.load %arg5[%c7_52, %c0_53] : memref<9x512xf32, #tpu.memory_space<vmem>>, vector<1x512xf32>
    %145 = vector.extract_strided_slice %15 {offsets = [38, 0], sizes = [16, 512], strides = [1, 1]} : vector<72x512xf32> to vector<16x512xf32>
    %146 = vector.broadcast %144 : vector<1x512xf32> to vector<16x512xf32>
    %147 = arith.mulf %145, %146 : vector<16x512xf32>
    %148 = arith.addf %143, %147 : vector<16x512xf32>
    %c8_54 = arith.constant 8 : index
    %c0_55 = arith.constant 0 : index
    %149 = vector.load %arg5[%c8_54, %c0_55] : memref<9x512xf32, #tpu.memory_space<vmem>>, vector<1x512xf32>
    %150 = vector.extract_strided_slice %21 {offsets = [38, 0], sizes = [16, 512], strides = [1, 1]} : vector<72x512xf32> to vector<16x512xf32>
    %151 = vector.broadcast %149 : vector<1x512xf32> to vector<16x512xf32>
    %152 = arith.mulf %150, %151 : vector<16x512xf32>
    %153 = arith.addf %148, %152 : vector<16x512xf32>
    %c0_56 = arith.constant 0 : index
    %c0_57 = arith.constant 0 : index
    %154 = vector.load %arg5[%c0_56, %c0_57] : memref<9x512xf32, #tpu.memory_space<vmem>>, vector<1x512xf32>
    %155 = vector.extract_strided_slice %18 {offsets = [54, 0], sizes = [16, 512], strides = [1, 1]} : vector<72x512xf32> to vector<16x512xf32>
    %156 = vector.broadcast %154 : vector<1x512xf32> to vector<16x512xf32>
    %157 = arith.mulf %155, %156 : vector<16x512xf32>
    %c1_58 = arith.constant 1 : index
    %c0_59 = arith.constant 0 : index
    %158 = vector.load %arg5[%c1_58, %c0_59] : memref<9x512xf32, #tpu.memory_space<vmem>>, vector<1x512xf32>
    %159 = vector.extract_strided_slice %15 {offsets = [54, 0], sizes = [16, 512], strides = [1, 1]} : vector<72x512xf32> to vector<16x512xf32>
    %160 = vector.broadcast %158 : vector<1x512xf32> to vector<16x512xf32>
    %161 = arith.mulf %159, %160 : vector<16x512xf32>
    %162 = arith.addf %157, %161 : vector<16x512xf32>
    %c2_60 = arith.constant 2 : index
    %c0_61 = arith.constant 0 : index
    %163 = vector.load %arg5[%c2_60, %c0_61] : memref<9x512xf32, #tpu.memory_space<vmem>>, vector<1x512xf32>
    %164 = vector.extract_strided_slice %21 {offsets = [54, 0], sizes = [16, 512], strides = [1, 1]} : vector<72x512xf32> to vector<16x512xf32>
    %165 = vector.broadcast %163 : vector<1x512xf32> to vector<16x512xf32>
    %166 = arith.mulf %164, %165 : vector<16x512xf32>
    %167 = arith.addf %162, %166 : vector<16x512xf32>
    %c3_62 = arith.constant 3 : index
    %c0_63 = arith.constant 0 : index
    %168 = vector.load %arg5[%c3_62, %c0_63] : memref<9x512xf32, #tpu.memory_space<vmem>>, vector<1x512xf32>
    %169 = vector.extract_strided_slice %18 {offsets = [55, 0], sizes = [16, 512], strides = [1, 1]} : vector<72x512xf32> to vector<16x512xf32>
    %170 = vector.broadcast %168 : vector<1x512xf32> to vector<16x512xf32>
    %171 = arith.mulf %169, %170 : vector<16x512xf32>
    %172 = arith.addf %167, %171 : vector<16x512xf32>
    %c4_64 = arith.constant 4 : index
    %c0_65 = arith.constant 0 : index
    %173 = vector.load %arg5[%c4_64, %c0_65] : memref<9x512xf32, #tpu.memory_space<vmem>>, vector<1x512xf32>
    %174 = vector.extract_strided_slice %15 {offsets = [55, 0], sizes = [16, 512], strides = [1, 1]} : vector<72x512xf32> to vector<16x512xf32>
    %175 = vector.broadcast %173 : vector<1x512xf32> to vector<16x512xf32>
    %176 = arith.mulf %174, %175 : vector<16x512xf32>
    %177 = arith.addf %172, %176 : vector<16x512xf32>
    %c5_66 = arith.constant 5 : index
    %c0_67 = arith.constant 0 : index
    %178 = vector.load %arg5[%c5_66, %c0_67] : memref<9x512xf32, #tpu.memory_space<vmem>>, vector<1x512xf32>
    %179 = vector.extract_strided_slice %21 {offsets = [55, 0], sizes = [16, 512], strides = [1, 1]} : vector<72x512xf32> to vector<16x512xf32>
    %180 = vector.broadcast %178 : vector<1x512xf32> to vector<16x512xf32>
    %181 = arith.mulf %179, %180 : vector<16x512xf32>
    %182 = arith.addf %177, %181 : vector<16x512xf32>
    %c6_68 = arith.constant 6 : index
    %c0_69 = arith.constant 0 : index
    %183 = vector.load %arg5[%c6_68, %c0_69] : memref<9x512xf32, #tpu.memory_space<vmem>>, vector<1x512xf32>
    %184 = vector.extract_strided_slice %18 {offsets = [56, 0], sizes = [16, 512], strides = [1, 1]} : vector<72x512xf32> to vector<16x512xf32>
    %185 = vector.broadcast %183 : vector<1x512xf32> to vector<16x512xf32>
    %186 = arith.mulf %184, %185 : vector<16x512xf32>
    %187 = arith.addf %182, %186 : vector<16x512xf32>
    %c7_70 = arith.constant 7 : index
    %c0_71 = arith.constant 0 : index
    %188 = vector.load %arg5[%c7_70, %c0_71] : memref<9x512xf32, #tpu.memory_space<vmem>>, vector<1x512xf32>
    %189 = vector.extract_strided_slice %15 {offsets = [56, 0], sizes = [16, 512], strides = [1, 1]} : vector<72x512xf32> to vector<16x512xf32>
    %190 = vector.broadcast %188 : vector<1x512xf32> to vector<16x512xf32>
    %191 = arith.mulf %189, %190 : vector<16x512xf32>
    %192 = arith.addf %187, %191 : vector<16x512xf32>
    %c8_72 = arith.constant 8 : index
    %c0_73 = arith.constant 0 : index
    %193 = vector.load %arg5[%c8_72, %c0_73] : memref<9x512xf32, #tpu.memory_space<vmem>>, vector<1x512xf32>
    %194 = vector.extract_strided_slice %21 {offsets = [56, 0], sizes = [16, 512], strides = [1, 1]} : vector<72x512xf32> to vector<16x512xf32>
    %195 = vector.broadcast %193 : vector<1x512xf32> to vector<16x512xf32>
    %196 = arith.mulf %194, %195 : vector<16x512xf32>
    %197 = arith.addf %192, %196 : vector<16x512xf32>
    %198 = tpu.concatenate %65, %109, %153, %197 in 0 : vector<16x512xf32>, vector<16x512xf32>, vector<16x512xf32>, vector<16x512xf32> -> vector<64x512xf32>
    %c0_74 = arith.constant 0 : index
    %c0_75 = arith.constant 0 : index
    %199 = vector.load %arg6[%c0_74, %c0_75] : memref<1x512xf32, #tpu.memory_space<vmem>>, vector<1x512xf32>
    %200 = vector.broadcast %199 : vector<1x512xf32> to vector<64x512xf32>
    %201 = arith.addf %198, %200 : vector<64x512xf32>
    %202 = arith.negf %201 : vector<64x512xf32>
    %203 = math.exp %202 : vector<64x512xf32>
    %cst_76 = arith.constant 1.000000e+00 : f32
    %204 = vector.broadcast %cst_76 : f32 to vector<64x512xf32>
    %205 = arith.addf %204, %203 : vector<64x512xf32>
    %206 = arith.divf %204, %205 : vector<64x512xf32>
    %207 = arith.mulf %201, %206 : vector<64x512xf32>
    %208 = vector.extract_strided_slice %207 {offsets = [0, 0], sizes = [16, 512], strides = [1, 1]} : vector<64x512xf32> to vector<16x512xf32>
    %cst_77 = arith.constant dense<0.000000e+00> : vector<512xf32>
    %209 = vector.multi_reduction <add>, %208, %cst_77 [0] : vector<16x512xf32> to vector<512xf32>
    %210 = vector.shape_cast %209 : vector<512xf32> to vector<1x512xf32>
    %211 = vector.extract_strided_slice %207 {offsets = [16, 0], sizes = [16, 512], strides = [1, 1]} : vector<64x512xf32> to vector<16x512xf32>
    %cst_78 = arith.constant dense<0.000000e+00> : vector<512xf32>
    %212 = vector.multi_reduction <add>, %211, %cst_78 [0] : vector<16x512xf32> to vector<512xf32>
    %213 = vector.shape_cast %212 : vector<512xf32> to vector<1x512xf32>
    %214 = vector.extract_strided_slice %207 {offsets = [32, 0], sizes = [16, 512], strides = [1, 1]} : vector<64x512xf32> to vector<16x512xf32>
    %cst_79 = arith.constant dense<0.000000e+00> : vector<512xf32>
    %215 = vector.multi_reduction <add>, %214, %cst_79 [0] : vector<16x512xf32> to vector<512xf32>
    %216 = vector.shape_cast %215 : vector<512xf32> to vector<1x512xf32>
    %217 = vector.extract_strided_slice %207 {offsets = [48, 0], sizes = [16, 512], strides = [1, 1]} : vector<64x512xf32> to vector<16x512xf32>
    %cst_80 = arith.constant dense<0.000000e+00> : vector<512xf32>
    %218 = vector.multi_reduction <add>, %217, %cst_80 [0] : vector<16x512xf32> to vector<512xf32>
    %219 = vector.shape_cast %218 : vector<512xf32> to vector<1x512xf32>
    %220 = tpu.concatenate %210, %213, %216, %219 in 0 : vector<1x512xf32>, vector<1x512xf32>, vector<1x512xf32>, vector<1x512xf32> -> vector<4x512xf32>
    %c0_81 = arith.constant 0 : index
    %c0_82 = arith.constant 0 : index
    %221 = vector.load %arg7[%c0_81, %c0_82] : memref<512x2xf32, #tpu.memory_space<vmem>>, vector<512x2xf32>
    %cst_83 = arith.constant dense<0.000000e+00> : vector<4x2xf32>
    %222 = tpu.matmul %220, %221, %cst_83 {dimension_numbers = #tpu.dot_dimension_numbers<[1], [0], [0], [1], [0, 0, 1, 1], [], []>} : vector<4x512xf32>, vector<512x2xf32>, vector<4x2xf32> -> vector<4x2xf32>
    %c0_84 = arith.constant 0 : index
    %c0_85 = arith.constant 0 : index
    %223 = vector.load %arg8[%c0_84, %c0_85] : memref<1x2xf32, #tpu.memory_space<vmem>>, vector<1x2xf32>
    %224 = vector.broadcast %223 : vector<1x2xf32> to vector<4x2xf32>
    %225 = arith.addf %222, %224 : vector<4x2xf32>
    %226 = arith.negf %225 : vector<4x2xf32>
    %227 = math.exp %226 : vector<4x2xf32>
    %cst_86 = arith.constant 1.000000e+00 : f32
    %228 = vector.broadcast %cst_86 : f32 to vector<4x2xf32>
    %229 = arith.addf %228, %227 : vector<4x2xf32>
    %230 = arith.divf %228, %229 : vector<4x2xf32>
    %231 = arith.mulf %225, %230 : vector<4x2xf32>
    %c0_87 = arith.constant 0 : index
    %c0_88 = arith.constant 0 : index
    %232 = vector.load %arg9[%c0_87, %c0_88] : memref<2x512xf32, #tpu.memory_space<vmem>>, vector<2x512xf32>
    %cst_89 = arith.constant dense<0.000000e+00> : vector<4x512xf32>
    %233 = tpu.matmul %231, %232, %cst_89 {dimension_numbers = #tpu.dot_dimension_numbers<[1], [0], [0], [1], [0, 0, 1, 1], [], []>} : vector<4x2xf32>, vector<2x512xf32>, vector<4x512xf32> -> vector<4x512xf32>
    %c0_90 = arith.constant 0 : index
    %c0_91 = arith.constant 0 : index
    %234 = vector.load %arg10[%c0_90, %c0_91] : memref<1x512xf32, #tpu.memory_space<vmem>>, vector<1x512xf32>
    %235 = vector.broadcast %234 : vector<1x512xf32> to vector<4x512xf32>
    %236 = arith.addf %233, %235 : vector<4x512xf32>
    %237 = arith.negf %236 : vector<4x512xf32>
    %238 = math.exp %237 : vector<4x512xf32>
    %cst_92 = arith.constant 1.000000e+00 : f32
    %239 = vector.broadcast %cst_92 : f32 to vector<4x512xf32>
    %240 = arith.addf %239, %238 : vector<4x512xf32>
    %241 = arith.divf %239, %240 : vector<4x512xf32>
    %242 = vector.extract_strided_slice %207 {offsets = [0, 0], sizes = [16, 512], strides = [1, 1]} : vector<64x512xf32> to vector<16x512xf32>
    %243 = vector.extract_strided_slice %241 {offsets = [0, 0], sizes = [1, 512], strides = [1, 1]} : vector<4x512xf32> to vector<1x512xf32>
    %244 = vector.broadcast %243 : vector<1x512xf32> to vector<16x512xf32>
    %245 = arith.mulf %242, %244 : vector<16x512xf32>
    %246 = vector.extract_strided_slice %207 {offsets = [16, 0], sizes = [16, 512], strides = [1, 1]} : vector<64x512xf32> to vector<16x512xf32>
    %247 = vector.extract_strided_slice %241 {offsets = [1, 0], sizes = [1, 512], strides = [1, 1]} : vector<4x512xf32> to vector<1x512xf32>
    %248 = vector.broadcast %247 : vector<1x512xf32> to vector<16x512xf32>
    %249 = arith.mulf %246, %248 : vector<16x512xf32>
    %250 = vector.extract_strided_slice %207 {offsets = [32, 0], sizes = [16, 512], strides = [1, 1]} : vector<64x512xf32> to vector<16x512xf32>
    %251 = vector.extract_strided_slice %241 {offsets = [2, 0], sizes = [1, 512], strides = [1, 1]} : vector<4x512xf32> to vector<1x512xf32>
    %252 = vector.broadcast %251 : vector<1x512xf32> to vector<16x512xf32>
    %253 = arith.mulf %250, %252 : vector<16x512xf32>
    %254 = vector.extract_strided_slice %207 {offsets = [48, 0], sizes = [16, 512], strides = [1, 1]} : vector<64x512xf32> to vector<16x512xf32>
    %255 = vector.extract_strided_slice %241 {offsets = [3, 0], sizes = [1, 512], strides = [1, 1]} : vector<4x512xf32> to vector<1x512xf32>
    %256 = vector.broadcast %255 : vector<1x512xf32> to vector<16x512xf32>
    %257 = arith.mulf %254, %256 : vector<16x512xf32>
    %258 = tpu.concatenate %245, %249, %253, %257 in 0 : vector<16x512xf32>, vector<16x512xf32>, vector<16x512xf32>, vector<16x512xf32> -> vector<64x512xf32>
    %259 = arith.truncf %258 : vector<64x512xf32> to vector<64x512xbf16>
    %c0_93 = arith.constant 0 : index
    %c0_94 = arith.constant 0 : index
    %260 = vector.load %arg11[%c0_93, %c0_94] : memref<512x128xbf16, #tpu.memory_space<vmem>>, vector<512x128xbf16>
    %cst_95 = arith.constant dense<0.000000e+00> : vector<64x128xf32>
    %261 = tpu.matmul %259, %260, %cst_95 {dimension_numbers = #tpu.dot_dimension_numbers<[1], [0], [0], [1], [0, 0, 1, 1], [], []>} : vector<64x512xbf16>, vector<512x128xbf16>, vector<64x128xf32> -> vector<64x128xf32>
    %c0_96 = arith.constant 0 : index
    %c0_97 = arith.constant 0 : index
    %262 = vector.load %arg12[%c0_96, %c0_97] : memref<1x128xf32, #tpu.memory_space<vmem>>, vector<1x128xf32>
    %263 = vector.broadcast %262 : vector<1x128xf32> to vector<64x128xf32>
    %264 = arith.addf %261, %263 : vector<64x128xf32>
    %265 = vector.extract_strided_slice %0 {offsets = [1, 0], sizes = [16, 128], strides = [1, 1]} : vector<72x128xf32> to vector<16x128xf32>
    %266 = vector.extract_strided_slice %0 {offsets = [19, 0], sizes = [16, 128], strides = [1, 1]} : vector<72x128xf32> to vector<16x128xf32>
    %267 = vector.extract_strided_slice %0 {offsets = [37, 0], sizes = [16, 128], strides = [1, 1]} : vector<72x128xf32> to vector<16x128xf32>
    %268 = vector.extract_strided_slice %0 {offsets = [55, 0], sizes = [16, 128], strides = [1, 1]} : vector<72x128xf32> to vector<16x128xf32>
    %269 = tpu.concatenate %265, %266, %267, %268 in 0 : vector<16x128xf32>, vector<16x128xf32>, vector<16x128xf32>, vector<16x128xf32> -> vector<64x128xf32>
    %270 = arith.addf %264, %269 : vector<64x128xf32>
    %c0_98 = arith.constant 0 : index
    %c0_99 = arith.constant 0 : index
    %271 = vector.load %arg13[%c0_98, %c0_99] : memref<64x128xf32, #tpu.memory_space<vmem>>, vector<64x128xf32>
    tpu.vector_store %arg13[%c0_98, %c0_99], %270 {strides = array<i32>} : memref<64x128xf32, #tpu.memory_space<vmem>>, vector<64x128xf32>,
    return
  }
  func.func @transform_0(%arg0: i32) -> (i32, i32) {
    %c0_i32 = arith.constant 0 : i32
    %c0_i32_0 = arith.constant 0 : i32
    return %arg0, %c0_i32 : i32, i32
  }
  func.func @transform_1(%arg0: i32) -> (i32, i32) {
    %c0_i32 = arith.constant 0 : i32
    %c0_i32_0 = arith.constant 0 : i32
    %c0_i32_1 = arith.constant 0 : i32
    return %c0_i32, %c0_i32_0 : i32, i32
  }
  func.func @transform_2(%arg0: i32) -> (i32, i32) {
    %c0_i32 = arith.constant 0 : i32
    %c0_i32_0 = arith.constant 0 : i32
    %c0_i32_1 = arith.constant 0 : i32
    return %c0_i32, %c0_i32_0 : i32, i32
  }
  func.func @transform_3(%arg0: i32) -> (i32, i32) {
    %c0_i32 = arith.constant 0 : i32
    %c0_i32_0 = arith.constant 0 : i32
    %c0_i32_1 = arith.constant 0 : i32
    return %c0_i32, %c0_i32_0 : i32, i32
  }
  func.func @transform_4(%arg0: i32) -> (i32, i32) {
    %c0_i32 = arith.constant 0 : i32
    %c0_i32_0 = arith.constant 0 : i32
    %c0_i32_1 = arith.constant 0 : i32
    return %c0_i32, %c0_i32_0 : i32, i32
  }
  func.func @transform_5(%arg0: i32) -> (i32, i32) {
    %c0_i32 = arith.constant 0 : i32
    %c0_i32_0 = arith.constant 0 : i32
    %c0_i32_1 = arith.constant 0 : i32
    return %c0_i32, %c0_i32_0 : i32, i32
  }
  func.func @transform_6(%arg0: i32) -> (i32, i32) {
    %c0_i32 = arith.constant 0 : i32
    %c0_i32_0 = arith.constant 0 : i32
    %c0_i32_1 = arith.constant 0 : i32
    return %c0_i32, %c0_i32_0 : i32, i32
  }
  func.func @transform_7(%arg0: i32) -> (i32, i32) {
    %c0_i32 = arith.constant 0 : i32
    %c0_i32_0 = arith.constant 0 : i32
    %c0_i32_1 = arith.constant 0 : i32
    return %c0_i32, %c0_i32_0 : i32, i32
  }
  func.func @transform_8(%arg0: i32) -> (i32, i32) {
    %c0_i32 = arith.constant 0 : i32
    %c0_i32_0 = arith.constant 0 : i32
    %c0_i32_1 = arith.constant 0 : i32
    return %c0_i32, %c0_i32_0 : i32, i32
  }
  func.func @transform_9(%arg0: i32) -> (i32, i32) {
    %c0_i32 = arith.constant 0 : i32
    %c0_i32_0 = arith.constant 0 : i32
    %c0_i32_1 = arith.constant 0 : i32
    return %c0_i32, %c0_i32_0 : i32, i32
  }
  func.func @transform_10(%arg0: i32) -> (i32, i32) {
    %c0_i32 = arith.constant 0 : i32
    %c0_i32_0 = arith.constant 0 : i32
    %c0_i32_1 = arith.constant 0 : i32
    return %c0_i32, %c0_i32_0 : i32, i32
  }
  func.func @transform_11(%arg0: i32) -> (i32, i32) {
    %c0_i32 = arith.constant 0 : i32
    %c0_i32_0 = arith.constant 0 : i32
    %c0_i32_1 = arith.constant 0 : i32
    return %c0_i32, %c0_i32_0 : i32, i32
  }
  func.func @transform_12(%arg0: i32) -> (i32, i32) {
    %c0_i32 = arith.constant 0 : i32
    %c0_i32_0 = arith.constant 0 : i32
    return %arg0, %c0_i32 : i32, i32
  }
}

</mosaic_0001>

<bundles_post_ra>
// kernel: tile.8
= control target key start
LH: loop header
LB: loop body
LE: loop exit
PB: predicated region body
PF: predicated region fallthrough
CT: control target
= control target key end

     0   :  { %s22_s0 = inlined_call_operand.vmem [shape: f32[18], index: 0, kind: input, shape index: {}]   ;;  %s23_s1 = inlined_call_operand.vmem [shape: f32[4,18], index: 1, kind: output, shape index: {}]  }
   0x1   :  { %v4_v0 = vld [vmem:[%s22_s0] ss:$0 sm:$0xff] }
   0x2   :  { %5 = vst [vmem:[%s23_s1] sm:$0xf] %v4_v0 }

// kernel: tile.0
= control target key start
LH: loop header
LB: loop body
LE: loop exit
PB: predicated region body
PF: predicated region fallthrough
CT: control target
= control target key end

     0   :  { %s197_s8 = smov 125   ;;  %s198_s9 = smov 126   ;;  %vm7_vm0 = vcmask 7168   ;;  %s366_s0 = inlined_call_operand.vmem [shape: f32[4,18], index: 0, kind: input, shape index: {}]   ;;  %s367_s1 = inlined_call_operand.vmem [shape: f32[72,1], index: 1, kind: output, shape index: {}]  }
   0x1   :  { %v4_v0 = vld [vmem:[%s366_s0] sm:$0xf]  ;;  %s196_s0 = smov 127   ;;  %s199_s10 = smov 124  }
   0x2   :  { %5 = vst [vmem:[#allocation0] sm:$0xf] %v4_v0  ;;  %s200_s11 = smov 123   ;;  %s201_s12 = smov 122  }
   0x3   :  { %s202_s13 = smov 121   ;;  %s203_s14 = smov 120  }
   0x4   :  { %s204_s15 = smov 119   ;;  %s205_s16 = smov 118  }
   0x5   :  { %s206_s19 = smov 117   ;;  %s207_s20 = smov 116  }
   0x6   :  { %s208_s21 = smov 115   ;;  %s209_s22 = smov 114  }
   0x7   :  { %s210_s23 = smov 113   ;;  %s211_s24 = smov 112  }
   0x8   :  { %s212_s25 = smov 111  }
   0x9   :  { %v9_v1 = vld.sshfl [vmem:[#allocation0] sm:$0xff pattern:$0x33333120]  }
   0xa   :  { %10 = vrot.lane.b32.xlu0 %v9_v1, %s196_s0  ;;  %26 = vrot.lane.b32.xlu1 %v9_v1, %s197_s8  ;;  %v81_v2 = vld.sshfl [vmem:[#allocation0] sm:$0xff pattern:$0x11111203]  }
   0xb   :  { %v6_v3 = vld [vmem:[#allocation0] sm:$0xf]  }
   0xc   :  { %8 = vst.msk [vmem:[%s367_s1] ss:$18 sm:$0xf] %vm7_vm0, %v6_v3   ;;  %v113_v4 = vld.sshfl [vmem:[#allocation0] sm:$0xff pattern:$0x22222031]  }
   0xe   :  { %18 = vrot.lane.b32.xlu0 %v9_v1, %s198_s9  ;;  %34 = vrot.lane.b32.xlu1 %v9_v1, %s199_s10 }
  0x12   :  { %42 = vrot.lane.b32.xlu0 %v9_v1, %s200_s11  ;;  %50 = vrot.lane.b32.xlu1 %v9_v1, %s201_s12 }
  0x16   :  { %58 = vrot.lane.b32.xlu0 %v9_v1, %s202_s13  ;;  %66 = vrot.lane.b32.xlu1 %v9_v1, %s203_s14 }
  0x1a   :  { %74 = vrot.lane.b32.xlu0 %v9_v1, %s204_s15  ;;  %82 = vrot.lane.b32.xlu1 %v81_v2, %s205_s16 }
  0x1e   :  { %90 = vrot.lane.b32.xlu0 %v81_v2, %s206_s19  ;;  %98 = vrot.lane.b32.xlu1 %v81_v2, %s207_s20 }
  0x22   :  { %106 = vrot.lane.b32.xlu0 %v81_v2, %s208_s21  ;;  %114 = vrot.lane.b32.xlu1 %v113_v4, %s209_s22 }
  0x26   :  { %122 = vrot.lane.b32.xlu0 %v113_v4, %s210_s23  ;;  %130 = vrot.lane.b32.xlu1 %v113_v4, %s211_s24 }
  0x2a   :  { %138 = vrot.lane.b32.xlu0 %v113_v4, %s212_s25 }
  0x7c   :  { %v11_v5 = vpop.permute.xlu0 %10   ;;  %v27_v6 = vpop.permute.xlu1 %26  }
  0x7d   :  { %145 = vst.msk [vmem:[%s367_s1 + $0x1] ss:$36 sm:$0x3] %vm7_vm0, %v11_v5   ;;  %146 = vst.msk [vmem:[%s367_s1 - $0x35] ss:$36 sm:$0xc] %vm7_vm0, %v11_v5  }
  0x7e   :  { %149 = vst.msk [vmem:[%s367_s1 + $0x3] ss:$36 sm:$0x3] %vm7_vm0, %v27_v6   ;;  %150 = vst.msk [vmem:[%s367_s1 - $0x33] ss:$36 sm:$0xc] %vm7_vm0, %v27_v6  }
  0x80   :  { %v19_v7 = vpop.permute.xlu0 %18   ;;  %v35_v8 = vpop.permute.xlu1 %34  }
  0x81   :  { %147 = vst.msk [vmem:[%s367_s1 + $0x2] ss:$36 sm:$0x3] %vm7_vm0, %v19_v7   ;;  %148 = vst.msk [vmem:[%s367_s1 - $0x34] ss:$36 sm:$0xc] %vm7_vm0, %v19_v7  }
  0x82   :  { %151 = vst.msk [vmem:[%s367_s1 + $0x4] ss:$36 sm:$0x3] %vm7_vm0, %v35_v8   ;;  %152 = vst.msk [vmem:[%s367_s1 - $0x32] ss:$36 sm:$0xc] %vm7_vm0, %v35_v8  }
  0x84   :  { %v43_v9 = vpop.permute.xlu0 %42   ;;  %v51_v10 = vpop.permute.xlu1 %50  }
  0x85   :  { %153 = vst.msk [vmem:[%s367_s1 + $0x5] ss:$36 sm:$0x3] %vm7_vm0, %v43_v9   ;;  %154 = vst.msk [vmem:[%s367_s1 - $0x31] ss:$36 sm:$0xc] %vm7_vm0, %v43_v9  }
  0x86   :  { %155 = vst.msk [vmem:[%s367_s1 + $0x6] ss:$36 sm:$0x3] %vm7_vm0, %v51_v10   ;;  %156 = vst.msk [vmem:[%s367_s1 - $0x30] ss:$36 sm:$0xc] %vm7_vm0, %v51_v10  }
  0x88   :  { %v59_v11 = vpop.permute.xlu0 %58   ;;  %v67_v12 = vpop.permute.xlu1 %66  }
  0x89   :  { %157 = vst.msk [vmem:[%s367_s1 + $0x7] ss:$36 sm:$0x3] %vm7_vm0, %v59_v11   ;;  %158 = vst.msk [vmem:[%s367_s1 - $0x2f] ss:$36 sm:$0xc] %vm7_vm0, %v59_v11  }
  0x8a   :  { %159 = vst.msk [vmem:[%s367_s1 + $0x8] ss:$36 sm:$0x3] %vm7_vm0, %v67_v12   ;;  %160 = vst.msk [vmem:[%s367_s1 - $0x2e] ss:$36 sm:$0xc] %vm7_vm0, %v67_v12  }
  0x8c   :  { %v75_v13 = vpop.permute.xlu0 %74   ;;  %v83_v14 = vpop.permute.xlu1 %82  }
  0x8d   :  { %161 = vst.msk [vmem:[%s367_s1 + $0x9] ss:$36 sm:$0x3] %vm7_vm0, %v75_v13   ;;  %162 = vst.msk [vmem:[%s367_s1 - $0x2d] ss:$36 sm:$0xc] %vm7_vm0, %v75_v13  }
  0x8e   :  { %163 = vst.msk [vmem:[%s367_s1 + $0x40] ss:$-54 sm:$0x3] %vm7_vm0, %v83_v14   ;;  %164 = vst.msk [vmem:[%s367_s1 + $0x52] ss:$-18 sm:$0xc] %vm7_vm0, %v83_v14  }
  0x90   :  { %v91_v15 = vpop.permute.xlu0 %90   ;;  %v99_v16 = vpop.permute.xlu1 %98  }
  0x91   :  { %165 = vst.msk [vmem:[%s367_s1 + $0x41] ss:$-54 sm:$0x3] %vm7_vm0, %v91_v15   ;;  %166 = vst.msk [vmem:[%s367_s1 + $0x53] ss:$-18 sm:$0xc] %vm7_vm0, %v91_v15  }
  0x92   :  { %167 = vst.msk [vmem:[%s367_s1 + $0x42] ss:$-54 sm:$0x3] %vm7_vm0, %v99_v16   ;;  %168 = vst.msk [vmem:[%s367_s1 + $0x54] ss:$-18 sm:$0xc] %vm7_vm0, %v99_v16  }
  0x94   :  { %v107_v17 = vpop.permute.xlu0 %106   ;;  %v115_v18 = vpop.permute.xlu1 %114  }
  0x95   :  { %169 = vst.msk [vmem:[%s367_s1 + $0x43] ss:$-54 sm:$0x3] %vm7_vm0, %v107_v17   ;;  %170 = vst.msk [vmem:[%s367_s1 + $0x55] ss:$-18 sm:$0xc] %vm7_vm0, %v107_v17  }
  0x96   :  { %171 = vst.msk [vmem:[%s367_s1 + $0x20] ss:$36 sm:$0x3] %vm7_vm0, %v115_v18   ;;  %172 = vst.msk [vmem:[%s367_s1 - $0x3a] ss:$36 sm:$0xc] %vm7_vm0, %v115_v18  }
  0x98   :  { %v123_v19 = vpop.permute.xlu0 %122   ;;  %v131_v20 = vpop.permute.xlu1 %130  }
  0x99   :  { %173 = vst.msk [vmem:[%s367_s1 + $0x21] ss:$36 sm:$0x3] %vm7_vm0, %v123_v19   ;;  %174 = vst.msk [vmem:[%s367_s1 - $0x39] ss:$36 sm:$0xc] %vm7_vm0, %v123_v19  }
  0x9a   :  { %175 = vst.msk [vmem:[%s367_s1 + $0x22] ss:$36 sm:$0x3] %vm7_vm0, %v131_v20   ;;  %176 = vst.msk [vmem:[%s367_s1 - $0x38] ss:$36 sm:$0xc] %vm7_vm0, %v131_v20  }
  0x9c   :  { %v139_v21 = vpop.permute.xlu0 %138  }
  0x9d   :  { %177 = vst.msk [vmem:[%s367_s1 + $0x23] ss:$36 sm:$0x3] %vm7_vm0, %v139_v21   ;;  %178 = vst.msk [vmem:[%s367_s1 - $0x37] ss:$36 sm:$0xc] %vm7_vm0, %v139_v21  }

// kernel: mbconv_forward.1
= control target key start
LH: loop header
LB: loop body
LE: loop exit
PB: predicated region body
PF: predicated region fallthrough
CT: control target
= control target key end

     0   :  { %s5650_s21 = smov 0   ;;  %s9807_s0 = inlined_call_operand.vmem [shape: f32[144,128], index: 0, kind: input, shape index: {}]   ;;  %s9808_s1 = inlined_call_operand.vmem [shape: f32[72,1], index: 1, kind: input, shape index: {}]   ;;  %s9809_s2 = inlined_call_operand.vmem [shape: bf16[128,512], index: 2, kind: input, shape index: {}]   ;;  %s9810_s3 = inlined_call_operand.vmem [shape: f32[1,512], index: 3, kind: input, shape index: {}]   ;;  %s9811_s4 = inlined_call_operand.vmem [shape: f32[9,512], index: 4, kind: input, shape index: {}]   ;;  %s9812_s5 = inlined_call_operand.vmem [shape: f32[1,512], index: 5, kind: input, shape index: {}]   ;;  %s9813_s6 = inlined_call_operand.vmem [shape: f32[512,2], index: 6, kind: input, shape index: {}]   ;;  %s9814_s7 = inlined_call_operand.vmem [shape: f32[1,2], index: 7, kind: input, shape index: {}]   ;;  %s9815_s8 = inlined_call_operand.vmem [shape: f32[2,512], index: 8, kind: input, shape index: {}]   ;;  %s9816_s9 = inlined_call_operand.vmem [shape: f32[1,512], index: 9, kind: input, shape index: {}]   ;;  %s9817_s10 = inlined_call_operand.vmem [shape: bf16[512,128], index: 10, kind: input, shape index: {}]   ;;  %s9818_s11 = inlined_call_operand.vmem [shape: f32[1,128], index: 11, kind: input, shape index: {}]   ;;  %s9819_s12 = inlined_call_operand.vmem [shape: f32[128,128], index: 12, kind: output, shape index: {}]  }
   0x1 LB: > { %s4798_s22 = sadd.s32 4294967295, %s5578_s21   ;;  %p4802_p0 = scmp.ge.s32.totalorder %s5578_s21, 1  ;;  %s5578_s21 = sphi %s5650_s21, %s22_s21  }
   0x2   : > { %p363_p1 = scmp.lt.s32.totalorder %s5578_s21, 3 }
   0x4   : > { %p364_p2 = pnand %p4802_p0, %p363_p1 }
   0x6   : > { %367 = sbr.rel (%p364_p2) target bundleno = 1527 (0x5f7), region = 68 }
   0xd   : > { %v5190_v0 = vld [vmem:[%s9809_s2 + $0x4] ss:$16 sps:$4 sm:$0xff]   ;;  %v5192_v1 = vld [vmem:[%s9809_s2 + $0xc] ss:$16 sps:$4 sm:$0xff]   ;;  %v5580_v2 = vmov 0   ;;  %s405_s15 = smul.u32 9, %s4798_s22  ;;  %v466_v56 = vlaneseq }
   0xe   : > { %678 = vmatprep.mubr.bf16.mxu0 %v5580_v2  ;;  %759 = vmatprep.mubr.bf16.mxu1 %v5580_v2  ;;  %v5194_v3 = vld [vmem:[%s9809_s2] ss:$16 sps:$4 sm:$0xff]   ;;  %v5195_v4 = vld [vmem:[%s9809_s2 + $0x8] ss:$16 sps:$4 sm:$0xff]   ;;  %v5196_v5 = vld [vmem:[%s9809_s2 + $0x24] ss:$16 sps:$4 sm:$0xff]  }
   0xf   : > { %646 = vmatprep.subr.bf16.mxu0 %v5190_v0  ;;  %5189 = vset.pattern.permute.xlu1 %v5580_v2  ;;  %v5198_v6 = vld [vmem:[%s9809_s2 + $0x2c] ss:$16 sps:$4 sm:$0xff]   ;;  %v5200_v7 = vld [vmem:[%s9809_s2 + $0x20] ss:$16 sps:$4 sm:$0xff]   ;;  %v5201_v8 = vld [vmem:[%s9809_s2 + $0x28] ss:$16 sps:$4 sm:$0xff]  }
  0x10   : > { %727 = vmatprep.subr.bf16.mxu1 %v5192_v1  ;;  %5188 = vset.pattern.permute.xlu0 %v5580_v2  ;;  %v5202_v9 = vld [vmem:[%s9809_s2 + $0x44] ss:$16 sps:$4 sm:$0xff]   ;;  %v5204_v10 = vld [vmem:[%s9809_s2 + $0x4c] ss:$16 sps:$4 sm:$0xff]   ;;  %v5206_v11 = vld [vmem:[%s9809_s2 + $0x40] ss:$16 sps:$4 sm:$0xff]  }
  0x11   : > { %647 = vmatpush1.bf16.msra.mxu0 %v5194_v3  ;;  %728 = vmatpush1.bf16.msra.mxu1 %v5195_v4  ;;  %v5207_v12 = vld [vmem:[%s9809_s2 + $0x48] ss:$16 sps:$4 sm:$0xff]   ;;  %v5208_v13 = vld [vmem:[%s9809_s2 + $0x64] ss:$16 sps:$4 sm:$0xff]   ;;  %v5210_v14 = vld [vmem:[%s9809_s2 + $0x6c] ss:$16 sps:$4 sm:$0xff]  }
  0x12   : > { %648 = vmatprep.subr.bf16.mxu0 %v5196_v5  ;;  %729 = vmatprep.subr.bf16.mxu1 %v5198_v6  ;;  %v5212_v15 = vld [vmem:[%s9809_s2 + $0x60] ss:$16 sps:$4 sm:$0xff]   ;;  %v5213_v16 = vld [vmem:[%s9809_s2 + $0x68] ss:$16 sps:$4 sm:$0xff]   ;;  %v5214_v17 = vld [vmem:[%s9809_s2 + $0x84] ss:$16 sps:$4 sm:$0xff]  }
  0x13   : > { %p406_p3 = scmp.lt.s32.totalorder %s405_s15, 17  ;;  %v5216_v18 = vld [vmem:[%s9809_s2 + $0x8c] ss:$16 sps:$4 sm:$0xff]   ;;  %v5218_v19 = vld [vmem:[%s9809_s2 + $0x80] ss:$16 sps:$4 sm:$0xff]   ;;  %v5809_v57 = vshrl.u32 %v466_v56, 7 }
  0x14   : > { %v5219_v20 = vld [vmem:[%s9809_s2 + $0x88] ss:$16 sps:$4 sm:$0xff]   ;;  %v5220_v21 = vld [vmem:[%s9809_s2 + $0xa4] ss:$16 sps:$4 sm:$0xff]   ;;  %v5222_v22 = vld [vmem:[%s9809_s2 + $0xac] ss:$16 sps:$4 sm:$0xff]  }
  0x15   : > { %649 = vmatpush1.bf16.msra.mxu0 %v5200_v7  ;;  %730 = vmatpush1.bf16.msra.mxu1 %v5201_v8  ;;  %s10816_s15 = smov (!%p406_p3, %s405_s15), 17  ;;  %v5224_v23 = vld [vmem:[%s9809_s2 + $0xa0] ss:$16 sps:$4 sm:$0xff]   ;;  %v5225_v24 = vld [vmem:[%s9809_s2 + $0xa8] ss:$16 sps:$4 sm:$0xff]   ;;  %10094 = vst [vmem:[#allocation2_spill] sm:$0xff] %v5809_v57 }
  0x16   : > { %650 = vmatprep.subr.bf16.mxu0 %v5202_v9  ;;  %731 = vmatprep.subr.bf16.mxu1 %v5204_v10  ;;  %s4803_s25 = sshll.u32 %s10816_s15, 3  ;;  %v5226_v25 = vld [vmem:[%s9809_s2 + $0xc4] ss:$16 sps:$4 sm:$0xff]   ;;  %v5228_v26 = vld [vmem:[%s9809_s2 + $0xcc] ss:$16 sps:$4 sm:$0xff]   ;;  %v5812_v58 = vsub.s32 0, %v5809_v57 }
  0x17   : > { %s5745_s14 = scalar_lea.vmem %s9807_s0, %s4803_s25  ;;  %v5230_v27 = vld [vmem:[%s9809_s2 + $0xc0] ss:$16 sps:$4 sm:$0xff]   ;;  %v5231_v28 = vld [vmem:[%s9809_s2 + $0xc8] ss:$16 sps:$4 sm:$0xff]   ;;  %v5232_v30 = vld [vmem:[%s9809_s2 + $0xe4] ss:$16 sps:$4 sm:$0xff]  }
  0x18   : > { %v1064_v29 = vld [vmem:[%s9808_s1 + $0x20] sm:$0xff]  ;;  %v5234_v31 = vld [vmem:[%s9809_s2 + $0xec] ss:$16 sps:$4 sm:$0xff]   ;;  %v1062_v32 = vld [vmem:[%s9808_s1 + $0x10] sm:$0xff]  ;;  %10095 = vst [vmem:[#allocation3_spill] sm:$0xff] %v5812_v58  ;;  %v5815_v59 = vsub.s32 2, %v5809_v57 }
  0x19   : > { %651 = vmatpush1.bf16.msra.mxu0 %v5206_v11  ;;  %732 = vmatpush1.bf16.msra.mxu1 %v5207_v12  ;;  %v5236_v33 = vld [vmem:[%s9809_s2 + $0xe0] ss:$16 sps:$4 sm:$0xff]   ;;  %v5237_v34 = vld [vmem:[%s9809_s2 + $0xe8] ss:$16 sps:$4 sm:$0xff]   ;;  %v5821_v61 = vsub.s32 1, %v5809_v57  ;;  %v5824_v62 = vsub.s32 3, %v5809_v57 }
  0x1a   : > { %652 = vmatprep.subr.bf16.mxu0 %v5208_v13  ;;  %733 = vmatprep.subr.bf16.mxu1 %v5210_v14  ;;  %v418_v35 = vld [vmem:[%s5745_s14] sm:$0xff]  ;;  %v419_v36 = vld [vmem:[%s5745_s14 + $0x8] sm:$0xff]  ;;  %v1063_v38 = vld [vmem:[%s9808_s1 + $0x18] sm:$0xff]  ;;  %10096 = vst [vmem:[#allocation4_spill] sm:$0xff] %v5815_v59  ;;  %s5581_s17 = smov 32   ;;  %s5582_s18 = smov 96  }
  0x1b   : > { %1091 = vperm.xlu1 %5189, %v1064_v29   ;;  %1081 = vperm.xlu0 %5188, %v1062_v32   ;;  %v1065_v37 = vld [vmem:[%s9808_s1 + $0x28] sm:$0xff]  ;;  %v1067_v39 = vld [vmem:[%s9808_s1 + $0x38] sm:$0xff]  ;;  %v1066_v40 = vld [vmem:[%s9808_s1 + $0x30] sm:$0xff]  ;;  %v427_v41 = vpack.c.bf16 %v419_v36, %v418_v35  ;;  %10097 = vst [vmem:[#allocation5_spill] sm:$0xff] %v5821_v61  ;;  %vm1631_vm0 = vcmask 1046528   ;;  %vm1881_vm1 = vcmask 1045504  }
  0x1c   : > { %v1060_v42 = vld [vmem:[%s9808_s1] sm:$0xff]  ;;  %v420_v44 = vld [vmem:[%s5745_s14 + $0x10] sm:$0xff]  ;;  %v421_v45 = vld [vmem:[%s5745_s14 + $0x18] sm:$0xff]  ;;  %10098 = vst [vmem:[#allocation6_spill] sm:$0xff] %v5824_v62  ;;  %vm1258_vm2 = vcmask 261120   ;;  %vm1403_vm3 = vcmask 785408  }
  0x1d   : > { %653 = vmatpush1.bf16.msra.mxu0 %v5212_v15  ;;  %734 = vmatpush1.bf16.msra.mxu1 %v5213_v16  ;;  %v1068_v43 = vld [vmem:[%s9808_s1 + $0x40] sm:$0xff]  ;;  %v1061_v46 = vld [vmem:[%s9808_s1 + $0x8] sm:$0xff]  ;;  %v428_v47 = vpack.c.bf16 %v421_v45, %v420_v44  ;;  %v424_v51 = vld [vmem:[%s5745_s14 + $0x30] sm:$0xff]  ;;  %vm3272_vm4 = vcmask 1043456   ;;  %vm3313_vm5 = vcmask 1041408   ;;  %vm3732_vm6 = vcmask 1040384  }
  0x1e   : > { %654 = vmatprep.subr.bf16.mxu0 %v5214_v17  ;;  %735 = vmatprep.subr.bf16.mxu1 %v5216_v18  ;;  %v422_v48 = vld [vmem:[%s5745_s14 + $0x20] sm:$0xff]  ;;  %v423_v49 = vld [vmem:[%s5745_s14 + $0x28] sm:$0xff]  ;;  %v425_v52 = vld [vmem:[%s5745_s14 + $0x38] sm:$0xff]  ;;  %vm3741_vm7 = vcmask 1042432   ;;  %vm4005_vm8 = vcmask 15360   ;;  %vm4700_vm9 = vcmask 1044480  }
  0x1f   : > { %1096 = vperm.xlu1 %5189, %v1065_v37   ;;  %1086 = vperm.xlu0 %5188, %v1063_v38   ;;  %v429_v50 = vpack.c.bf16 %v423_v49, %v422_v48  ;;  %v430_v53 = vpack.c.bf16 %v425_v52, %v424_v51  ;;  %v426_v54 = vld [vmem:[%s5745_s14 + $0x40] sm:$0xff]  ;;  %s4804_s29 = sshll.u32 %s4798_s22, 3 }
  0x20   : > { %v431_v55 = vpack.c.bf16 %v426_v54, %v426_v54  ;;  %v464_v60 = vld [vmem:[%s9810_s3] sm:$0xf]  ;;  %p412_p4 = scmp.lt.s32.totalorder %s4804_s29, 15 }
  0x21   : > { %655 = vmatpush1.bf16.msra.mxu0 %v5218_v19  ;;  %736 = vmatpush1.bf16.msra.mxu1 %v5219_v20  ;;  %v5827_v63 = vrot.slane %v464_v60, %v5812_v58  ;;  %v5830_v0 = vrot.slane %v464_v60, %v5815_v59  ;;  %v5833_v1 = vrot.slane %v464_v60, %v5821_v61 }
  0x22   : > { %656 = vmatprep.subr.bf16.mxu0 %v5220_v21  ;;  %737 = vmatprep.subr.bf16.mxu1 %v5222_v22  ;;  %s10818_s29 = smov (!%p412_p4, %s4804_s29), 15 }
  0x23   : > { %1106 = vperm.xlu1 %5189, %v1067_v39   ;;  %1101 = vperm.xlu0 %5188, %v1066_v40  }
  0x25   : > { %657 = vmatpush1.bf16.msra.mxu0 %v5224_v23  ;;  %738 = vmatpush1.bf16.msra.mxu1 %v5225_v24 }
  0x26   : > { %658 = vmatprep.subr.bf16.mxu0 %v5226_v25  ;;  %739 = vmatprep.subr.bf16.mxu1 %v5228_v26 }
  0x27   : > { %1071 = vperm.xlu1 %5189, %v1060_v42   ;;  %1111 = vperm.xlu0 %5188, %v1068_v43  }
  0x29   : > { %659 = vmatpush1.bf16.msra.mxu0 %v5230_v27  ;;  %740 = vmatpush1.bf16.msra.mxu1 %v5231_v28 }
  0x2a   : > { %660 = vmatprep.subr.bf16.mxu0 %v5232_v30  ;;  %741 = vmatprep.subr.bf16.mxu1 %v5234_v31 }
  0x2b   : > { %1076 = vperm.xlu0 %5188, %v1061_v46  }
  0x2d   : > { %661 = vmatpush1.bf16.msra.mxu0 %v5236_v33  ;;  %742 = vmatpush1.bf16.msra.mxu1 %v5237_v34 }
  0x30   : > { %679 = vmatmul.mubr.bf16.vlgmr.msra.gmra.mrb[0].mxu0 %v427_v41  ;;  %760 = vmatmul.mubr.bf16.vlgmr.msra.gmra.mrb[0].mxu1 %v427_v41 }
  0x31   : > { %688 = vmatprep.mubr.bf16.mxu0 %v5580_v2  ;;  %769 = vmatprep.mubr.bf16.mxu1 %v5580_v2 }
  0x38   : > { %689 = vmatmul.mubr.bf16.gmra.mrb[4].mxu0 %v428_v47  ;;  %770 = vmatmul.mubr.bf16.gmra.mrb[4].mxu1 %v428_v47 }
  0x39   : > { %698 = vmatprep.mubr.bf16.mxu0 %v5580_v2  ;;  %779 = vmatprep.mubr.bf16.mxu1 %v5580_v2 }
  0x40   : > { %699 = vmatmul.mubr.bf16.gmra.mrb[8].mxu0 %v429_v50  ;;  %780 = vmatmul.mubr.bf16.gmra.mrb[8].mxu1 %v429_v50 }
  0x41   : > { %708 = vmatprep.mubr.bf16.mxu0 %v5580_v2  ;;  %789 = vmatprep.mubr.bf16.mxu1 %v5580_v2 }
  0x48   : > { %709 = vmatmul.mubr.bf16.gmra.mrb[12].mxu0 %v430_v53  ;;  %790 = vmatmul.mubr.bf16.gmra.mrb[12].mxu1 %v430_v53 }
  0x49   : > { %718 = vmatprep.mubr.bf16.mxu0 %v5580_v2  ;;  %799 = vmatprep.mubr.bf16.mxu1 %v5580_v2  ;;  %v5836_v2 = vrot.slane %v464_v60, %v5824_v62 }
  0x50   : > { %719 = vmatmul.mubr.bf16.gmra.mrb[16].mxu0 %v431_v55  ;;  %800 = vmatmul.mubr.bf16.gmra.mrb[16].mxu1 %v431_v55 }
  0x9a   : > { %v5864_v23 = vpop.permute.xlu1 %1091  ;;  %v5887_v41 = vpop.permute.xlu0 %1081 }
  0x9b   : > { %10099 = vst [vmem:[#allocation7_spill] sm:$0xff] %v5864_v23 }
  0x9e   : > { %v5885_v40 = vpop.permute.xlu1 %1096 }
  0x9f   : > { %10100 = vst [vmem:[#allocation8_spill] sm:$0xff] %v5885_v40 }
 0x103   : > { %v680_v3 = vpop.f32.mrb[0].mxu0  ;;  %v761_v4 = vpop.f32.mrb[0].mxu1 }
 0x104   : > { %v5839_v5 = vadd.f32 %v680_v3, %v5827_v63  ;;  %v5842_v6 = vadd.f32 %v761_v4, %v5830_v0  ;;  %v682_v7 = vpop.f32.mrb[1].mxu0  ;;  %v763_v8 = vpop.f32.mrb[1].mxu1 }
 0x105   : > { %v5845_v9 = vadd.f32 %v682_v7, %v5833_v1  ;;  %v5848_v10 = vadd.f32 %v763_v8, %v5836_v2  ;;  %v684_v11 = vpop.f32.mrb[2].mxu0  ;;  %v765_v12 = vpop.f32.mrb[2].mxu1 }
 0x106   : > { %v4838_v13 = vmul.f32 -1.442695, %v5839_v5  ;;  %v4840_v14 = vmul.f32 -1.442695, %v5842_v6  ;;  %v5853_v15 = vadd.f32 %v765_v12, %v5830_v0  ;;  %v686_v16 = vpop.f32.mrb[3].mxu0  ;;  %v767_v17 = vpop.f32.mrb[3].mxu1  ;;  %v5858_v20 = vadd.f32 %v684_v11, %v5827_v63 }
 0x107   : > { %v4839_v18 = vmul.f32 -1.442695, %v5845_v9  ;;  %v4841_v19 = vmul.f32 -1.442695, %v5848_v10  ;;  %v5862_v22 = vadd.f32 %v686_v16, %v5833_v1  ;;  %v5868_v25 = vadd.f32 %v767_v17, %v5836_v2 }
 0x108   : > { %5271 = vpow2.f32 %v4838_v13  ;;  %v4844_v21 = vmul.f32 -1.442695, %v5853_v15  ;;  %v4842_v24 = vmul.f32 -1.442695, %v5858_v20 }
 0x109   : > { %5273 = vpow2.f32 %v4840_v14  ;;  %v4843_v33 = vmul.f32 -1.442695, %v5862_v22  ;;  %v4845_v36 = vmul.f32 -1.442695, %v5868_v25 }
 0x10a   : > { %5275 = vpow2.f32 %v4839_v18 }
 0x10b   : > { %5277 = vpow2.f32 %v4841_v19  ;;  %v690_v26 = vpop.f32.mrb[4].mxu0  ;;  %v771_v27 = vpop.f32.mrb[4].mxu1 }
 0x10c   : > { %v5871_v28 = vadd.f32 %v690_v26, %v5827_v63  ;;  %v692_v29 = vpop.f32.mrb[5].mxu0  ;;  %v773_v30 = vpop.f32.mrb[5].mxu1  ;;  %5279 = vpow2.f32 %v4844_v21  ;;  %v5883_v38 = vadd.f32 %v771_v27, %v5830_v0 }
 0x10d   : > { %v694_v31 = vpop.f32.mrb[6].mxu0  ;;  %v5873_v32 = vpop.f32.mrb[6].mxu1  ;;  %5281 = vpow2.f32 %v4842_v24  ;;  %v5899_v53 = vadd.f32 %v692_v29, %v5833_v1  ;;  %v5902_v4 = vadd.f32 %v773_v30, %v5836_v2 }
 0x10e   : > { %v5876_v34 = vpop.f32.mrb[7].mxu0  ;;  %v5878_v35 = vpop.f32.mrb[7].mxu1  ;;  %v4846_v37 = vmul.f32 -1.442695, %v5871_v28  ;;  %5283 = vpow2.f32 %v4843_v33  ;;  %v4848_v52 = vmul.f32 -1.442695, %v5883_v38  ;;  %v5918_v18 = vadd.f32 %v694_v31, %v5827_v63 }
 0x10f   : > { %5285 = vpow2.f32 %v4845_v36  ;;  %v4847_v13 = vmul.f32 -1.442695, %v5899_v53  ;;  %v5920_v19 = vpop.permute.xlu0 %1086  ;;  %v4849_v21 = vmul.f32 -1.442695, %v5902_v4  ;;  %v5923_v24 = vpop.permute.xlu1 %1106 }
 0x110   : > { %5287 = vpow2.f32 %v4846_v37  ;;  %10101 = vst [vmem:[#allocation9_spill] sm:$0xff] %v5923_v24 }
 0x112   : > { %v5272_v39 = vpop.eup %5271 }
 0x113   : > { %v5274_v42 = vpop.eup %5273  ;;  %v916_v43 = vadd.f32 1.0, %v5272_v39  ;;  %v5889_v44 = vpop.f32.mrb[8].mxu0 }
 0x114   : > { %v5891_v45 = vpop.f32.mrb[8].mxu1  ;;  %v5276_v46 = vpop.eup %5275  ;;  %v918_v47 = vadd.f32 1.0, %v5274_v42 }
 0x115   : > { %v5893_v48 = vpop.f32.mrb[9].mxu0  ;;  %v5895_v49 = vpop.f32.mrb[9].mxu1  ;;  %5289 = vrcp.f32 %v916_v43  ;;  %v917_v51 = vadd.f32 1.0, %v5276_v46 }
 0x116   : > { %v5278_v50 = vpop.eup %5277  ;;  %v704_v54 = vpop.f32.mrb[10].mxu0  ;;  %5291 = vrcp.f32 %v918_v47  ;;  %v4850_v47 = vmul.f32 -1.442695, %v5918_v18 }
 0x117   : > { %v785_v55 = vpop.f32.mrb[10].mxu1  ;;  %v919_v56 = vadd.f32 1.0, %v5278_v50  ;;  %v706_v60 = vpop.f32.mrb[11].mxu0  ;;  %5293 = vrcp.f32 %v917_v51  ;;  %v5905_v8 = vadd.f32 %v704_v54, %v5827_v63 }
 0x118   : > { %v5280_v3 = vpop.eup %5279  ;;  %v787_v7 = vpop.f32.mrb[11].mxu1  ;;  %v5908_v11 = vadd.f32 %v785_v55, %v5830_v0  ;;  %5295 = vpow2.f32 %v4848_v52  ;;  %v5912_v14 = vadd.f32 %v706_v60, %v5833_v1  ;;  %v5940_v55 = vadd.f32 %v5873_v32, %v5830_v0 }
 0x119   : > { %v5282_v12 = vpop.eup %5281  ;;  %v5915_v16 = vadd.f32 %v787_v7, %v5836_v2  ;;  %5297 = vrcp.f32 %v919_v56  ;;  %v922_v17 = vadd.f32 1.0, %v5280_v3  ;;  %v5944_v56 = vadd.f32 %v5876_v34, %v5833_v1 }
 0x11a   : > { %v5284_v27 = vpop.eup %5283  ;;  %v920_v29 = vadd.f32 1.0, %v5282_v12  ;;  %5299 = vpow2.f32 %v4847_v13  ;;  %v5948_v60 = vadd.f32 %v5878_v35, %v5836_v2 }
 0x11b   : > { %v710_v26 = vpop.f32.mrb[12].mxu0  ;;  %v791_v33 = vpop.f32.mrb[12].mxu1  ;;  %5301 = vrcp.f32 %v922_v17  ;;  %v921_v13 = vadd.f32 1.0, %v5284_v27 }
 0x11c   : > { %v5926_v30 = vadd.f32 %v710_v26, %v5827_v63  ;;  %v712_v36 = vpop.f32.mrb[13].mxu0  ;;  %v5286_v37 = vpop.eup %5285  ;;  %v5929_v39 = vadd.f32 %v791_v33, %v5830_v0  ;;  %5303 = vpow2.f32 %v4849_v21 }
 0x11d   : > { %v5932_v31 = vadd.f32 %v712_v36, %v5833_v1  ;;  %v793_v42 = vpop.f32.mrb[13].mxu1  ;;  %v714_v43 = vpop.f32.mrb[14].mxu0  ;;  %5305 = vrcp.f32 %v920_v29  ;;  %v923_v26 = vadd.f32 1.0, %v5286_v37  ;;  %v4852_v37 = vmul.f32 -1.442695, %v5940_v55 }
 0x11e   : > { %v5288_v46 = vpop.eup %5287  ;;  %v5936_v50 = vadd.f32 %v793_v42, %v5836_v2  ;;  %v795_v51 = vpop.f32.mrb[14].mxu1  ;;  %v5952_v17 = vadd.f32 %v714_v43, %v5827_v63  ;;  %5307 = vpow2.f32 %v4850_v47 }
 0x11f   : > { %v716_v52 = vpop.f32.mrb[15].mxu0  ;;  %v5290_v54 = vpop.eup %5289  ;;  %v5956_v34 = vadd.f32 %v795_v51, %v5830_v0  ;;  %v924_v36 = vadd.f32 1.0, %v5288_v46  ;;  %5309 = vrcp.f32 %v921_v13  ;;  %v4851_v46 = vmul.f32 -1.442695, %v5944_v56 }
 0x120   : > { %v797_v3 = vpop.f32.mrb[15].mxu1  ;;  %v5292_v7 = vpop.eup %5291  ;;  %v1024_v12 = vmul.f32 %v5290_v54, %v5839_v5  ;;  %v5959_v35 = vadd.f32 %v716_v52, %v5833_v1  ;;  %v5963_v5 = vadd.f32 %v5889_v44, %v5827_v63  ;;  %v5976_v44 = vadd.f32 %v5891_v45, %v5830_v0 }
 0x121   : > { %v5294_v21 = vpop.eup %5293  ;;  %v1026_v32 = vmul.f32 %v5292_v7, %v5842_v6  ;;  %v1072_v33 = vpop.permute.xlu1 %1071  ;;  %5311 = vrcp.f32 %v923_v26  ;;  %v5986_v13 = vadd.f32 %v797_v3, %v5836_v2  ;;  %v5993_v26 = vadd.f32 %v5895_v49, %v5836_v2 }
 0x122   : > { %10102 = vst [vmem:[#allocation10_spill] sm:$0xff] %v5959_v35  ;;  %v5965_v27 = vmul.f32 %v1072_v33, %v1024_v12  ;;  %v5967_v29 = vpop.permute.xlu0 %1101  ;;  %v5296_v42 = vpop.eup %5295  ;;  %v1025_v6 = vmul.f32 %v5294_v21, %v5845_v9  ;;  %v4853_v9 = vmul.f32 -1.442695, %v5948_v60  ;;  %v5983_v12 = vadd.f32 %v5893_v48, %v5833_v1 }
 0x123   : > { %10103 = vst [vmem:[#allocation11_spill] sm:$0xff] %v5967_v29  ;;  %v5971_v43 = vmul.f32 %v1072_v33, %v1026_v32  ;;  %v720_v51 = vpop.f32.mrb[16].mxu0  ;;  %v801_v52 = vpop.f32.mrb[16].mxu1  ;;  %10105 = vst [vmem:[#allocation13_spill] sm:$0xff] %v5986_v13  ;;  %5313 = vrcp.f32 %v924_v36  ;;  %v4854_v32 = vmul.f32 -1.442695, %v5963_v5 }
 0x124   : > { %v5298_v54 = vpop.eup %5297  ;;  %v803_v47 = vpop.f32.mrb[17].mxu1  ;;  %1186 = vrot.lane.b32.xlu1 %v5965_v27, %s5581_s17  ;;  %v5996_v57 = vadd.f32 %v720_v51, %v5827_v63  ;;  %v926_v40 = vadd.f32 1.0, %v5296_v42  ;;  %5315 = vpow2.f32 %v4852_v37  ;;  %v5999_v23 = vmul.f32 %v1072_v33, %v1025_v6 }
 0x125   : > { %10104 = vst [vmem:[#allocation12_spill] sm:$0xff] %v5971_v43  ;;  %v722_v7 = vpop.f32.mrb[17].mxu0  ;;  %1335 = vrot.lane.b32.xlu0 %v5971_v43, %s5582_s18  ;;  %v805_v45 = vpop.f32.mrb[18].mxu1  ;;  %v1027_v29 = vmul.f32 %v5298_v54, %v5848_v10  ;;  %5317 = vpow2.f32 %v4851_v46  ;;  %v4856_v36 = vmul.f32 -1.442695, %v5976_v44  ;;  %v6014_v6 = vadd.f32 %v803_v47, %v5836_v2 }
 0x126   : > { %v724_v21 = vpop.f32.mrb[18].mxu0  ;;  %v806_v48 = vpop.f32.mrb[19].mxu1  ;;  %10106 = vst [vmem:[#allocation14_spill] sm:$0xff] %v5999_v23  ;;  %5319 = vpow2.f32 %v4853_v9  ;;  %v4855_v49 = vmul.f32 -1.442695, %v5983_v12  ;;  %v6023_v9 = vadd.f32 %v722_v7, %v5833_v1 }
 0x127   : > { %v725_v24 = vpop.f32.mrb[19].mxu0  ;;  %v5300_v3 = vpop.eup %5299  ;;  %5321 = vpow2.f32 %v4854_v32  ;;  %v4857_v42 = vmul.f32 -1.442695, %v5993_v26  ;;  %10108 = vst [vmem:[#allocation16_spill] sm:$0xff] %v6014_v6  ;;  %v6017_v51 = vmul.f32 %v1072_v33, %v1027_v29  ;;  %v4858_v54 = vmul.f32 -1.442695, %v5905_v8 }
 0x128   : > { %v5302_v45 = vpop.eup %5301  ;;  %v6002_v21 = vpop.permute.xlu0 %1111  ;;  %1190 = vrot.lane.b32.xlu1 %v5971_v43, %s5581_s17  ;;  %v6008_v24 = vadd.f32 %v801_v52, %v5830_v0  ;;  %5323 = vrcp.f32 %v926_v40  ;;  %v925_v0 = vadd.f32 1.0, %v5300_v3  ;;  %v4860_v40 = vmul.f32 -1.442695, %v5908_v11 }
 0x129   : > { %10107 = vst [vmem:[#allocation15_spill] sm:$0xff] %v6002_v21  ;;  %v5304_v63 = vpop.eup %5303  ;;  %1188 = vrot.lane.b32.xlu0 %v5999_v23, %s5581_s17  ;;  %v1030_v37 = vmul.f32 %v5302_v45, %v5853_v15  ;;  %10109 = vst [vmem:[#allocation17_spill] sm:$0xff] %v6017_v51  ;;  %5325 = vpow2.f32 %v4856_v36  ;;  %v4859_v1 = vmul.f32 -1.442695, %v5912_v14  ;;  %v4862_v45 = vmul.f32 -1.442695, %v5926_v30 }
 0x12a   : > { %v5306_v10 = vpop.eup %5305  ;;  %v927_v52 = vadd.f32 1.0, %v5304_v63  ;;  %5327 = vpow2.f32 %v4855_v49 }
 0x12b   : > { %v5308_v46 = vpop.eup %5307  ;;  %v1028_v15 = vmul.f32 %v5306_v10, %v5858_v20  ;;  %5329 = vpow2.f32 %v4857_v42  ;;  %v4861_v20 = vmul.f32 -1.442695, %v5915_v16  ;;  %v4864_v10 = vmul.f32 -1.442695, %v5929_v39 }
 0x12c   : > { %1331 = vrot.lane.b32.xlu1 %v5965_v27, %s5582_s18  ;;  %v5310_v2 = vpop.eup %5309  ;;  %v1077_v33 = vpop.permute.xlu0 %1076  ;;  %v928_v47 = vadd.f32 1.0, %v5308_v46  ;;  %5331 = vpow2.f32 %v4858_v54 }
 0x12d   : > { %1192 = vrot.lane.b32.xlu0 %v6017_v51, %s5581_s17  ;;  %v5312_v29 = vpop.eup %5311  ;;  %v6029_v32 = vmul.f32 %v1077_v33, %v1030_v37  ;;  %5333 = vrcp.f32 %v925_v0  ;;  %v6038_v36 = vmul.f32 %v1077_v33, %v1028_v15  ;;  %v1029_v49 = vmul.f32 %v5310_v2, %v5862_v22  ;;  %v4877_v22 = vld [vmem:[%s9811_s4 + $0x4] ss:$8 sm:$0xf] }
 0x12e   : > { %v5314_v48 = vpop.eup %5313  ;;  %5335 = vrcp.f32 %v927_v52  ;;  %v1031_v15 = vmul.f32 %v5312_v29, %v5868_v25  ;;  %v6073_v43 = vrot.slane %v4877_v22, %v5815_v59 }
 0x12f   : > { %10110 = vst [vmem:[#allocation18_spill] sm:$0xff] %v6029_v32  ;;  %v5316_v7 = vpop.eup %5315  ;;  %5337 = vpow2.f32 %v4860_v40  ;;  %10111 = vst [vmem:[#allocation19_spill] sm:$0xff] %v6038_v36  ;;  %v1032_v29 = vmul.f32 %v5314_v48, %v5871_v28 }
 0x130   : > { %1333 = vrot.lane.b32.xlu1 %v5999_v23, %s5582_s18  ;;  %v5318_v3 = vpop.eup %5317  ;;  %5339 = vrcp.f32 %v928_v47  ;;  %v930_v37 = vadd.f32 1.0, %v5316_v7  ;;  %v6050_v47 = vmul.f32 %v1077_v33, %v1029_v49  ;;  %v6064_v49 = vrot.slane %v4877_v22, %v5821_v61 }
 0x131   : > { %1343 = vrot.lane.b32.xlu0 %v6029_v32, %s5582_s18  ;;  %v5320_v63 = vpop.eup %5319  ;;  %5341 = vpow2.f32 %v4859_v1  ;;  %v929_v46 = vadd.f32 1.0, %v5318_v3  ;;  %v6055_v3 = vrot.slane %v4877_v22, %v5812_v58 }
 0x132   : > { %v5322_v42 = vpop.eup %5321  ;;  %5343 = vpow2.f32 %v4861_v20  ;;  %v931_v52 = vadd.f32 1.0, %v5320_v63  ;;  %10112 = vst [vmem:[#allocation20_spill] sm:$0xff] %v6050_v47 }
 0x133   : > { %v5324_v54 = vpop.eup %5323  ;;  %5345 = vpow2.f32 %v4862_v45  ;;  %v932_v40 = vadd.f32 1.0, %v5322_v42  ;;  %v4880_v45 = vld [vmem:[%s9811_s4 + $0x7] ss:$8 sm:$0xf] }
 0x134   : > { %1194 = vrot.lane.b32.xlu1 %v6038_v36, %s5581_s17  ;;  %v5326_v0 = vpop.eup %5325  ;;  %5347 = vpow2.f32 %v4864_v10  ;;  %v1034_v42 = vmul.f32 %v5324_v54, %v5883_v38  ;;  %v6070_v51 = vrot.slane %v4880_v45, %v5812_v58  ;;  %v6076_v28 = vrot.slane %v4880_v45, %v5815_v59 }
 0x135   : > { %1339 = vrot.lane.b32.xlu0 %v6038_v36, %s5582_s18  ;;  %v5328_v2 = vpop.eup %5327  ;;  %5349 = vrcp.f32 %v930_v37  ;;  %v934_v20 = vadd.f32 1.0, %v5326_v0  ;;  %v6081_v38 = vrot.slane %v4880_v45, %v5821_v61  ;;  %v4865_v54 = vmul.f32 -1.442695, %v5936_v50 }
 0x136   : > { %v5330_v1 = vpop.eup %5329  ;;  %5351 = vrcp.f32 %v929_v46  ;;  %v933_v63 = vadd.f32 1.0, %v5328_v2  ;;  %v6067_v46 = vmul.f32 %v1077_v33, %v1031_v15  ;;  %v4863_v33 = vmul.f32 -1.442695, %v5932_v31 }
 0x137   : > { %v5332_v7 = vpop.eup %5331  ;;  %5353 = vrcp.f32 %v931_v52  ;;  %v935_v37 = vadd.f32 1.0, %v5330_v1  ;;  %v6089_v15 = vmul.f32 %v5887_v41, %v1032_v29  ;;  %v6098_v59 = vmul.f32 %v6064_v49, %v6050_v47 }
 0x138   : > { %1198 = vrot.lane.b32.xlu1 %v6029_v32, %s5581_s17  ;;  %v5334_v25 = vpop.eup %5333  ;;  %5355 = vrcp.f32 %v932_v40  ;;  %10113 = vst [vmem:[#allocation21_spill] sm:$0xff] %v6067_v46  ;;  %v936_v32 = vadd.f32 1.0, %v5332_v7  ;;  %v1692_v40 = vmul.f32 %v6064_v49, %v5999_v23  ;;  %v6094_v7 = vmul.f32 %v5887_v41, %v1034_v42 }
 0x139   : > { %1196 = vrot.lane.b32.xlu0 %v6050_v47, %s5581_s17  ;;  %v5336_v10 = vpop.eup %5335  ;;  %5357 = vrcp.f32 %v934_v20  ;;  %v1033_v2 = vmul.f32 %v5334_v25, %v5899_v53  ;;  %10114 = vst [vmem:[#allocation22_spill] sm:$0xff] %v6089_v15  ;;  %v6101_v53 = vrot.slane %v4877_v22, %v5824_v62  ;;  %v6104_v25 = vrot.slane %v4880_v45, %v5824_v62 }
 0x13a   : > { %v5338_v0 = vpop.eup %5337  ;;  %5359 = vrcp.f32 %v933_v63  ;;  %10115 = vst [vmem:[#allocation23_spill] sm:$0xff] %v6094_v7  ;;  %v4866_v29 = vmul.f32 -1.442695, %v5952_v17  ;;  %v4868_v42 = vmul.f32 -1.442695, %v5956_v34  ;;  %v1718_v45 = vrot.slane %v1692_v40, 1 }
 0x13b   : > { %v5340_v48 = vpop.eup %5339  ;;  %5361 = vrcp.f32 %v935_v37  ;;  %v938_v20 = vadd.f32 1.0, %v5338_v0  ;;  %v4867_v37 = vmul.f32 -1.442695, %v5959_v35  ;;  %v6114_v22 = vmul.f32 -1.442695, %v5986_v13 }
 0x13c   : > { %1341 = vrot.lane.b32.xlu1 %v6050_v47, %s5582_s18  ;;  %v5342_v52 = vpop.eup %5341  ;;  %5363 = vrcp.f32 %v936_v32  ;;  %v9844_v0 = vrot.slane %v6098_v59, 1  ;;  %v6119_v61 = vmul.f32 %v5887_v41, %v1033_v2 }
 0x13d   : > { %1200 = vrot.lane.b32.xlu0 %v6067_v46, %s5581_s17  ;;  %v5344_v1 = vpop.eup %5343  ;;  %5365 = vpow2.f32 %v4863_v33  ;;  %v1035_v33 = vmul.f32 %v5336_v10, %v5902_v4  ;;  %v937_v58 = vadd.f32 1.0, %v5342_v52  ;;  %v1036_v4 = vmul.f32 %v5340_v48, %v5918_v18 }
 0x13e   : > { %v5346_v46 = vpop.eup %5345  ;;  %5367 = vpow2.f32 %v4865_v54  ;;  %10116 = vst [vmem:[#allocation24_spill] sm:$0xff] %v6119_v61  ;;  %v939_v35 = vadd.f32 1.0, %v5344_v1  ;;  %v4870_v54 = vmul.f32 -1.442695, %v5996_v57  ;;  %v6127_v40 = vsel %vm1631_vm0, %v1718_v45, %v9844_v0 }
 0x13f   : > { %v5348_v63 = vpop.eup %5347  ;;  %5369 = vrcp.f32 %v938_v20  ;;  %10117 = vst [vmem:[#allocation25_spill] sm:$0xff] %v6127_v40  ;;  %v940_v10 = vadd.f32 1.0, %v5346_v46  ;;  %v4872_v52 = vmul.f32 -1.442695, %v6008_v24  ;;  %v6135_v20 = vmul.f32 -1.442695, %v6014_v6 }
 0x140   : > { %1202 = vrot.lane.b32.xlu1 %v6089_v15, %s5581_s17  ;;  %v5350_v32 = vpop.eup %5349  ;;  %5371 = vpow2.f32 %v4866_v29  ;;  %v942_v1 = vadd.f32 1.0, %v5348_v63  ;;  %v6138_v45 = vmul.f32 %v5887_v41, %v1035_v33  ;;  %v1942_v46 = vmul.f32 %v6081_v38, %v5999_v23  ;;  %v10142_v6 = vld [vmem:[#allocation10_spill] sm:$0xff] }
 0x141   : > { %1351 = vrot.lane.b32.xlu0 %v6094_v7, %s5582_s18  ;;  %v5352_v62 = vpop.eup %5351  ;;  %5373 = vpow2.f32 %v4868_v42  ;;  %v1038_v2 = vmul.f32 %v5350_v32, %v5940_v55  ;;  %v6149_v63 = vmul.f32 %v6055_v3, %v6038_v36 }
 0x142   : > { %v5354_v21 = vpop.eup %5353  ;;  %5375 = vpow2.f32 %v4867_v37  ;;  %10118 = vst [vmem:[#allocation26_spill] sm:$0xff] %v6138_v45  ;;  %v1037_v18 = vmul.f32 %v5352_v62, %v5944_v56  ;;  %v6152_v62 = vmul.f32 %v5920_v19, %v1036_v4  ;;  %v6162_v56 = vmul.f32 %v6081_v38, %v6050_v47 }
 0x143   : > { %v5356_v13 = vpop.eup %5355  ;;  %5377 = vrcp.f32 %v937_v58  ;;  %v1039_v42 = vmul.f32 %v5354_v21, %v5948_v60  ;;  %v6158_v58 = vmul.f32 %v6070_v51, %v6038_v36  ;;  %v1968_v33 = vrot.slane %v1942_v46, 2 }
 0x144   : > { %1206 = vrot.lane.b32.xlu1 %v6094_v7, %s5581_s17  ;;  %v5358_v29 = vpop.eup %5357  ;;  %v1040_v55 = vmul.f32 %v5356_v13, %v5963_v5  ;;  %5379 = vrcp.f32 %v939_v35  ;;  %10119 = vst [vmem:[#allocation27_spill] sm:$0xff] %v6152_v62  ;;  %v6165_v35 = vmul.f32 %v5920_v19, %v1038_v2  ;;  %v6169_v13 = vmul.f32 -1.442695, %v6023_v9  ;;  %v10121_v2 = vld [vmem:[#allocation7_spill] sm:$0xff] }
 0x145   : > { %1204 = vrot.lane.b32.xlu0 %v6119_v61, %s5581_s17  ;;  %v5360_v48 = vpop.eup %5359  ;;  %5381 = vrcp.f32 %v940_v10  ;;  %v1042_v5 = vmul.f32 %v5358_v29, %v5976_v44  ;;  %v6172_v37 = vmul.f32 %v5920_v19, %v1037_v18  ;;  %v1969_v4 = vrot.slane %v6162_v56, 2 }
 0x146   : > { %v5362_v41 = vpop.eup %5361  ;;  %5383 = vrcp.f32 %v942_v1  ;;  %v1041_v32 = vmul.f32 %v5360_v48, %v5983_v12  ;;  %v6177_v0 = vmul.f32 %v5920_v19, %v1039_v42  ;;  %v6180_v40 = vmul.f32 %v10121_v2, %v1040_v55 }
 0x147   : > { %v5364_v60 = vpop.eup %5363  ;;  %10120 = vst [vmem:[#allocation28_spill] sm:$0xff] %v6172_v37  ;;  %v1716_v44 = vrot.slane %v6149_v63, 1  ;;  %v1691_v1 = vmul.f32 %v6055_v3, %v5965_v27  ;;  %5385 = vpow2.f32 %v4870_v54  ;;  %v1966_v12 = vrot.slane %v6158_v58, 2 }
 0x148   : > { %1347 = vrot.lane.b32.xlu1 %v6089_v15, %s5582_s18  ;;  %v5366_v21 = vpop.eup %5365  ;;  %10122 = vst [vmem:[#allocation7_spill] sm:$0xff] %v6180_v40  ;;  %v6191_v19 = vsel %vm1881_vm1, %v1968_v33, %v1969_v4  ;;  %v1941_v18 = vmul.f32 %v6070_v51, %v5965_v27  ;;  %v6196_v48 = vmul.f32 %v10121_v2, %v1042_v5  ;;  %5387 = vpow2.f32 %v4872_v52 }
 0x149   : > { %1208 = vrot.lane.b32.xlu0 %v6138_v45, %s5581_s17  ;;  %v5368_v10 = vpop.eup %5367  ;;  %10123 = vst [vmem:[#allocation29_spill] sm:$0xff] %v6191_v19  ;;  %v941_v42 = vadd.f32 1.0, %v5366_v21  ;;  %v1715_v55 = vrot.slane %v1691_v1, 1  ;;  %v6199_v54 = vmul.f32 %v10121_v2, %v1041_v32  ;;  %v1043_v56 = vmul.f32 %v5362_v41, %v5993_v26 }
 0x14a   : > { %v5370_v29 = vpop.eup %5369  ;;  %10124 = vst [vmem:[#allocation30_spill] sm:$0xff] %v6196_v48  ;;  %v943_v58 = vadd.f32 1.0, %v5368_v10  ;;  %v1965_v47 = vrot.slane %v1941_v18, 2  ;;  %v1044_v19 = vmul.f32 %v5364_v60, %v5905_v8  ;;  %5389 = vpow2.f32 %v6114_v22 }
 0x14b   : > { %v5372_v46 = vpop.eup %5371  ;;  %v1046_v36 = vmul.f32 %v5370_v29, %v5908_v11  ;;  %v6208_v52 = vsel %vm1631_vm0, %v1715_v55, %v1716_v44  ;;  %v1699_v8 = vmul.f32 %v6055_v3, %v6089_v15  ;;  %v1700_v11 = vmul.f32 %v6064_v49, %v6119_v61 }
 0x14c   : > { %1349 = vrot.lane.b32.xlu1 %v6119_v61, %s5582_s18  ;;  %v5374_v63 = vpop.eup %5373  ;;  %10125 = vst [vmem:[#allocation31_spill] sm:$0xff] %v6208_v52  ;;  %v944_v21 = vadd.f32 1.0, %v5372_v46  ;;  %v6213_v26 = vsel %vm1881_vm1, %v1965_v47, %v1966_v12  ;;  %5391 = vrcp.f32 %v941_v42  ;;  %v1949_v60 = vmul.f32 %v6070_v51, %v6089_v15 }
 0x14d   : > { %1353 = vrot.lane.b32.xlu0 %v6138_v45, %s5582_s18  ;;  %v5376_v33 = vpop.eup %5375  ;;  %10126 = vst [vmem:[#allocation32_spill] sm:$0xff] %v6213_v26  ;;  %v946_v41 = vadd.f32 1.0, %v5374_v63  ;;  %v1950_v32 = vmul.f32 %v6081_v38, %v6119_v61  ;;  %5393 = vrcp.f32 %v943_v58  ;;  %v1727_v47 = vrot.slane %v1699_v8, 1 }
 0x14e   : > { %v5378_v5 = vpop.eup %5377  ;;  %v945_v1 = vadd.f32 1.0, %v5376_v33  ;;  %v1729_v29 = vrot.slane %v1700_v11, 1  ;;  %v1977_v55 = vrot.slane %v1949_v60, 2  ;;  %v6228_v63 = vmul.f32 %v6055_v3, %v6152_v62  ;;  %v10132_v60 = vld [vmem:[#allocation8_spill] sm:$0xff] }
 0x14f   : > { %v5380_v22 = vpop.eup %5379  ;;  %v1045_v46 = vmul.f32 %v5378_v5, %v5912_v14  ;;  %v1979_v42 = vrot.slane %v1950_v32, 2  ;;  %5395 = vrcp.f32 %v944_v21  ;;  %v6233_v58 = vsel %vm1631_vm0, %v1716_v44, %v1727_v47 }
 0x150   : > { %1210 = vrot.lane.b32.xlu1 %v6152_v62, %s5581_s17  ;;  %v5382_v10 = vpop.eup %5381  ;;  %10127 = vst [vmem:[#allocation33_spill] sm:$0xff] %v6233_v58  ;;  %v10128_v33 = vrot.slane %v6098_v59, 1  ;;  %v6242_v5 = vmul.f32 %v6064_v49, %v6172_v37  ;;  %v1047_v8 = vmul.f32 %v5380_v22, %v5915_v16  ;;  %5397 = vrcp.f32 %v946_v41 }
 0x151   : > { %1359 = vrot.lane.b32.xlu0 %v6165_v35, %s5582_s18  ;;  %v5384_v18 = vpop.eup %5383  ;;  %v6246_v21 = vsel %vm1881_vm1, %v1966_v12, %v1977_v55  ;;  %v6249_v11 = vsel %vm1881_vm1, %v1969_v4, %v1979_v42  ;;  %v6252_v32 = vmul.f32 %v10132_v60, %v1044_v19  ;;  %5399 = vrcp.f32 %v945_v1 }
 0x152   : > { %v6238_v14 = vsel %vm1631_vm0, %v10128_v33, %v1729_v29  ;;  %10130 = vst [vmem:[#allocation35_spill] sm:$0xff] %v6246_v21  ;;  %10131 = vst [vmem:[#allocation36_spill] sm:$0xff] %v6249_v11  ;;  %v5386_v44 = vpop.eup %5385  ;;  %v9847_v59 = vrot.slane %v6228_v63, 1  ;;  %v9849_v33 = vrot.slane %v6242_v5, 1  ;;  %v6257_v58 = vmul.f32 %v10132_v60, %v1046_v36 }
 0x153   : > { %10129 = vst [vmem:[#allocation34_spill] sm:$0xff] %v6238_v14  ;;  %v5388_v14 = vpop.eup %5387  ;;  %5401 = vpow2.f32 %v6169_v13  ;;  %v6264_v16 = vmul.f32 %v6070_v51, %v6152_v62  ;;  %v6268_v4 = vmul.f32 %v6081_v38, %v6172_v37  ;;  %v6271_v12 = vmul.f32 %v10121_v2, %v1043_v56 }
 0x154   : > { %1214 = vrot.lane.b32.xlu1 %v6165_v35, %s5581_s17  ;;  %v6274_v19 = vmul.f32 %v10132_v60, %v1045_v46  ;;  %v6281_v36 = vsel %vm1631_vm0, %v1727_v47, %v9847_v59  ;;  %v6286_v13 = vsel %vm1631_vm0, %v1729_v29, %v9849_v33  ;;  %v5390_v22 = vpop.eup %5389  ;;  %v6289_v2 = vmul.f32 %v10132_v60, %v1047_v8 }
 0x155   : > { %1355 = vrot.lane.b32.xlu0 %v6152_v62, %s5582_s18  ;;  %10133 = vst [vmem:[#allocation8_spill] sm:$0xff] %v6281_v36  ;;  %10134 = vst [vmem:[#allocation37_spill] sm:$0xff] %v6286_v13  ;;  %v1048_v56 = vmul.f32 %v5382_v10, %v5926_v30  ;;  %v948_v41 = vadd.f32 1.0, %v5386_v44  ;;  %v9848_v1 = vrot.slane %v6264_v16, 2  ;;  %v1050_v46 = vmul.f32 %v5384_v18, %v5929_v39 }
 0x156   : > { %v950_v11 = vadd.f32 1.0, %v5388_v14  ;;  %5403 = vpow2.f32 %v6135_v20  ;;  %v9850_v47 = vrot.slane %v6268_v4, 2  ;;  %v5392_v59 = vpop.eup %5391  ;;  %v6298_v29 = vmul.f32 %v6055_v3, %v6252_v32 }
 0x157   : > { %v6302_v8 = vmul.f32 %v6070_v51, %v6252_v32  ;;  %v6306_v30 = vmul.f32 %v6073_v43, %v6257_v58  ;;  %v6313_v39 = vsel %vm1881_vm1, %v1977_v55, %v9848_v1  ;;  %v5394_v20 = vpop.eup %5393  ;;  %v6317_v10 = vmul.f32 %v6076_v28, %v6257_v58  ;;  %v10137_v1 = vld [vmem:[#allocation11_spill] sm:$0xff] }
 0x158   : > { %1357 = vrot.lane.b32.xlu1 %v6172_v37, %s5582_s18  ;;  %10135 = vst [vmem:[#allocation38_spill] sm:$0xff] %v6313_v39  ;;  %v6321_v18 = vmul.f32 %v6064_v49, %v6274_v19  ;;  %v6325_v14 = vmul.f32 %v6081_v38, %v6274_v19  ;;  %v6332_v55 = vsel %vm1881_vm1, %v1979_v42, %v9850_v47  ;;  %5405 = vrcp.f32 %v948_v41 }
 0x159   : > { %1212 = vrot.lane.b32.xlu0 %v6172_v37, %s5581_s17  ;;  %10136 = vst [vmem:[#allocation39_spill] sm:$0xff] %v6332_v55  ;;  %v6336_v44 = vmul.f32 %v6101_v53, %v6289_v2  ;;  %v6340_v60 = vmul.f32 %v6104_v25, %v6289_v2  ;;  %v6343_v33 = vmul.f32 %v10137_v1, %v1048_v56  ;;  %v5396_v39 = vpop.eup %5395  ;;  %v6351_v42 = vadd.f32 1.0, %v5390_v22 }
 0x15a   : > { %v6346_v13 = vmul.f32 %v10137_v1, %v1050_v46  ;;  %v6349_v36 = vmul.f32 %v5392_v59, %v5932_v31  ;;  %5407 = vrcp.f32 %v950_v11  ;;  %v5398_v47 = vpop.eup %5397  ;;  %v1051_v55 = vmul.f32 %v5394_v20, %v5936_v50 }
 0x15b   : > { %v6358_v56 = vmul.f32 %v6073_v43, %v6094_v7  ;;  %v6362_v41 = vmul.f32 %v6101_v53, %v6138_v45  ;;  %v6366_v31 = vmul.f32 %v6076_v28, %v6094_v7  ;;  %v5400_v59 = vpop.eup %5399  ;;  %v6372_v50 = vmul.f32 %v6104_v25, %v6138_v45 }
 0x15c   : > { %1361 = vrot.lane.b32.xlu1 %v6177_v0, %s5582_s18  ;;  %v2202_v11 = vmul.f32 %v6073_v43, %v6165_v35  ;;  %v2203_v22 = vmul.f32 %v6101_v53, %v6177_v0  ;;  %v2370_v46 = vmul.f32 %v6076_v28, %v6165_v35  ;;  %v1052_v21 = vmul.f32 %v5396_v39, %v5952_v17 }
 0x15d   : > { %1216 = vrot.lane.b32.xlu0 %v6177_v0, %s5581_s17  ;;  %10138 = vst [vmem:[#allocation11_spill] sm:$0xff] %v6358_v56  ;;  %10139 = vst [vmem:[#allocation40_spill] sm:$0xff] %v6362_v41  ;;  %v5402_v20 = vpop.eup %5401  ;;  %v2371_v37 = vmul.f32 %v6104_v25, %v6177_v0  ;;  %v9859_v62 = vrot.slane %v6366_v31, 2  ;;  %v1054_v15 = vmul.f32 %v5398_v47, %v5956_v34  ;;  %v9860_v17 = vrot.slane %v6372_v50, 2 }
 0x15e   : > { %10140 = vst [vmem:[#allocation41_spill] sm:$0xff] %v6366_v31  ;;  %10141 = vst [vmem:[#allocation42_spill] sm:$0xff] %v6372_v50  ;;  %v2220_v45 = vrot.slane %v2202_v11, 1  ;;  %v2222_v7 = vrot.slane %v2203_v22, 1  ;;  %v2388_v61 = vrot.slane %v2370_v46, 2  ;;  %v1053_v23 = vmul.f32 %v5400_v59, %v10142_v6 }
 0x15f   : > { %v2390_v39 = vrot.slane %v2371_v37, 2  ;;  %v949_v52 = vadd.f32 1.0, %v5402_v20  ;;  %v10143_v11 = vrot.slane %v6358_v56, 1  ;;  %v10145_v34 = vrot.slane %v6362_v41, 1 }
 0x160   : > { %1218 = vrot.lane.b32.xlu1 %v6180_v40, %s5581_s17  ;;  %v6391_v26 = vpop.eup %5403  ;;  %v6408_v37 = vsel %vm1881_vm1, %v9859_v62, %v2388_v61  ;;  %v2206_v59 = vmul.f32 %v6073_v43, %v6196_v48  ;;  %v2207_v46 = vmul.f32 %v6101_v53, %v6271_v12  ;;  %v2374_v20 = vmul.f32 %v6076_v28, %v6196_v48 }
 0x161   : > { %1367 = vrot.lane.b32.xlu0 %v6196_v48, %s5582_s18  ;;  %v6398_v22 = vsel %vm1631_vm0, %v10143_v11, %v2220_v45  ;;  %v6403_v6 = vsel %vm1631_vm0, %v10145_v34, %v2222_v7  ;;  %10147 = vst [vmem:[#allocation44_spill] sm:$0xff] %v6408_v37  ;;  %v6413_v47 = vsel %vm1881_vm1, %v9860_v17, %v2390_v39  ;;  %5409 = vrcp.f32 %v949_v52 }
 0x162   : > { %10144 = vst [vmem:[#allocation10_spill] sm:$0xff] %v6398_v22  ;;  %10146 = vst [vmem:[#allocation43_spill] sm:$0xff] %v6403_v6  ;;  %v2375_v11 = vmul.f32 %v6104_v25, %v6271_v12  ;;  %v2204_v34 = vmul.f32 %v6055_v3, %v6180_v40  ;;  %v2205_v62 = vmul.f32 %v6064_v49, %v6199_v54  ;;  %v6433_v37 = vrot.slane %v2206_v59, 1 }
 0x163   : > { %10148 = vst [vmem:[#allocation45_spill] sm:$0xff] %v6413_v47  ;;  %v2372_v17 = vmul.f32 %v6070_v51, %v6180_v40  ;;  %v6429_v47 = vpop.eup %5405  ;;  %v6435_v6 = vrot.slane %v2207_v46, 1  ;;  %v6437_v22 = vrot.slane %v2374_v20, 2  ;;  %v2373_v50 = vmul.f32 %v6081_v38, %v6199_v54 }
 0x164   : > { %1222 = vrot.lane.b32.xlu1 %v6196_v48, %s5581_s17  ;;  %10149 = vst [vmem:[#allocation46_spill] sm:$0xff] %v6433_v37  ;;  %v5408_v31 = vpop.eup %5407  ;;  %v6443_v41 = vrot.slane %v2375_v11, 2  ;;  %v6445_v56 = vrot.slane %v2204_v34, 1  ;;  %v6447_v48 = vrot.slane %v2205_v62, 1  ;;  %v6453_v59 = vsel %vm1631_vm0, %v2220_v45, %v6433_v37  ;;  %v10166_v34 = vld [vmem:[#allocation9_spill] sm:$0xff] }
 0x165   : > { %1220 = vrot.lane.b32.xlu0 %v6199_v54, %s5581_s17  ;;  %10150 = vst [vmem:[#allocation47_spill] sm:$0xff] %v6435_v6  ;;  %10151 = vst [vmem:[#allocation48_spill] sm:$0xff] %v6437_v22  ;;  %v6457_v46 = vsel %vm1631_vm0, %v2222_v7, %v6435_v6  ;;  %v6461_v20 = vsel %vm1881_vm1, %v2388_v61, %v6437_v22  ;;  %v10160_v62 = vrot.slane %v6228_v63, 1  ;;  %v10162_v45 = vrot.slane %v6242_v5, 1 }
 0x166   : > { %10152 = vst [vmem:[#allocation49_spill] sm:$0xff] %v6443_v41  ;;  %10153 = vst [vmem:[#allocation50_spill] sm:$0xff] %v6445_v56  ;;  %v6465_v11 = vsel %vm1881_vm1, %v2390_v39, %v6443_v41  ;;  %v10164_v61 = vrot.slane %v6264_v16, 2  ;;  %v6487_v39 = vmul.f32 %v10137_v1, %v6349_v36  ;;  %v6490_v63 = vmul.f32 %v10137_v1, %v1051_v55 }
 0x167   : > { %10154 = vst [vmem:[#allocation51_spill] sm:$0xff] %v6447_v48  ;;  %10156 = vst [vmem:[#allocation53_spill] sm:$0xff] %v6453_v59  ;;  %v6471_v52 = vsel %vm1631_vm0, %v10160_v62, %v6445_v56  ;;  %v6477_v7 = vsel %vm1631_vm0, %v10162_v45, %v6447_v48  ;;  %v6493_v62 = vmul.f32 %v10166_v34, %v1052_v21  ;;  %v6497_v5 = vrot.slane %v2373_v50, 2 }
 0x168   : > { %1363 = vrot.lane.b32.xlu1 %v6180_v40, %s5582_s18  ;;  %v6449_v40 = vrot.slane %v2372_v17, 2  ;;  %10157 = vst [vmem:[#allocation54_spill] sm:$0xff] %v6457_v46  ;;  %10158 = vst [vmem:[#allocation55_spill] sm:$0xff] %v6461_v20  ;;  %v6500_v16 = vmul.f32 %v10166_v34, %v1054_v15  ;;  %v6503_v45 = vmul.f32 %v10166_v34, %v1053_v23  ;;  %v2594_v36 = vrot.slane %v6321_v18, 1  ;;  %v10243_v46 = vld [vmem:[#allocation16_spill] sm:$0xff] }
 0x169   : > { %1224 = vrot.lane.b32.xlu0 %v6271_v12, %s5581_s17  ;;  %10159 = vst [vmem:[#allocation56_spill] sm:$0xff] %v6465_v11  ;;  %10161 = vst [vmem:[#allocation57_spill] sm:$0xff] %v6471_v52  ;;  %v2762_v1 = vrot.slane %v6325_v14, 2  ;;  %v10168_v21 = vrot.slane %v6268_v4, 2  ;;  %v2592_v50 = vrot.slane %v6298_v29, 1  ;;  %v2760_v15 = vrot.slane %v6302_v8, 2 }
 0x16a   : > { %10155 = vst [vmem:[#allocation52_spill] sm:$0xff] %v6449_v40  ;;  %10163 = vst [vmem:[#allocation58_spill] sm:$0xff] %v6477_v7  ;;  %v6483_v17 = vsel %vm1881_vm1, %v10164_v61, %v6449_v40  ;;  %v2596_v23 = vrot.slane %v6306_v30, 1  ;;  %v6520_v61 = vsel %vm1631_vm0, %v6447_v48, %v2594_v36  ;;  %v2598_v14 = vrot.slane %v6336_v44, 1 }
 0x16b   : > { %10165 = vst [vmem:[#allocation59_spill] sm:$0xff] %v6483_v17  ;;  %10167 = vst [vmem:[#allocation9_spill] sm:$0xff] %v6497_v5  ;;  %v6513_v55 = vsel %vm1881_vm1, %v10168_v21, %v6497_v5  ;;  %v6524_v18 = vsel %vm1881_vm1, %v6497_v5, %v2762_v1  ;;  %v2764_v4 = vrot.slane %v6317_v10, 2  ;;  %v6532_v29 = vsel %vm1631_vm0, %v6445_v56, %v2592_v50 }
 0x16c   : > { %1365 = vrot.lane.b32.xlu1 %v6199_v54, %s5582_s18  ;;  %10169 = vst [vmem:[#allocation60_spill] sm:$0xff] %v6513_v55  ;;  %10170 = vst [vmem:[#allocation61_spill] sm:$0xff] %v6520_v61  ;;  %v6536_v8 = vsel %vm1881_vm1, %v6449_v40, %v2760_v15  ;;  %v6540_v30 = vsel %vm1631_vm0, %v6433_v37, %v2596_v23  ;;  %v2766_v21 = vrot.slane %v6340_v60, 2  ;;  %5411 = vrcp.f32 %v6351_v42 }
 0x16d   : > { %1369 = vrot.lane.b32.xlu0 %v6271_v12, %s5582_s18  ;;  %10171 = vst [vmem:[#allocation62_spill] sm:$0xff] %v6524_v18  ;;  %10172 = vst [vmem:[#allocation63_spill] sm:$0xff] %v6532_v29  ;;  %v6545_v10 = vmul.f32 %v6055_v3, %v6493_v62  ;;  %v6549_v44 = vmul.f32 %v6073_v43, %v6500_v16  ;;  %v6559_v18 = vsel %vm1881_vm1, %v6437_v22, %v2764_v4 }
 0x16e   : > { %10173 = vst [vmem:[#allocation64_spill] sm:$0xff] %v6536_v8  ;;  %10174 = vst [vmem:[#allocation65_spill] sm:$0xff] %v6540_v30  ;;  %v6555_v8 = vsel %vm1631_vm0, %v6435_v6, %v2598_v14  ;;  %v1058_v60 = vmul.f32 %v5408_v31, %v6008_v24  ;;  %v6564_v30 = vsel %vm1881_vm1, %v6443_v41, %v2766_v21 }
 0x16f   : > { %10175 = vst [vmem:[#allocation66_spill] sm:$0xff] %v6555_v8  ;;  %10176 = vst [vmem:[#allocation67_spill] sm:$0xff] %v6559_v18  ;;  %v2580_v29 = vmul.f32 %v6055_v3, %v6343_v33  ;;  %v6570_v61 = vmul.f32 %v6070_v51, %v6343_v33  ;;  %v6574_v8 = vmul.f32 %v6064_v49, %v6503_v45 }
 0x170   : > { %1226 = vrot.lane.b32.xlu1 %v6252_v32, %s5581_s17  ;;  %10177 = vst [vmem:[#allocation68_spill] sm:$0xff] %v6564_v30  ;;  %v2583_v18 = vmul.f32 %v6101_v53, %v6490_v63  ;;  %v6580_v24 = vmul.f32 %v6104_v25, %v6490_v63  ;;  %v2581_v31 = vmul.f32 %v6064_v49, %v6487_v39  ;;  %v5410_v30 = vpop.eup %5409 }
 0x171   : > { %1228 = vrot.lane.b32.xlu0 %v6274_v19, %s5581_s17  ;;  %10178 = vst [vmem:[#allocation69_spill] sm:$0xff] %v6570_v61  ;;  %v6586_v5 = vrot.slane %v2580_v29, 1  ;;  %v2582_v55 = vmul.f32 %v6073_v43, %v6346_v13  ;;  %v6593_v17 = vmul.f32 %v6081_v38, %v6487_v39  ;;  %v6604_v29 = vmul.f32 %v6076_v28, %v6346_v13 }
 0x172   : > { %10179 = vst [vmem:[#allocation70_spill] sm:$0xff] %v6580_v24  ;;  %v6597_v48 = vrot.slane %v2583_v18, 1  ;;  %v9875_v56 = vrot.slane %v6580_v24, 2  ;;  %v6600_v41 = vrot.slane %v2581_v31, 1  ;;  %v10186_v22 = vrot.slane %v6570_v61, 2  ;;  %v10232_v24 = vld [vmem:[#allocation12_spill] sm:$0xff] }
 0x173   : > { %10180 = vst [vmem:[#allocation71_spill] sm:$0xff] %v6586_v5  ;;  %10181 = vst [vmem:[#allocation72_spill] sm:$0xff] %v6593_v17  ;;  %v6608_v40 = vsel %vm1631_vm0, %v2592_v50, %v6586_v5  ;;  %v6615_v20 = vrot.slane %v2582_v55, 1  ;;  %v9874_v18 = vrot.slane %v6593_v17, 2  ;;  %v1056_v55 = vmul.f32 %v6429_v47, %v5996_v57  ;;  %v10211_v17 = vld [vmem:[#allocation3_spill] sm:$0xff] }
 0x174   : > { %1230 = vrot.lane.b32.xlu1 %v6257_v58, %s5581_s17  ;;  %10182 = vst [vmem:[#allocation73_spill] sm:$0xff] %v6597_v48  ;;  %10183 = vst [vmem:[#allocation74_spill] sm:$0xff] %v6600_v41  ;;  %v6613_v11 = vsel %vm1881_vm1, %v2760_v15, %v10186_v22  ;;  %v6620_v31 = vsel %vm1631_vm0, %v2598_v14, %v6597_v48  ;;  %v6625_v6 = vsel %vm1881_vm1, %v2766_v21, %v9875_v56 }
 0x175   : > { %1232 = vrot.lane.b32.xlu0 %v6289_v2, %s5581_s17  ;;  %10184 = vst [vmem:[#allocation75_spill] sm:$0xff] %v6604_v29  ;;  %10185 = vst [vmem:[#allocation76_spill] sm:$0xff] %v6608_v40  ;;  %v6629_v50 = vsel %vm1631_vm0, %v2594_v36, %v6600_v41  ;;  %v9876_v22 = vrot.slane %v6604_v29, 2  ;;  %v1057_v15 = vmul.f32 %v5410_v30, %v6023_v9  ;;  %v2968_v9 = vrot.slane %v6545_v10, 1  ;;  %v10195_v36 = vld [vmem:[#allocation15_spill] sm:$0xff] }
 0x176   : > { %10187 = vst [vmem:[#allocation77_spill] sm:$0xff] %v6613_v11  ;;  %10188 = vst [vmem:[#allocation78_spill] sm:$0xff] %v6615_v20  ;;  %v6639_v14 = vsel %vm1631_vm0, %v2596_v23, %v6615_v20  ;;  %v6644_v21 = vsel %vm1881_vm1, %v2762_v1, %v9874_v18  ;;  %v2970_v47 = vrot.slane %v6574_v8, 1  ;;  %v6657_v23 = vmul.f32 %v10195_v36, %v1058_v60  ;;  %v10236_v11 = vld [vmem:[#allocation17_spill] sm:$0xff] }
 0x177   : > { %10189 = vst [vmem:[#allocation79_spill] sm:$0xff] %v6620_v31  ;;  %10190 = vst [vmem:[#allocation80_spill] sm:$0xff] %v6625_v6  ;;  %v6651_v57 = vsel %vm1881_vm1, %v2764_v4, %v9876_v22  ;;  %v951_v1 = vadd.f32 1.0, %v6391_v26  ;;  %v2972_v30 = vrot.slane %v6549_v44, 1  ;;  %v6662_v18 = vmul.f32 %v10195_v36, %v1056_v55 }
 0x178   : > { %10191 = vst [vmem:[#allocation81_spill] sm:$0xff] %v6629_v50  ;;  %1375 = vrot.lane.b32.xlu1 %v6257_v58, %s5582_s18  ;;  %10192 = vst [vmem:[#allocation82_spill] sm:$0xff] %v6639_v14  ;;  %v6665_v56 = vmul.f32 %v10195_v36, %v1057_v15  ;;  %v6671_v4 = vsel %vm1631_vm0, %v6586_v5, %v2968_v9  ;;  %v6675_v42 = vsel %vm1631_vm0, %v6600_v41, %v2970_v47  ;;  %v4881_v14 = vld [vmem:[%s9811_s4 + $0x20] ss:$8 sm:$0xf] }
 0x179   : > { %10193 = vst [vmem:[#allocation83_spill] sm:$0xff] %v6644_v21  ;;  %1373 = vrot.lane.b32.xlu0 %v6274_v19, %s5582_s18  ;;  %10194 = vst [vmem:[#allocation84_spill] sm:$0xff] %v6651_v57  ;;  %v6681_v26 = vsel %vm1631_vm0, %v6615_v20, %v2972_v30  ;;  %v6685_v8 = vmul.f32 %v6076_v28, %v6500_v16  ;;  %v6689_v10 = vmul.f32 %v6070_v51, %v6493_v62  ;;  %v1476_v21 = vld [vmem:[%s9811_s4] ss:$8 sm:$0xf] }
 0x17a   : > { %10196 = vst [vmem:[#allocation15_spill] sm:$0xff] %v6671_v4  ;;  %10197 = vst [vmem:[#allocation85_spill] sm:$0xff] %v6675_v42  ;;  %v6693_v44 = vmul.f32 %v6081_v38, %v6503_v45  ;;  %v6697_v60 = vmul.f32 %v6073_v43, %v6657_v23  ;;  %v6701_v55 = vmul.f32 %v6076_v28, %v6657_v23  ;;  %5413 = vrcp.f32 %v951_v1  ;;  %v4874_v1 = vld [vmem:[%s9811_s4 + $0x1] ss:$8 sm:$0xf] }
 0x17b   : > { %10198 = vst [vmem:[#allocation86_spill] sm:$0xff] %v6681_v26  ;;  %10199 = vst [vmem:[#allocation87_spill] sm:$0xff] %v6685_v8  ;;  %v6707_v15 = vmul.f32 %v6055_v3, %v6662_v18  ;;  %v6711_v22 = vmul.f32 %v6064_v49, %v6665_v56  ;;  %v6715_v26 = vmul.f32 %v6070_v51, %v6662_v18  ;;  %v10216_v51 = vrot.slane %v6689_v10, 2 }
 0x17c   : > { %1371 = vrot.lane.b32.xlu1 %v6252_v32, %s5582_s18  ;;  %10200 = vst [vmem:[#allocation88_spill] sm:$0xff] %v6689_v10  ;;  %10201 = vst [vmem:[#allocation89_spill] sm:$0xff] %v6693_v44  ;;  %v9881_v3 = vrot.slane %v6697_v60, 1  ;;  %v9880_v4 = vrot.slane %v6701_v55, 2  ;;  %v6727_v49 = vmul.f32 %v6081_v38, %v6665_v56  ;;  %v10209_v38 = vrot.slane %v6685_v8, 2 }
 0x17d   : > { %1379 = vrot.lane.b32.xlu0 %v6343_v33, %s5582_s18  ;;  %10202 = vst [vmem:[#allocation90_spill] sm:$0xff] %v6697_v60  ;;  %10203 = vst [vmem:[#allocation91_spill] sm:$0xff] %v6701_v55  ;;  %v9883_v57 = vrot.slane %v6707_v15, 1  ;;  %v6753_v29 = vrot.slane %v4874_v1, %v10211_v17 }
 0x17e   : > { %10204 = vst [vmem:[#allocation92_spill] sm:$0xff] %v6707_v15  ;;  %10205 = vst [vmem:[#allocation93_spill] sm:$0xff] %v6711_v22  ;;  %v6737_v42 = vsel %vm1631_vm0, %v2972_v30, %v9881_v3  ;;  %v6744_v20 = vsel %vm1881_vm1, %v10209_v38, %v9880_v4  ;;  %v10213_v38 = vrot.slane %v6711_v22, 1  ;;  %v10215_v3 = vrot.slane %v6715_v26, 2  ;;  %v10223_v15 = vld [vmem:[#allocation6_spill] sm:$0xff] }
 0x17f   : > { %10206 = vst [vmem:[#allocation94_spill] sm:$0xff] %v6715_v26  ;;  %10207 = vst [vmem:[#allocation95_spill] sm:$0xff] %v6727_v49  ;;  %v6758_v30 = vsel %vm1631_vm0, %v2968_v9, %v9883_v57  ;;  %v4876_v9 = vld [vmem:[%s9811_s4 + $0x3] ss:$8 sm:$0xf]  ;;  %v10219_v57 = vrot.slane %v6693_v44, 2  ;;  %v6794_v60 = vrot.slane %v4874_v1, %v10223_v15 }
 0x180   : > { %1377 = vrot.lane.b32.xlu1 %v6289_v2, %s5582_s18  ;;  %10208 = vst [vmem:[#allocation96_spill] sm:$0xff] %v6737_v42  ;;  %10210 = vst [vmem:[#allocation97_spill] sm:$0xff] %v6744_v20  ;;  %v6763_v4 = vsel %vm1631_vm0, %v2970_v47, %v10213_v38  ;;  %v6770_v55 = vsel %vm1881_vm1, %v10216_v51, %v10215_v3  ;;  %v5412_v20 = vpop.eup %5411  ;;  %v4879_v47 = vld [vmem:[%s9811_s4 + $0x6] ss:$8 sm:$0xf]  ;;  %v10218_v38 = vrot.slane %v6727_v49, 2 }
 0x181   : > { %1236 = vrot.lane.b32.xlu0 %v6487_v39, %s5581_s17  ;;  %10212 = vst [vmem:[#allocation98_spill] sm:$0xff] %v6758_v30  ;;  %10214 = vst [vmem:[#allocation99_spill] sm:$0xff] %v6763_v4  ;;  %v10221_v3 = vld [vmem:[#allocation5_spill] sm:$0xff]  ;;  %v6799_v4 = vrot.slane %v1476_v21, %v10211_v17  ;;  %v6802_v49 = vrot.slane %v4876_v9, %v10211_v17  ;;  %v6854_v5 = vmul.f32 %v6794_v60, %v10236_v11 }
 0x182   : > { %10217 = vst [vmem:[#allocation100_spill] sm:$0xff] %v6770_v55  ;;  %v6785_v26 = vsel %vm1881_vm1, %v10219_v57, %v10218_v38  ;;  %v6788_v51 = vrot.slane %v4874_v1, %v10221_v3  ;;  %v10222_v55 = vld [vmem:[#allocation4_spill] sm:$0xff]  ;;  %v6805_v57 = vrot.slane %v4879_v47, %v10211_v17  ;;  %v6809_v38 = vmul.f32 %v6753_v29, %v5965_v27 }
 0x183   : > { %10220 = vst [vmem:[#allocation101_spill] sm:$0xff] %v6785_v26  ;;  %v6791_v22 = vrot.slane %v4874_v1, %v10222_v55  ;;  %10224 = vst [vmem:[#allocation102_spill] sm:$0xff] %v6799_v4  ;;  %v10227_v26 = vld [vmem:[#allocation13_spill] sm:$0xff]  ;;  %v6815_v1 = vrot.slane %v1476_v21, %v10221_v3  ;;  %v6818_v30 = vrot.slane %v4876_v9, %v10221_v3 }
 0x184   : > { %1234 = vrot.lane.b32.xlu1 %v6343_v33, %s5581_s17  ;;  %10225 = vst [vmem:[#allocation103_spill] sm:$0xff] %v6802_v49  ;;  %10226 = vst [vmem:[#allocation104_spill] sm:$0xff] %v6805_v57  ;;  %v1055_v42 = vmul.f32 %v5412_v20, %v10227_v26  ;;  %v6821_v8 = vrot.slane %v4879_v47, %v10221_v3  ;;  %v4875_v44 = vld [vmem:[%s9811_s4 + $0x2] ss:$8 sm:$0xf]  ;;  %v5414_v20 = vpop.eup %5413  ;;  %v6834_v41 = vrot.slane %v1476_v21, %v10222_v55 }
 0x185   : > { %1240 = vrot.lane.b32.xlu0 %v6490_v63, %s5581_s17  ;;  %10228 = vst [vmem:[#allocation13_spill] sm:$0xff] %v6818_v30  ;;  %v4878_v27 = vld [vmem:[%s9811_s4 + $0x5] ss:$8 sm:$0xf]  ;;  %v6838_v6 = vmul.f32 %v6791_v22, %v10232_v24  ;;  %v6841_v61 = vrot.slane %v4876_v9, %v10222_v55  ;;  %v6847_v31 = vrot.slane %v4879_v47, %v10222_v55  ;;  %10237 = vst [vmem:[#allocation17_spill] sm:$0xff] %v6854_v5 }
 0x186   : > { %10229 = vst [vmem:[#allocation105_spill] sm:$0xff] %v6821_v8  ;;  %v10230_v26 = vld [vmem:[#allocation14_spill] sm:$0xff]  ;;  %v6857_v50 = vrot.slane %v4876_v9, %v10223_v15  ;;  %v6862_v40 = vrot.slane %v4879_v47, %v10223_v15  ;;  %v6865_v7 = vrot.slane %v4875_v44, %v10211_v17  ;;  %v6871_v37 = vrot.slane %v4878_v27, %v10211_v17 }
 0x187   : > { %v6831_v10 = vmul.f32 %v6788_v51, %v10230_v26  ;;  %10231 = vst [vmem:[#allocation14_spill] sm:$0xff] %v6834_v41  ;;  %10233 = vst [vmem:[#allocation12_spill] sm:$0xff] %v6841_v61  ;;  %v6850_v26 = vrot.slane %v1476_v21, %v10223_v15  ;;  %v6868_v21 = vrot.slane %v4875_v44, %v10221_v3  ;;  %v3342_v9 = vld [vmem:[%s9812_s5] sm:$0xf] }
 0x188   : > { %1238 = vrot.lane.b32.xlu1 %v6346_v13, %s5581_s17  ;;  %10234 = vst [vmem:[#allocation106_spill] sm:$0xff] %v6847_v31  ;;  %10238 = vst [vmem:[#allocation108_spill] sm:$0xff] %v6857_v50  ;;  %v6877_v52 = vmul.f32 %v10166_v34, %v1055_v42  ;;  %v1059_v59 = vmul.f32 %v5414_v20, %v10243_v46  ;;  %v6883_v47 = vrot.slane %v4878_v27, %v10221_v3  ;;  %v10249_v34 = vld [vmem:[#allocation20_spill] sm:$0xff]  ;;  %v10251_v46 = vld [vmem:[#allocation18_spill] sm:$0xff] }
 0x189   : > { %1381 = vrot.lane.b32.xlu0 %v6487_v39, %s5582_s18  ;;  %10235 = vst [vmem:[#allocation107_spill] sm:$0xff] %v6850_v26  ;;  %10239 = vst [vmem:[#allocation109_spill] sm:$0xff] %v6862_v40  ;;  %v6886_v5 = vrot.slane %v4881_v14, %v10211_v17  ;;  %v6897_v42 = vmul.f32 %v6788_v51, %v10249_v34  ;;  %v6901_v20 = vmul.f32 %v6791_v22, %v10251_v46  ;;  %v10253_v50 = vld [vmem:[#allocation21_spill] sm:$0xff]  ;;  %v10259_v34 = vld [vmem:[#allocation24_spill] sm:$0xff] }
 0x18a   : > { %10240 = vst [vmem:[#allocation110_spill] sm:$0xff] %v6865_v7  ;;  %10241 = vst [vmem:[#allocation111_spill] sm:$0xff] %v6868_v21  ;;  %v10247_v21 = vld [vmem:[#allocation19_spill] sm:$0xff] }
 0x18b   : > { %10242 = vst [vmem:[#allocation112_spill] sm:$0xff] %v6871_v37  ;;  %10244 = vst [vmem:[#allocation16_spill] sm:$0xff] %v6883_v47  ;;  %v6889_v37 = vrot.slane %v4881_v14, %v10221_v3  ;;  %v6893_v40 = vmul.f32 %v6753_v29, %v10247_v21  ;;  %v6905_v47 = vmul.f32 %v6794_v60, %v10253_v50  ;;  %v10257_v21 = vld [vmem:[#allocation22_spill] sm:$0xff] }
 0x18c   : > { %1383 = vrot.lane.b32.xlu1 %v6346_v13, %s5582_s18  ;;  %10245 = vst [vmem:[#allocation113_spill] sm:$0xff] %v6886_v5  ;;  %10250 = vst [vmem:[#allocation20_spill] sm:$0xff] %v6897_v42  ;;  %v6908_v5 = vrot.slane %v3342_v9, %v10211_v17  ;;  %v10260_v42 = vld [vmem:[#allocation23_spill] sm:$0xff]  ;;  %v10261_v17 = vld [vmem:[#allocation26_spill] sm:$0xff] }
 0x18d   : > { %1385 = vrot.lane.b32.xlu0 %v6490_v63, %s5582_s18  ;;  %10246 = vst [vmem:[#allocation114_spill] sm:$0xff] %v6889_v37  ;;  %10248 = vst [vmem:[#allocation19_spill] sm:$0xff] %v6893_v40  ;;  %v6911_v37 = vrot.slane %v3342_v9, %v10221_v3  ;;  %v6915_v40 = vmul.f32 %v6753_v29, %v10257_v21  ;;  %v10263_v3 = vld [vmem:[#allocation27_spill] sm:$0xff]  ;;  %v6937_v21 = vmul.f32 %v6101_v53, %v6877_v52 }
 0x18e   : > { %10252 = vst [vmem:[#allocation18_spill] sm:$0xff] %v6901_v20  ;;  %10254 = vst [vmem:[#allocation21_spill] sm:$0xff] %v6905_v47  ;;  %v6921_v20 = vmul.f32 %v6788_v51, %v10259_v34  ;;  %v6925_v47 = vmul.f32 %v6791_v22, %v10260_v42  ;;  %v10265_v42 = vld [vmem:[#allocation28_spill] sm:$0xff] }
 0x18f   : > { %10255 = vst [vmem:[#allocation115_spill] sm:$0xff] %v6908_v5  ;;  %10256 = vst [vmem:[#allocation116_spill] sm:$0xff] %v6911_v37  ;;  %v6929_v5 = vmul.f32 %v6794_v60, %v10261_v17  ;;  %v6933_v37 = vmul.f32 %v6753_v29, %v10263_v3  ;;  %v6946_v34 = vmul.f32 %v6788_v51, %v10265_v42 }
 0x190   : > { %10258 = vst [vmem:[#allocation22_spill] sm:$0xff] %v6915_v40  ;;  %1242 = vrot.lane.b32.xlu1 %v6493_v62, %s5581_s17  ;;  %v6940_v40 = vmul.f32 %v10195_v36, %v1059_v59  ;;  %v6950_v17 = vmul.f32 %v6791_v22, %v6165_v35  ;;  %v6953_v3 = vrot.slane %v4875_v44, %v10222_v55 }
 0x191   : > { %10262 = vst [vmem:[#allocation24_spill] sm:$0xff] %v6929_v5  ;;  %10264 = vst [vmem:[#allocation23_spill] sm:$0xff] %v6933_v37  ;;  %1246 = vrot.lane.b32.xlu0 %v6500_v16, %s5581_s17  ;;  %v6956_v37 = vrot.slane %v4875_v44, %v10223_v15  ;;  %v6959_v59 = vrot.slane %v4878_v27, %v10222_v55  ;;  %v6962_v36 = vrot.slane %v4878_v27, %v10223_v15 }
 0x192   : > { %10266 = vst [vmem:[#allocation26_spill] sm:$0xff] %v6946_v34  ;;  %10267 = vst [vmem:[#allocation27_spill] sm:$0xff] %v6950_v17  ;;  %v6965_v5 = vrot.slane %v4881_v14, %v10222_v55  ;;  %v6968_v42 = vrot.slane %v4881_v14, %v10223_v15  ;;  %v6972_v35 = vmul.f32 %v6794_v60, %v6177_v0  ;;  %v10275_v17 = vld [vmem:[#allocation7_spill] sm:$0xff]  ;;  %v10278_v34 = vld [vmem:[#allocation30_spill] sm:$0xff] }
 0x193   : > { %10268 = vst [vmem:[#allocation28_spill] sm:$0xff] %v6953_v3  ;;  %10269 = vst [vmem:[#allocation117_spill] sm:$0xff] %v6956_v37  ;;  %v6976_v44 = vmul.f32 %v6753_v29, %v10275_v17  ;;  %v6982_v27 = vmul.f32 %v6788_v51, %v6199_v54  ;;  %v6990_v14 = vmul.f32 %v6794_v60, %v6271_v12 }
 0x194   : > { %10270 = vst [vmem:[#allocation118_spill] sm:$0xff] %v6959_v59  ;;  %10271 = vst [vmem:[#allocation119_spill] sm:$0xff] %v6962_v36  ;;  %1387 = vrot.lane.b32.xlu1 %v6493_v62, %s5582_s18  ;;  %v6994_v0 = vmul.f32 %v6753_v29, %v6252_v32  ;;  %v7000_v17 = vmul.f32 %v6788_v51, %v6274_v19  ;;  %v7004_v54 = vmul.f32 %v6791_v22, %v6257_v58 }
 0x195   : > { %10272 = vst [vmem:[#allocation120_spill] sm:$0xff] %v6965_v5  ;;  %10273 = vst [vmem:[#allocation121_spill] sm:$0xff] %v6968_v42  ;;  %v6986_v5 = vmul.f32 %v6791_v22, %v10278_v34  ;;  %1391 = vrot.lane.b32.xlu0 %v6500_v16, %s5582_s18  ;;  %v7008_v34 = vmul.f32 %v6794_v60, %v6289_v2  ;;  %v7012_v12 = vmul.f32 %v6101_v53, %v6940_v40 }
 0x196   : > { %10274 = vst [vmem:[#allocation122_spill] sm:$0xff] %v6972_v35  ;;  %10276 = vst [vmem:[#allocation7_spill] sm:$0xff] %v6976_v44  ;;  %v1187_v32 = vpop.permute.xlu1 %1186  ;;  %v7020_v19 = vmul.f32 %v6788_v51, %v6487_v39  ;;  %v7024_v58 = vmul.f32 %v6791_v22, %v6346_v13  ;;  %v7028_v2 = vmul.f32 %v6794_v60, %v6490_v63 }
 0x197   : > { %10277 = vst [vmem:[#allocation123_spill] sm:$0xff] %v6982_v27  ;;  %10279 = vst [vmem:[#allocation30_spill] sm:$0xff] %v6986_v5  ;;  %v7040_v39 = vmul.f32 %v6104_v25, %v6877_v52  ;;  %v7046_v63 = vrot.slane %v3342_v9, %v10222_v55  ;;  %v7067_v55 = vmul.f32 %v6794_v60, %v6877_v52 }
 0x198   : > { %10280 = vst [vmem:[#allocation124_spill] sm:$0xff] %v6990_v14  ;;  %10281 = vst [vmem:[#allocation125_spill] sm:$0xff] %v6994_v0  ;;  %v7016_v0 = vmul.f32 %v6753_v29, %v6343_v33  ;;  %v7035_v33 = vmul.f32 %v6753_v29, %v6493_v62  ;;  %1248 = vrot.lane.b32.xlu1 %v6877_v52, %s5581_s17  ;;  %v7054_v62 = vmul.f32 %v6104_v25, %v6940_v40 }
 0x199   : > { %10282 = vst [vmem:[#allocation126_spill] sm:$0xff] %v7000_v17  ;;  %10283 = vst [vmem:[#allocation127_spill] sm:$0xff] %v7004_v54  ;;  %v7030_v17 = vpop.permute.xlu0 %1335  ;;  %1244 = vrot.lane.b32.xlu0 %v6503_v45, %s5581_s17  ;;  %v7073_v54 = vmul.f32 %v6073_v43, %v10251_v46 }
 0x19a   : > { %10284 = vst [vmem:[#allocation128_spill] sm:$0xff] %v7008_v34  ;;  %10285 = vst [vmem:[#allocation129_spill] sm:$0xff] %v7012_v12  ;;  %v1322_v34 = vsel %vm1258_vm2, 0.0, %v1187_v32 }
 0x19b   : > { %10286 = vst [vmem:[#allocation130_spill] sm:$0xff] %v7016_v0  ;;  %10287 = vst [vmem:[#allocation131_spill] sm:$0xff] %v7020_v19  ;;  %v2974_v0 = vrot.slane %v6937_v21, 1  ;;  %v1498_v13 = vmul.f32 %v6799_v4, %v1322_v34  ;;  %v7059_v21 = vrot.slane %v3342_v9, %v10223_v15  ;;  %v1191_v19 = vpop.permute.xlu1 %1190  ;;  %v7077_v9 = vmul.f32 %v6101_v53, %v10253_v50 }
 0x19c   : > { %10288 = vst [vmem:[#allocation132_spill] sm:$0xff] %v7024_v58  ;;  %10289 = vst [vmem:[#allocation133_spill] sm:$0xff] %v7028_v2  ;;  %v7050_v2 = vmul.f32 %v6788_v51, %v6503_v45  ;;  %1389 = vrot.lane.b32.xlu1 %v6503_v45, %s5582_s18  ;;  %v10304_v45 = vrot.slane %v7012_v12, 1  ;;  %v10339_v42 = vrot.slane %v7073_v54, 1 }
 0x19d   : > { %10290 = vst [vmem:[#allocation134_spill] sm:$0xff] %v7030_v17  ;;  %10291 = vst [vmem:[#allocation135_spill] sm:$0xff] %v7035_v33  ;;  %v7063_v33 = vmul.f32 %v6791_v22, %v6500_v16  ;;  %v1537_v58 = vadd.f32 %v6809_v38, %v1498_v13  ;;  %v7081_v16 = vmul.f32 %v6076_v28, %v10251_v46  ;;  %v1189_v15 = vpop.permute.xlu0 %1188  ;;  %1254 = vrot.lane.b32.xlu0 %v6657_v23, %s5581_s17 }
 0x19e   : > { %10292 = vst [vmem:[#allocation136_spill] sm:$0xff] %v7040_v39  ;;  %10293 = vst [vmem:[#allocation137_spill] sm:$0xff] %v7046_v63  ;;  %v7090_v13 = vmul.f32 %v6753_v29, %v6662_v18  ;;  %v1260_v46 = vsel %vm1258_vm2, %v1189_v15, %v1191_v19  ;;  %v10332_v63 = vld [vmem:[#allocation112_spill] sm:$0xff] }
 0x19f   : > { %10294 = vst [vmem:[#allocation138_spill] sm:$0xff] %v7050_v2  ;;  %10295 = vst [vmem:[#allocation139_spill] sm:$0xff] %v7054_v62  ;;  %v7094_v2 = vmul.f32 %v6104_v25, %v10253_v50  ;;  %v1332_v38 = vpop.permute.xlu1 %1331 }
 0x1a0   : > { %10296 = vst [vmem:[#allocation140_spill] sm:$0xff] %v7059_v21  ;;  %10297 = vst [vmem:[#allocation141_spill] sm:$0xff] %v7063_v33  ;;  %v1259_v33 = vsel %vm1258_vm2, %v1187_v32, %v1189_v15  ;;  %v7114_v15 = vmul.f32 %v6794_v60, %v6940_v40  ;;  %v7122_v32 = vmul.f32 %v6802_v49, %v1322_v34  ;;  %1393 = vrot.lane.b32.xlu1 %v6877_v52, %s5582_s18 }
 0x1a1   : > { %10298 = vst [vmem:[#allocation142_spill] sm:$0xff] %v7067_v55  ;;  %v7085_v55 = vsel %vm1631_vm0, %v6597_v48, %v2974_v0  ;;  %10300 = vst [vmem:[#allocation144_spill] sm:$0xff] %v7090_v13  ;;  %v1499_v29 = vmul.f32 %v6815_v1, %v1259_v33  ;;  %v7110_v13 = vmul.f32 %v6791_v22, %v6657_v23  ;;  %1399 = vrot.lane.b32.xlu0 %v6657_v23, %s5582_s18 }
 0x1a2   : > { %10299 = vst [vmem:[#allocation143_spill] sm:$0xff] %v7085_v55  ;;  %v7102_v55 = vmul.f32 %v6788_v51, %v6665_v56  ;;  %10303 = vst [vmem:[#allocation147_spill] sm:$0xff] %v7114_v15  ;;  %v7119_v51 = vsel %vm1631_vm0, %v2974_v0, %v10304_v45  ;;  %v7132_v12 = vmul.f32 %v6818_v30, %v1259_v33  ;;  %v1193_v0 = vpop.permute.xlu0 %1192  ;;  %v10309_v45 = vld [vmem:[#allocation11_spill] sm:$0xff]  ;;  %v10311_v22 = vrot.slane %v7073_v54, 1 }
 0x1a3   : > { %10302 = vst [vmem:[#allocation146_spill] sm:$0xff] %v7110_v13  ;;  %10305 = vst [vmem:[#allocation148_spill] sm:$0xff] %v7119_v51  ;;  %v7128_v13 = vmul.f32 %v6805_v57, %v1322_v34  ;;  %v1538_v60 = vadd.f32 %v6831_v10, %v1499_v29  ;;  %v7136_v51 = vmul.f32 %v6821_v8, %v1259_v33  ;;  %v10306_v34 = vrot.slane %v7054_v62, 2 }
 0x1a4   : > { %10301 = vst [vmem:[#allocation145_spill] sm:$0xff] %v7102_v55  ;;  %v1500_v55 = vmul.f32 %v6834_v41, %v1260_v46  ;;  %v1261_v48 = vsel %vm1258_vm2, %v1191_v19, %v1193_v0  ;;  %v10307_v10 = vrot.slane %v7040_v39, 2  ;;  %v10310_v33 = vrot.slane %v10309_v45, 1  ;;  %v10313_v19 = vld [vmem:[#allocation40_spill] sm:$0xff]  ;;  %v10317_v39 = vld [vmem:[#allocation41_spill] sm:$0xff]  ;;  %v10321_v45 = vld [vmem:[#allocation42_spill] sm:$0xff]  ;;  %1250 = vrot.lane.b32.xlu1 %v6662_v18, %s5581_s17 }
 0x1a5   : > { %v10314_v0 = vrot.slane %v10313_v19, 1  ;;  %v10315_v52 = vrot.slane %v7077_v9, 1  ;;  %v10323_v21 = vrot.slane %v7094_v2, 2  ;;  %v7181_v19 = vmul.f32 %v6841_v61, %v1260_v46  ;;  %1395 = vrot.lane.b32.xlu0 %v6662_v18, %s5582_s18 }
 0x1a6   : > { %v7147_v29 = vsel %vm1881_vm1, %v10307_v10, %v10306_v34  ;;  %v7156_v15 = vsel %vm1631_vm0, %v10311_v22, %v10310_v33  ;;  %v10318_v34 = vrot.slane %v10317_v39, 2  ;;  %v10319_v10 = vrot.slane %v7081_v16, 2  ;;  %v1334_v39 = vpop.permute.xlu1 %1333 }
 0x1a7   : > { %10308 = vst [vmem:[#allocation149_spill] sm:$0xff] %v7147_v29  ;;  %10312 = vst [vmem:[#allocation11_spill] sm:$0xff] %v7156_v15  ;;  %v7163_v62 = vsel %vm1631_vm0, %v10315_v52, %v10314_v0  ;;  %v10322_v29 = vrot.slane %v10321_v45, 2  ;;  %v1632_v33 = vrot.slane %v7122_v32, 1  ;;  %v7184_v0 = vmul.f32 %v6847_v31, %v1260_v46  ;;  %v7190_v45 = vpop.permute.xlu0 %1343 }
 0x1a8   : > { %10316 = vst [vmem:[#allocation40_spill] sm:$0xff] %v7163_v62  ;;  %v7170_v23 = vsel %vm1881_vm1, %v10319_v10, %v10318_v34  ;;  %10325 = vst [vmem:[#allocation150_spill] sm:$0xff] %v7181_v19  ;;  %v1693_v52 = vmul.f32 %v6073_v43, %v10232_v24  ;;  %v1882_v34 = vrot.slane %v7128_v13, 2  ;;  %v1694_v32 = vmul.f32 %v6101_v53, %v10236_v11  ;;  %v10328_v10 = vld [vmem:[#allocation108_spill] sm:$0xff] }
 0x1a9   : > { %10320 = vst [vmem:[#allocation41_spill] sm:$0xff] %v7170_v23  ;;  %v7177_v22 = vsel %vm1881_vm1, %v10323_v21, %v10322_v29  ;;  %10326 = vst [vmem:[#allocation151_spill] sm:$0xff] %v7190_v45  ;;  %v1404_v21 = vsel %vm1403_vm3, %v1332_v38, %v1334_v39  ;;  %v7197_v46 = vadd.f32 %v6838_v6, %v1500_v55  ;;  %v10330_v23 = vld [vmem:[#allocation109_spill] sm:$0xff]  ;;  %v10331_v29 = vld [vmem:[#allocation111_spill] sm:$0xff]  ;;  %v1888_v55 = vrot.slane %v7184_v0, 2 }
 0x1aa   : > { %10324 = vst [vmem:[#allocation42_spill] sm:$0xff] %v7177_v22  ;;  %v1405_v22 = vsel %vm1403_vm3, %v1334_v39, %v7030_v17  ;;  %v1568_v43 = vmul.f32 %v6865_v7, %v1404_v21  ;;  %v1501_v13 = vmul.f32 %v6850_v26, %v1261_v48  ;;  %v7206_v38 = vmul.f32 %v10328_v10, %v1261_v48  ;;  %v10336_v6 = vld [vmem:[#allocation19_spill] sm:$0xff] }
 0x1ab   : > { %10327 = vst [vmem:[#allocation152_spill] sm:$0xff] %v7197_v46  ;;  %v7209_v53 = vmul.f32 %v10330_v23, %v1261_v48  ;;  %v1569_v62 = vmul.f32 %v10331_v29, %v1405_v22  ;;  %v1195_v46 = vpop.permute.xlu1 %1194  ;;  %v1721_v17 = vrot.slane %v1693_v52, 1  ;;  %v7217_v14 = vmul.f32 %v10332_v63, %v1404_v21  ;;  %v1340_v5 = vpop.permute.xlu0 %1339  ;;  %1256 = vrot.lane.b32.xlu1 %v6940_v40, %s5581_s17 }
 0x1ac   : > { %10329 = vst [vmem:[#allocation153_spill] sm:$0xff] %v7206_v38  ;;  %v1576_v39 = vadd.f32 %v1568_v43, %v1537_v58  ;;  %v1323_v48 = vsel %vm1258_vm2, 0.0, %v1195_v46  ;;  %v1724_v27 = vrot.slane %v1694_v32, 1  ;;  %v1943_v58 = vmul.f32 %v6076_v28, %v10232_v24  ;;  %1252 = vrot.lane.b32.xlu0 %v6665_v56, %s5581_s17  ;;  %v10335_v43 = vld [vmem:[#allocation113_spill] sm:$0xff] }
 0x1ad   : > { %v1577_v15 = vadd.f32 %v1569_v62, %v1538_v60  ;;  %v1502_v44 = vmul.f32 %v6799_v4, %v1323_v48  ;;  %v7222_v35 = vmul.f32 %v6802_v49, %v1323_v48  ;;  %v7225_v18 = vmul.f32 %v6805_v57, %v1323_v48  ;;  %v10333_v62 = vld [vmem:[#allocation17_spill] sm:$0xff] }
 0x1ae   : > { %v7232_v60 = vadd.f32 %v10333_v62, %v1501_v13  ;;  %v1891_v52 = vrot.slane %v7209_v53, 2  ;;  %v7240_v32 = vmul.f32 %v6104_v25, %v10236_v11  ;;  %v7243_v48 = vmul.f32 %v10335_v43, %v1404_v21  ;;  %v10337_v62 = vld [vmem:[#allocation16_spill] sm:$0xff] }
 0x1af   : > { %v1541_v19 = vadd.f32 %v10336_v6, %v1502_v44  ;;  %v9922_v28 = vrot.slane %v7222_v35, 1  ;;  %v9921_v24 = vrot.slane %v7225_v18, 2  ;;  %v1199_v13 = vpop.permute.xlu1 %1198  ;;  %v7249_v0 = vmul.f32 %v10337_v62, %v1405_v22  ;;  %v1197_v25 = vpop.permute.xlu0 %1196  ;;  %1397 = vrot.lane.b32.xlu1 %v6665_v56, %s5582_s18 }
 0x1b0   : > { %10334 = vst [vmem:[#allocation109_spill] sm:$0xff] %v7232_v60  ;;  %v10338_v60 = vld [vmem:[#allocation114_spill] sm:$0xff]  ;;  %v7258_v21 = vsel %vm1631_vm0, %v1721_v17, %v10339_v42  ;;  %v1262_v53 = vsel %vm1258_vm2, %v1195_v46, %v1197_v25  ;;  %1401 = vrot.lane.b32.xlu0 %v6940_v40, %s5582_s18  ;;  %v10341_v56 = vrot.slane %v7077_v9, 1 }
 0x1b1   : > { %v7253_v38 = vmul.f32 %v10338_v60, %v1405_v22  ;;  %10340 = vst [vmem:[#allocation17_spill] sm:$0xff] %v7258_v21  ;;  %v1634_v44 = vsel %vm1631_vm0, %v1632_v33, %v9922_v28  ;;  %v7266_v6 = vsel %vm1881_vm1, %v1882_v34, %v9921_v24  ;;  %v1263_v22 = vsel %vm1258_vm2, %v1197_v25, %v1199_v13  ;;  %v10343_v24 = vld [vmem:[#allocation20_spill] sm:$0xff] }
 0x1b2   : > { %v1660_v54 = vadd.f32 %v1634_v44, %v1576_v39  ;;  %v1503_v42 = vmul.f32 %v6815_v1, %v1262_v53  ;;  %v7274_v17 = vmul.f32 %v6818_v30, %v1262_v53  ;;  %v7277_v33 = vmul.f32 %v6821_v8, %v1262_v53 }
 0x1b3   : > { %v2048_v34 = vrot.slane %v7243_v48, 2  ;;  %v7283_v46 = vmul.f32 %v6847_v31, %v1263_v22  ;;  %v1342_v25 = vpop.permute.xlu1 %1341  ;;  %v7288_v39 = vsel %vm1631_vm0, %v1724_v27, %v10341_v56  ;;  %v1971_v44 = vrot.slane %v1943_v58, 2  ;;  %v1201_v37 = vpop.permute.xlu0 %1200  ;;  %1337 = vrot.lane.b32.xlu1 %v10236_v11, %s5582_s18 }
 0x1b4   : > { %10342 = vst [vmem:[#allocation19_spill] sm:$0xff] %v7288_v39  ;;  %v1542_v28 = vadd.f32 %v10343_v24, %v1503_v42  ;;  %v9928_v53 = vrot.slane %v7274_v17, 1  ;;  %v9927_v21 = vrot.slane %v7277_v33, 2  ;;  %v1407_v40 = vsel %vm1403_vm3, %v1340_v5, %v1342_v25  ;;  %1345 = vrot.lane.b32.xlu0 %v10253_v50, %s5582_s18 }
 0x1b5   : > { %v1801_v48 = vrot.slane %v7249_v0, 1  ;;  %v2051_v3 = vrot.slane %v7253_v38, 2  ;;  %v9926_v36 = vrot.slane %v7283_v46, 2  ;;  %v7298_v9 = vsel %vm1258_vm2, %v1199_v13, %v1201_v37 }
 0x1b6   : > { %v10344_v27 = vrot.slane %v7132_v12, 1  ;;  %v10345_v5 = vrot.slane %v7136_v51, 2  ;;  %v10346_v37 = vrot.slane %v7081_v16, 2  ;;  %v7327_v51 = vmul.f32 %v10330_v23, %v7298_v9 }
 0x1b7   : > { %v7323_v12 = vsel %vm1881_vm1, %v1888_v55, %v9926_v36  ;;  %v1408_v50 = vsel %vm1403_vm3, %v1342_v25, %v7190_v45  ;;  %v1203_v13 = vpop.permute.xlu1 %1202  ;;  %v7332_v16 = vmul.f32 %v6834_v41, %v1263_v22  ;;  %v7335_v42 = vmul.f32 %v6841_v61, %v1263_v22  ;;  %v7339_v55 = vpop.permute.xlu0 %1351 }
 0x1b8   : > { %v1637_v58 = vsel %vm1631_vm0, %v10344_v27, %v9928_v53  ;;  %v1887_v38 = vsel %vm1881_vm1, %v10345_v5, %v9927_v21  ;;  %v7317_v0 = vsel %vm1881_vm1, %v1971_v44, %v10346_v37  ;;  %10348 = vst [vmem:[#allocation154_spill] sm:$0xff] %v7323_v12  ;;  %v1573_v56 = vmul.f32 %v10331_v29, %v1408_v50  ;;  %v10350_v27 = vld [vmem:[#allocation25_spill] sm:$0xff]  ;;  %v10351_v5 = vld [vmem:[#allocation31_spill] sm:$0xff] }
 0x1b9   : > { %10347 = vst [vmem:[#allocation20_spill] sm:$0xff] %v7317_v0  ;;  %v1661_v24 = vadd.f32 %v1637_v58, %v1577_v15  ;;  %10349 = vst [vmem:[#allocation155_spill] sm:$0xff] %v7335_v42  ;;  %v1572_v15 = vmul.f32 %v6865_v7, %v1407_v40  ;;  %v9929_v44 = vrot.slane %v7327_v51, 2  ;;  %v1743_v37 = vadd.f32 %v10351_v5, %v1660_v54 }
 0x1ba   : > { %v7345_v25 = vmul.f32 %v10332_v63, %v1407_v40  ;;  %v1581_v36 = vadd.f32 %v1573_v56, %v1542_v28  ;;  %v7348_v22 = vmul.f32 %v10337_v62, %v1408_v50  ;;  %v7351_v21 = vmul.f32 %v10335_v43, %v1407_v40 }
 0x1bb   : > { %v1744_v58 = vadd.f32 %v10350_v27, %v1661_v24  ;;  %v1580_v11 = vadd.f32 %v1572_v15, %v1541_v19  ;;  %v7356_v53 = vsel %vm1881_vm1, %v1891_v52, %v9929_v44  ;;  %v7360_v54 = vmul.f32 %v10338_v60, %v1408_v50  ;;  %v1207_v19 = vpop.permute.xlu1 %1206  ;;  %v1205_v52 = vpop.permute.xlu0 %1204 }
 0x1bc   : > { %10352 = vst [vmem:[#allocation25_spill] sm:$0xff] %v7356_v53  ;;  %v9933_v24 = vrot.slane %v7345_v25, 1  ;;  %v1324_v27 = vsel %vm1258_vm2, 0.0, %v1203_v13  ;;  %v10353_v5 = vrot.slane %v7217_v14, 1  ;;  %v1265_v28 = vsel %vm1258_vm2, %v1203_v13, %v1205_v52 }
 0x1bd   : > { %v7366_v40 = vmul.f32 %v6802_v49, %v1324_v27  ;;  %v7369_v56 = vmul.f32 %v6805_v57, %v1324_v27  ;;  %v9938_v44 = vrot.slane %v7360_v54, 2  ;;  %v2084_v0 = vmul.f32 %v6799_v4, %v1324_v27 }
 0x1be   : > { %v1800_v50 = vsel %vm1631_vm0, %v10353_v5, %v9933_v24  ;;  %v10354_v15 = vrot.slane %v7348_v22, 1  ;;  %v10355_v39 = vrot.slane %v7351_v21, 2  ;;  %v10356_v24 = vld [vmem:[#allocation22_spill] sm:$0xff] }
 0x1bf   : > { %v1826_v12 = vadd.f32 %v1800_v50, %v1743_v37  ;;  %v9936_v57 = vrot.slane %v7366_v40, 1  ;;  %v2053_v5 = vsel %vm1881_vm1, %v2051_v3, %v9938_v44  ;;  %v9937_v27 = vrot.slane %v7369_v56, 2  ;;  %v7393_v49 = vpop.permute.xlu1 %1347 }
 0x1c0   : > { %v1803_v53 = vsel %vm1631_vm0, %v1801_v48, %v10354_v15  ;;  %v2050_v45 = vsel %vm1881_vm1, %v2048_v34, %v10355_v39  ;;  %v7391_v13 = vadd.f32 %v10356_v24, %v2084_v0  ;;  %v10357_v34 = vrot.slane %v7222_v35, 1 }
 0x1c1   : > { %v1827_v14 = vadd.f32 %v1803_v53, %v1744_v58  ;;  %v1910_v48 = vadd.f32 %v7266_v6, %v1826_v12  ;;  %v7402_v53 = vmul.f32 %v6818_v30, %v1265_v28  ;;  %v7405_v3 = vmul.f32 %v6821_v8, %v1265_v28  ;;  %v1209_v58 = vpop.permute.xlu0 %1208  ;;  %v10359_v12 = vld [vmem:[#allocation32_spill] sm:$0xff] }
 0x1c2   : > { %v1645_v39 = vsel %vm1631_vm0, %v10357_v34, %v9936_v57  ;;  %v10358_v24 = vrot.slane %v7225_v18, 2  ;;  %v2085_v35 = vmul.f32 %v6815_v1, %v1265_v28  ;;  %v1266_v57 = vsel %vm1258_vm2, %v1205_v52, %v1207_v19 }
 0x1c3   : > { %v1911_v37 = vadd.f32 %v1887_v38, %v1827_v14  ;;  %v1664_v0 = vadd.f32 %v1645_v39, %v1580_v11  ;;  %v1993_v15 = vadd.f32 %v10359_v12, %v1910_v48  ;;  %v9940_v50 = vrot.slane %v7402_v53, 1  ;;  %v10360_v11 = vld [vmem:[#allocation29_spill] sm:$0xff]  ;;  %v1350_v28 = vpop.permute.xlu1 %1349 }
 0x1c4   : > { %v7412_v6 = vsel %vm1881_vm1, %v10358_v24, %v9937_v27  ;;  %v9939_v34 = vrot.slane %v7405_v3, 2  ;;  %v1505_v38 = vmul.f32 %v6850_v26, %v7298_v9  ;;  %v7423_v18 = vadd.f32 %v6921_v20, %v2085_v35 }
 0x1c5   : > { %v1994_v14 = vadd.f32 %v10360_v11, %v1911_v37  ;;  %v7426_v39 = vmul.f32 %v6847_v31, %v1266_v57  ;;  %v2076_v24 = vadd.f32 %v2050_v45, %v1993_v15  ;;  %v10361_v48 = vrot.slane %v7274_v17, 1  ;;  %v1354_v35 = vpop.permute.xlu0 %1353  ;;  %v10364_v17 = vld [vmem:[#allocation115_spill] sm:$0xff] }
 0x1c6   : > { %v10362_v52 = vrot.slane %v7277_v33, 2  ;;  %v2086_v20 = vmul.f32 %v6834_v41, %v1266_v57  ;;  %v7442_v45 = vmul.f32 %v6841_v61, %v1266_v57  ;;  %v1267_v33 = vsel %vm1258_vm2, %v1207_v19, %v1209_v58  ;;  %v10372_v58 = vld [vmem:[#allocation18_spill] sm:$0xff] }
 0x1c7   : > { %v1647_v12 = vsel %vm1631_vm0, %v10361_v48, %v9940_v50  ;;  %v2077_v11 = vadd.f32 %v2053_v5, %v1994_v14  ;;  %v9941_v15 = vrot.slane %v7426_v39, 2  ;;  %v7446_v44 = vadd.f32 %v10364_v17, %v2076_v24  ;;  %v1211_v19 = vpop.permute.xlu1 %1210 }
 0x1c8   : > { %v7438_v37 = vsel %vm1881_vm1, %v10362_v52, %v9939_v34  ;;  %v1665_v27 = vadd.f32 %v1647_v12, %v1581_v36  ;;  %10363 = vst [vmem:[#allocation31_spill] sm:$0xff] %v7442_v45  ;;  %v2110_v48 = vadd.f32 %v6925_v47, %v2086_v20  ;;  %v7452_v52 = vsel %vm1403_vm3, %v7339_v55, %v1354_v35  ;;  %v10366_v34 = vld [vmem:[#allocation116_spill] sm:$0xff] }
 0x1c9   : > { %10365 = vst [vmem:[#allocation22_spill] sm:$0xff] %v7446_v44  ;;  %v7455_v50 = vadd.f32 %v10366_v34, %v2077_v11  ;;  %v10368_v57 = vrot.slane %v7283_v46, 2  ;;  %v7465_v5 = vmul.f32 %v10328_v10, %v1267_v33  ;;  %v7468_v47 = vmul.f32 %v10330_v23, %v1267_v33  ;;  %v7476_v20 = vpop.permute.xlu0 %1359 }
 0x1ca   : > { %v7472_v14 = vadd.f32 %v10372_v58, %v7332_v16  ;;  %v4882_v24 = vmul.f32 -1.442695, %v7446_v44  ;;  %v2087_v12 = vmul.f32 %v6850_v26, %v1267_v33  ;;  %v10374_v46 = vrot.slane %v7094_v2, 2  ;;  %v10378_v33 = vld [vmem:[#allocation21_spill] sm:$0xff]  ;;  %v10389_v44 = vld [vmem:[#allocation34_spill] sm:$0xff] }
 0x1cb   : > { %10367 = vst [vmem:[#allocation32_spill] sm:$0xff] %v7455_v50  ;;  %v7462_v36 = vsel %vm1881_vm1, %v10368_v57, %v9941_v15  ;;  %10370 = vst [vmem:[#allocation156_spill] sm:$0xff] %v7465_v5  ;;  %v10375_v11 = vrot.slane %v7240_v32, 2  ;;  %v7488_v16 = vsel %vm1403_vm3, %v1354_v35, 0.0  ;;  %v7492_v58 = vmul.f32 %v6959_v59, %v7452_v52  ;;  %v10388_v35 = vld [vmem:[#allocation33_spill] sm:$0xff] }
 0x1cc   : > { %10369 = vst [vmem:[#allocation29_spill] sm:$0xff] %v7462_v36  ;;  %10371 = vst [vmem:[#allocation157_spill] sm:$0xff] %v7468_v47  ;;  %v9946_v36 = vrot.slane %v7468_v47, 2  ;;  %v7499_v2 = vmul.f32 %v10328_v10, %v7298_v9  ;;  %5415 = vpow2.f32 %v4882_v24  ;;  %v4883_v15 = vmul.f32 -1.442695, %v7455_v50  ;;  %v10384_v9 = vld [vmem:[#allocation119_spill] sm:$0xff] }
 0x1cd   : > { %10373 = vst [vmem:[#allocation18_spill] sm:$0xff] %v7472_v14  ;;  %v7483_v57 = vsel %vm1881_vm1, %v10375_v11, %v10374_v46  ;;  %10377 = vst [vmem:[#allocation159_spill] sm:$0xff] %v7492_v58  ;;  %v7495_v14 = vadd.f32 %v10378_v33, %v1505_v38  ;;  %v10381_v46 = vld [vmem:[#allocation24_spill] sm:$0xff]  ;;  %v7512_v33 = vpop.permute.xlu1 %1214  ;;  %v1747_v42 = vadd.f32 %v10388_v35, %v1664_v0  ;;  %v1356_v50 = vpop.permute.xlu0 %1355 }
 0x1ce   : > { %10376 = vst [vmem:[#allocation158_spill] sm:$0xff] %v7483_v57  ;;  %10380 = vst [vmem:[#allocation160_spill] sm:$0xff] %v7499_v2  ;;  %v2111_v11 = vadd.f32 %v10381_v46, %v2087_v12  ;;  %v10382_v57 = vrot.slane %v7327_v51, 2  ;;  %v10386_v12 = vld [vmem:[#allocation28_spill] sm:$0xff]  ;;  %v10387_v46 = vld [vmem:[#allocation117_spill] sm:$0xff]  ;;  %5417 = vpow2.f32 %v4883_v15 }
 0x1cf   : > { %10379 = vst [vmem:[#allocation21_spill] sm:$0xff] %v7495_v14  ;;  %v7516_v14 = vmul.f32 %v10384_v9, %v7488_v16  ;;  %v2122_v24 = vmul.f32 %v10386_v12, %v7452_v52  ;;  %v2123_v32 = vmul.f32 %v10387_v46, %v7488_v16  ;;  %v10394_v51 = vld [vmem:[#allocation103_spill] sm:$0xff] }
 0x1d0   : > { %v7510_v38 = vsel %vm1881_vm1, %v10382_v57, %v9946_v36  ;;  %v1748_v57 = vadd.f32 %v10389_v44, %v1665_v27  ;;  %v1410_v36 = vsel %vm1403_vm3, %v7393_v49, %v1350_v28 }
 0x1d1   : > { %10383 = vst [vmem:[#allocation24_spill] sm:$0xff] %v7510_v38  ;;  %10385 = vst [vmem:[#allocation161_spill] sm:$0xff] %v7516_v14  ;;  %v1411_v38 = vsel %vm1403_vm3, %v1350_v28, %v7339_v55  ;;  %v7529_v2 = vadd.f32 %v2122_v24, %v2110_v48  ;;  %v7531_v9 = vadd.f32 %v2123_v32, %v2111_v11  ;;  %v1358_v27 = vpop.permute.xlu1 %1357  ;;  %v1325_v32 = vsel %vm1258_vm2, 0.0, %v1211_v19  ;;  %v1213_v59 = vpop.permute.xlu0 %1212 }
 0x1d2   : > { %v7534_v47 = vmul.f32 %v10332_v63, %v1410_v36  ;;  %v7537_v0 = vmul.f32 %v10337_v62, %v1411_v38  ;;  %v7540_v35 = vmul.f32 %v10335_v43, %v1410_v36  ;;  %v7543_v44 = vmul.f32 %v10338_v60, %v1411_v38 }
 0x1d3   : > { %10390 = vst [vmem:[#allocation33_spill] sm:$0xff] %v7531_v9  ;;  %v2120_v49 = vmul.f32 %v6865_v7, %v1410_v36  ;;  %v2121_v55 = vmul.f32 %v10331_v29, %v1411_v38  ;;  %v7551_v11 = vsel %vm1403_vm3, %v1356_v50, %v1358_v27  ;;  %v10391_v38 = vrot.slane %v7345_v25, 1 }
 0x1d4   : > { %v9953_v28 = vrot.slane %v7534_v47, 1  ;;  %v10392_v46 = vrot.slane %v7537_v0, 1  ;;  %v10393_v50 = vrot.slane %v7348_v22, 1  ;;  %v2088_v24 = vmul.f32 %v6799_v4, %v1325_v32 }
 0x1d5   : > { %v2132_v58 = vadd.f32 %v2120_v49, %v7391_v13  ;;  %v2133_v36 = vadd.f32 %v2121_v55, %v7423_v18  ;;  %v7569_v12 = vmul.f32 %v10394_v51, %v1325_v32  ;;  %v10396_v49 = vrot.slane %v7540_v35, 2  ;;  %v10401_v51 = vld [vmem:[#allocation104_spill] sm:$0xff] }
 0x1d6   : > { %v1811_v48 = vsel %vm1631_vm0, %v10391_v38, %v9953_v28  ;;  %v1813_v9 = vsel %vm1631_vm0, %v10393_v50, %v10392_v46  ;;  %v10397_v55 = vrot.slane %v7351_v21, 2  ;;  %v10398_v38 = vrot.slane %v7543_v44, 2  ;;  %v10400_v46 = vld [vmem:[#allocation23_spill] sm:$0xff]  ;;  %v10402_v21 = vld [vmem:[#allocation120_spill] sm:$0xff] }
 0x1d7   : > { %10395 = vst [vmem:[#allocation34_spill] sm:$0xff] %v7569_v12  ;;  %v1830_v13 = vadd.f32 %v1811_v48, %v1747_v42  ;;  %v1831_v18 = vadd.f32 %v1813_v9, %v1748_v57  ;;  %v10399_v28 = vrot.slane %v7360_v54, 2  ;;  %v2112_v50 = vadd.f32 %v10400_v46, %v2088_v24  ;;  %v5416_v9 = vpop.eup %5415  ;;  %v10408_v46 = vld [vmem:[#allocation26_spill] sm:$0xff] }
 0x1d8   : > { %v2061_v25 = vsel %vm1881_vm1, %v10397_v55, %v10396_v49  ;;  %v9958_v4 = vrot.slane %v7569_v12, 1  ;;  %v7584_v5 = vmul.f32 %v10401_v51, %v1325_v32  ;;  %v1268_v42 = vsel %vm1258_vm2, %v1211_v19, %v1213_v59  ;;  %v10405_v55 = vld [vmem:[#allocation35_spill] sm:$0xff] }
 0x1d9   : > { %v2063_v22 = vsel %vm1881_vm1, %v10399_v28, %v10398_v38  ;;  %v7589_v57 = vmul.f32 %v10402_v21, %v7452_v52  ;;  %v1914_v48 = vadd.f32 %v7412_v6, %v1830_v13  ;;  %v1915_v54 = vadd.f32 %v7438_v37, %v1831_v18  ;;  %v10406_v13 = vld [vmem:[#allocation36_spill] sm:$0xff] }
 0x1da   : > { %v1269_v28 = vsel %vm1258_vm2, %v1213_v59, %v7512_v33  ;;  %v10404_v32 = vrot.slane %v7366_v40, 1  ;;  %v9960_v19 = vrot.slane %v7584_v5, 2  ;;  %v2089_v49 = vmul.f32 %v6815_v1, %v1268_v42 }
 0x1db   : > { %10403 = vst [vmem:[#allocation23_spill] sm:$0xff] %v7589_v57  ;;  %v1997_v6 = vadd.f32 %v10405_v55, %v1914_v48  ;;  %v1998_v37 = vadd.f32 %v10406_v13, %v1915_v54  ;;  %v3492_v38 = vadd.f32 1.0, %v5416_v9  ;;  %v10407_v59 = vrot.slane %v7369_v56, 2 }
 0x1dc   : > { %v2161_v24 = vsel %vm1631_vm0, %v10404_v32, %v9958_v4  ;;  %v2090_v15 = vmul.f32 %v6834_v41, %v1269_v28  ;;  %v2113_v32 = vadd.f32 %v10408_v46, %v2089_v49  ;;  %v7613_v52 = vmul.f32 %v6818_v30, %v1268_v42  ;;  %v1217_v49 = vpop.permute.xlu0 %1216 }
 0x1dd   : > { %v2188_v18 = vadd.f32 %v2161_v24, %v2132_v58  ;;  %v2329_v40 = vsel %vm1881_vm1, %v10407_v59, %v9960_v19  ;;  %v2080_v4 = vadd.f32 %v2061_v25, %v1997_v6  ;;  %v2081_v12 = vadd.f32 %v2063_v22, %v1998_v37  ;;  %v10409_v58 = vld [vmem:[#allocation27_spill] sm:$0xff]  ;;  %v10410_v24 = vld [vmem:[#allocation8_spill] sm:$0xff] }
 0x1de   : > { %v7616_v48 = vmul.f32 %v6841_v61, %v1269_v28  ;;  %v7619_v9 = vadd.f32 %v10409_v58, %v2090_v15  ;;  %v7622_v54 = vmul.f32 %v6821_v8, %v1268_v42  ;;  %v7625_v56 = vmul.f32 %v6847_v31, %v1269_v28 }
 0x1df   : > { %v2244_v55 = vadd.f32 %v10410_v24, %v2188_v18  ;;  %v7629_v25 = vadd.f32 %v10364_v17, %v2080_v4  ;;  %v7632_v22 = vadd.f32 %v10366_v34, %v2081_v12  ;;  %v9962_v6 = vrot.slane %v7613_v52, 1 }
 0x1e0   : > { %v9963_v13 = vrot.slane %v7616_v48, 1  ;;  %v9964_v37 = vrot.slane %v7622_v54, 2  ;;  %v1414_v28 = vsel %vm1403_vm3, %v1358_v27, %v7476_v20  ;;  %v2124_v18 = vmul.f32 %v6865_v7, %v7551_v11 }
 0x1e1   : > { %10411 = vst [vmem:[#allocation35_spill] sm:$0xff] %v7632_v22  ;;  %v4886_v4 = vmul.f32 -1.442695, %v7629_v25  ;;  %v4887_v59 = vmul.f32 -1.442695, %v7632_v22  ;;  %v10412_v12 = vrot.slane %v7402_v53, 1 }
 0x1e2   : > { %v10413_v46 = vrot.slane %v7442_v45, 1  ;;  %v10414_v19 = vrot.slane %v7405_v3, 2  ;;  %v10415_v34 = vrot.slane %v7625_v56, 2  ;;  %v10416_v53 = vrot.slane %v7426_v39, 2  ;;  %v10418_v3 = vld [vmem:[#allocation37_spill] sm:$0xff]  ;;  %v1362_v39 = vpop.permute.xlu1 %1361  ;;  %v10427_v45 = vld [vmem:[#allocation122_spill] sm:$0xff] }
 0x1e3   : > { %v2163_v15 = vsel %vm1631_vm0, %v10412_v12, %v9962_v6  ;;  %5419 = vpow2.f32 %v4886_v4  ;;  %v2125_v6 = vmul.f32 %v10331_v29, %v1414_v28  ;;  %v7682_v4 = vpop.permute.xlu0 %1367  ;;  %v10428_v17 = vrot.slane %v7543_v44, 2  ;;  %v10430_v44 = vld [vmem:[#allocation156_spill] sm:$0xff] }
 0x1e4   : > { %v2165_v58 = vsel %vm1631_vm0, %v10413_v46, %v9963_v13  ;;  %v2189_v27 = vadd.f32 %v2163_v15, %v2133_v36  ;;  %v2331_v42 = vsel %vm1881_vm1, %v10414_v19, %v9964_v37  ;;  %v7665_v12 = vsel %vm1881_vm1, %v10416_v53, %v10415_v34  ;;  %v5418_v36 = vpop.eup %5417 }
 0x1e5   : > { %v2190_v24 = vadd.f32 %v2165_v58, %v7529_v2  ;;  %v7668_v46 = vadd.f32 %v2124_v18, %v2112_v50  ;;  %v7672_v2 = vmul.f32 %v10332_v63, %v7551_v11  ;;  %5421 = vpow2.f32 %v4887_v59 }
 0x1e6   : > { %v2245_v19 = vadd.f32 %v10418_v3, %v2189_v27  ;;  %v7676_v15 = vmul.f32 %v10337_v62, %v1414_v28  ;;  %v7680_v34 = vmul.f32 %v10335_v43, %v7551_v11  ;;  %v7684_v50 = vadd.f32 %v2125_v6, %v2113_v32  ;;  %v10422_v27 = vld [vmem:[#allocation121_spill] sm:$0xff] }
 0x1e7   : > { %10417 = vst [vmem:[#allocation36_spill] sm:$0xff] %v7672_v2  ;;  %v9966_v18 = vrot.slane %v7672_v2, 1  ;;  %v7688_v58 = vmul.f32 %v10338_v60, %v1414_v28  ;;  %v1270_v59 = vsel %vm1258_vm2, %v7512_v33, %v1217_v49  ;;  %v7694_v53 = vmul.f32 %v10422_v27, %v7488_v16  ;;  %v10441_v2 = vld [vmem:[#allocation43_spill] sm:$0xff] }
 0x1e8   : > { %10419 = vst [vmem:[#allocation26_spill] sm:$0xff] %v7676_v15  ;;  %10420 = vst [vmem:[#allocation27_spill] sm:$0xff] %v7680_v34  ;;  %v9969_v11 = vrot.slane %v7676_v15, 1  ;;  %v9971_v3 = vrot.slane %v7680_v34, 2  ;;  %v2091_v13 = vmul.f32 %v6850_v26, %v1270_v59  ;;  %5423 = vrcp.f32 %v3492_v38 }
 0x1e9   : > { %10421 = vst [vmem:[#allocation8_spill] sm:$0xff] %v7688_v58  ;;  %10423 = vst [vmem:[#allocation37_spill] sm:$0xff] %v7694_v53  ;;  %v10424_v32 = vrot.slane %v7534_v47, 1  ;;  %v9970_v28 = vrot.slane %v7688_v58, 2  ;;  %v7706_v33 = vmul.f32 %v10328_v10, %v1270_v59  ;;  %v10425_v16 = vrot.slane %v7537_v0, 1 }
 0x1ea   : > { %v10426_v38 = vrot.slane %v7540_v35, 2  ;;  %v1415_v35 = vsel %vm1403_vm3, %v7476_v20, %v1362_v39  ;;  %v10435_v20 = vld [vmem:[#allocation117_spill] sm:$0xff] }
 0x1eb   : > { %v2273_v6 = vsel %vm1631_vm0, %v10424_v32, %v9966_v18  ;;  %v2275_v49 = vsel %vm1631_vm0, %v10425_v16, %v9969_v11  ;;  %v2115_v32 = vadd.f32 %v10427_v45, %v2091_v13  ;;  %v2443_v22 = vsel %vm1881_vm1, %v10428_v17, %v9970_v28  ;;  %v1219_v13 = vpop.permute.xlu1 %1218  ;;  %v10432_v28 = vld [vmem:[#allocation28_spill] sm:$0xff] }
 0x1ec   : > { %v2300_v37 = vadd.f32 %v2273_v6, %v2244_v55  ;;  %v2441_v47 = vsel %vm1881_vm1, %v10426_v38, %v9971_v3  ;;  %v2301_v18 = vadd.f32 %v2275_v49, %v2245_v19  ;;  %v9975_v0 = vrot.slane %v7706_v33, 1  ;;  %v10429_v6 = vld [vmem:[#allocation10_spill] sm:$0xff]  ;;  %v1221_v19 = vpop.permute.xlu0 %1220 }
 0x1ed   : > { %v7726_v16 = vmul.f32 %v10330_v23, %v1270_v59  ;;  %v2246_v11 = vadd.f32 %v10429_v6, %v2190_v24  ;;  %v1470_v45 = vsel %vm1403_vm3, %v1362_v39, 0.0  ;;  %v10431_v17 = vrot.slane %v10430_v44, 1  ;;  %v10434_v6 = vld [vmem:[#allocation33_spill] sm:$0xff]  ;;  %v10436_v39 = vld [vmem:[#allocation118_spill] sm:$0xff] }
 0x1ee   : > { %v2356_v55 = vadd.f32 %v2329_v40, %v2300_v37  ;;  %v2357_v49 = vadd.f32 %v2331_v42, %v2301_v18  ;;  %v2126_v40 = vmul.f32 %v10432_v28, %v1415_v35  ;;  %v10433_v37 = vld [vmem:[#allocation38_spill] sm:$0xff]  ;;  %v2127_v58 = vmul.f32 %v10435_v20, %v1470_v45  ;;  %v5420_v42 = vpop.eup %5419  ;;  %v10437_v18 = vld [vmem:[#allocation39_spill] sm:$0xff]  ;;  %v10438_v44 = vld [vmem:[#allocation157_spill] sm:$0xff] }
 0x1ef   : > { %v2167_v38 = vsel %vm1631_vm0, %v10431_v17, %v9975_v0  ;;  %v9981_v59 = vrot.slane %v7726_v16, 2  ;;  %v7743_v34 = vmul.f32 %v10436_v39, %v1415_v35  ;;  %v10439_v17 = vrot.slane %v10438_v44, 2 }
 0x1f0   : > { %v2412_v24 = vadd.f32 %v10433_v37, %v2356_v55  ;;  %v2191_v3 = vadd.f32 %v2167_v38, %v10434_v6  ;;  %v2413_v60 = vadd.f32 %v10437_v18, %v2357_v49  ;;  %v7752_v43 = vadd.f32 %v2126_v40, %v7619_v9  ;;  %v10440_v55 = vld [vmem:[#allocation119_spill] sm:$0xff]  ;;  %v5422_v38 = vpop.eup %5421 }
 0x1f1   : > { %v2335_v0 = vsel %vm1881_vm1, %v10439_v17, %v9981_v59  ;;  %v7755_v37 = vmul.f32 %v10440_v55, %v1470_v45  ;;  %v3496_v6 = vadd.f32 1.0, %v5420_v42  ;;  %v7760_v63 = vadd.f32 %v2127_v58, %v2115_v32  ;;  %v1225_v58 = vpop.permute.xlu0 %1224 }
 0x1f2   : > { %v7757_v15 = vadd.f32 %v2441_v47, %v2412_v24  ;;  %v2247_v62 = vadd.f32 %v10441_v2, %v2191_v3  ;;  %v7763_v18 = vadd.f32 %v2443_v22, %v2413_v60  ;;  %v9982_v44 = vrot.slane %v7743_v34, 1  ;;  %v1223_v2 = vpop.permute.xlu1 %1222  ;;  %v5424_v3 = vpop.eup %5423  ;;  %v10443_v60 = vld [vmem:[#allocation159_spill] sm:$0xff] }
 0x1f3   : > { %v9983_v9 = vrot.slane %v7755_v37, 1  ;;  %5425 = vrcp.f32 %v3496_v6  ;;  %v7769_v17 = vmul.f32 %v10402_v21, %v1415_v35  ;;  %v7772_v47 = vmul.f32 %v10422_v27, %v1470_v45 }
 0x1f4   : > { %10442 = vst [vmem:[#allocation122_spill] sm:$0xff] %v7763_v18  ;;  %v3493_v32 = vadd.f32 1.0, %v5418_v36  ;;  %v3497_v24 = vadd.f32 1.0, %v5422_v38  ;;  %v10444_v22 = vrot.slane %v10443_v60, 1  ;;  %v10445_v6 = vrot.slane %v7516_v14, 1  ;;  %v10453_v14 = vld [vmem:[#allocation123_spill] sm:$0xff] }
 0x1f5   : > { %v9984_v40 = vrot.slane %v7769_v17, 2  ;;  %v9987_v49 = vrot.slane %v7772_v47, 2  ;;  %v1326_v36 = vsel %vm1258_vm2, 0.0, %v1219_v13  ;;  %v1271_v38 = vsel %vm1258_vm2, %v1219_v13, %v1221_v19  ;;  %v10448_v13 = vld [vmem:[#allocation102_spill] sm:$0xff] }
 0x1f6   : > { %v2277_v42 = vsel %vm1631_vm0, %v10444_v22, %v9982_v44  ;;  %v2279_v35 = vsel %vm1631_vm0, %v10445_v6, %v9983_v9  ;;  %v1272_v60 = vsel %vm1258_vm2, %v1221_v19, %v1223_v2  ;;  %v1273_v22 = vsel %vm1258_vm2, %v1223_v2, %v1225_v58  ;;  %v10449_v19 = vld [vmem:[#allocation103_spill] sm:$0xff]  ;;  %v10451_v58 = vld [vmem:[#allocation45_spill] sm:$0xff] }
 0x1f7   : > { %v2302_v59 = vadd.f32 %v2277_v42, %v2246_v11  ;;  %v2303_v45 = vadd.f32 %v2279_v35, %v2247_v62  ;;  %v10446_v11 = vrot.slane %v7589_v57, 2  ;;  %v10447_v42 = vrot.slane %v7694_v53, 2  ;;  %v10452_v57 = vld [vmem:[#allocation7_spill] sm:$0xff] }
 0x1f8   : > { %v2092_v35 = vmul.f32 %v10448_v13, %v1326_v36  ;;  %v2148_v9 = vmul.f32 %v10449_v19, %v1326_v36  ;;  %v2316_v2 = vmul.f32 %v10401_v51, %v1326_v36  ;;  %5427 = vrcp.f32 %v3493_v32  ;;  %v10462_v32 = vld [vmem:[#allocation30_spill] sm:$0xff] }
 0x1f9   : > { %v2358_v44 = vadd.f32 %v7665_v12, %v2302_v59  ;;  %v2359_v18 = vadd.f32 %v2335_v0, %v2303_v45  ;;  %v2445_v62 = vsel %vm1881_vm1, %v10446_v11, %v9984_v40  ;;  %v2447_v6 = vsel %vm1881_vm1, %v10447_v42, %v9987_v49  ;;  %v10450_v0 = vld [vmem:[#allocation44_spill] sm:$0xff] }
 0x1fa   : > { %v2093_v12 = vmul.f32 %v6815_v1, %v1271_v38  ;;  %v2149_v11 = vmul.f32 %v6818_v30, %v1271_v38  ;;  %v2317_v40 = vmul.f32 %v6821_v8, %v1271_v38  ;;  %v7810_v53 = vadd.f32 %v10452_v57, %v2092_v35  ;;  %v10454_v38 = vld [vmem:[#allocation34_spill] sm:$0xff] }
 0x1fb   : > { %v2414_v59 = vadd.f32 %v10450_v0, %v2358_v44  ;;  %v2415_v45 = vadd.f32 %v10451_v58, %v2359_v18  ;;  %v7812_v42 = vrot.slane %v2148_v9, 1  ;;  %v7814_v49 = vrot.slane %v2316_v2, 2 }
 0x1fc   : > { %v7817_v13 = vadd.f32 %v10453_v14, %v2093_v12  ;;  %v7823_v44 = vrot.slane %v2149_v11, 1  ;;  %v7825_v18 = vrot.slane %v2317_v40, 2  ;;  %v10455_v0 = vrot.slane %v10454_v38, 1 }
 0x1fd   : > { %v7819_v36 = vadd.f32 %v2445_v62, %v2414_v59  ;;  %v7821_v51 = vadd.f32 %v2447_v6, %v2415_v45  ;;  %v10456_v9 = vrot.slane %v7584_v5, 2  ;;  %v2094_v14 = vmul.f32 %v6834_v41, %v1272_v60  ;;  %v5426_v6 = vpop.eup %5425  ;;  %v1370_v45 = vpop.permute.xlu0 %1369  ;;  %v10459_v5 = vld [vmem:[#allocation22_spill] sm:$0xff] }
 0x1fe   : > { %v2169_v57 = vsel %vm1631_vm0, %v10455_v0, %v7812_v42  ;;  %v2150_v62 = vmul.f32 %v6841_v61, %v1272_v60  ;;  %v10458_v59 = vrot.slane %v7613_v52, 1  ;;  %v7846_v11 = vmul.f32 %v5424_v3, %v10459_v5 }
 0x1ff   : > { %v7835_v35 = vsel %vm1881_vm1, %v10456_v9, %v7814_v49  ;;  %v2192_v40 = vadd.f32 %v2169_v57, %v7668_v46  ;;  %v10461_v0 = vrot.slane %v7622_v54, 2  ;;  %v2118_v12 = vadd.f32 %v10462_v32, %v2094_v14  ;;  %v1364_v32 = vpop.permute.xlu1 %1363 }
 0x200   : > { %v2171_v58 = vsel %vm1631_vm0, %v10458_v59, %v7823_v44  ;;  %10460 = vst [vmem:[#allocation10_spill] sm:$0xff] %v7846_v11  ;;  %5429 = vrcp.f32 %v3497_v24  ;;  %v7856_v46 = vrot.slane %v2150_v62, 1  ;;  %v2318_v52 = vmul.f32 %v6847_v31, %v1272_v60  ;;  %v10465_v62 = vld [vmem:[#allocation124_spill] sm:$0xff] }
 0x201   : > { %v2193_v38 = vadd.f32 %v2171_v58, %v7684_v50  ;;  %v7853_v9 = vsel %vm1881_vm1, %v10461_v0, %v7825_v18  ;;  %v2095_v57 = vmul.f32 %v6850_v26, %v1273_v22  ;;  %v7861_v3 = vmul.f32 %v5426_v6, %v7629_v25  ;;  %v10469_v25 = vld [vmem:[#allocation53_spill] sm:$0xff] }
 0x202   : > { %v2151_v50 = vmul.f32 %v10328_v10, %v1273_v22  ;;  %v2319_v59 = vmul.f32 %v10330_v23, %v1273_v22  ;;  %v1418_v54 = vsel %vm1403_vm3, %v7682_v4, %v1370_v45  ;;  %v10464_v24 = vrot.slane %v7616_v48, 1 }
 0x203   : > { %10463 = vst [vmem:[#allocation38_spill] sm:$0xff] %v7861_v3  ;;  %v7872_v60 = vrot.slane %v2318_v52, 2  ;;  %v2119_v5 = vadd.f32 %v10465_v62, %v2095_v57  ;;  %v10466_v58 = vrot.slane %v7625_v56, 2  ;;  %v2130_v52 = vmul.f32 %v10432_v28, %v1418_v54 }
 0x204   : > { %v2173_v14 = vsel %vm1631_vm0, %v10464_v24, %v7856_v46  ;;  %v7877_v0 = vrot.slane %v2151_v50, 1  ;;  %v7879_v22 = vrot.slane %v2319_v59, 2  ;;  %v1471_v24 = vsel %vm1403_vm3, %v1370_v45, 0.0 }
 0x205   : > { %v2194_v6 = vadd.f32 %v2173_v14, %v7752_v43  ;;  %v2341_v48 = vsel %vm1881_vm1, %v10466_v58, %v7872_v60  ;;  %v2262_v57 = vmul.f32 %v10436_v39, %v1418_v54  ;;  %v7890_v62 = vadd.f32 %v7861_v3, %v7846_v11  ;;  %v7912_v39 = vpop.eup %5427 }
 0x206   : > { %v10467_v43 = vrot.slane %v7706_v33, 1  ;;  %v10468_v56 = vrot.slane %v7726_v16, 2  ;;  %v2131_v45 = vmul.f32 %v10435_v20, %v1471_v24  ;;  %v7902_v14 = vadd.f32 %v2130_v52, %v2118_v12 }
 0x207   : > { %v2250_v2 = vadd.f32 %v10469_v25, %v2194_v6  ;;  %v2263_v3 = vmul.f32 %v10440_v55, %v1471_v24  ;;  %v7908_v33 = vrot.slane %v2262_v57, 1  ;;  %v2431_v16 = vmul.f32 %v10422_v27, %v1471_v24  ;;  %v10473_v25 = vld [vmem:[#allocation57_spill] sm:$0xff] }
 0x208   : > { %v2175_v50 = vsel %vm1631_vm0, %v10467_v43, %v7877_v0  ;;  %v2343_v59 = vsel %vm1881_vm1, %v10468_v56, %v7879_v22  ;;  %v7906_v11 = vadd.f32 %v2131_v45, %v2119_v5  ;;  %v2430_v43 = vmul.f32 %v10402_v21, %v1418_v54  ;;  %v1366_v45 = vpop.permute.xlu1 %1365  ;;  %v10478_v21 = vld [vmem:[#allocation58_spill] sm:$0xff] }
 0x209   : > { %v2195_v58 = vadd.f32 %v2175_v50, %v7760_v63  ;;  %10470 = vst [vmem:[#allocation33_spill] sm:$0xff] %v7908_v33  ;;  %v2198_v56 = vadd.f32 %v7856_v46, %v7902_v14  ;;  %v10471_v63 = vld [vmem:[#allocation54_spill] sm:$0xff]  ;;  %v7917_v52 = vrot.slane %v2263_v3, 1  ;;  %v2248_v6 = vadd.f32 %v10473_v25, %v2192_v40 }
 0x20a   : > { %v2199_v5 = vadd.f32 %v7877_v0, %v7906_v11  ;;  %v10474_v57 = vrot.slane %v7743_v34, 1  ;;  %v7926_v24 = vrot.slane %v2430_v43, 2  ;;  %v7928_v50 = vrot.slane %v2431_v16, 2  ;;  %v7930_v27 = vpop.eup %5429  ;;  %v10479_v34 = vld [vmem:[#allocation47_spill] sm:$0xff] }
 0x20b   : > { %v2251_v12 = vadd.f32 %v10471_v63, %v2195_v58  ;;  %10472 = vst [vmem:[#allocation39_spill] sm:$0xff] %v7917_v52  ;;  %v10476_v58 = vld [vmem:[#allocation46_spill] sm:$0xff]  ;;  %v10477_v40 = vrot.slane %v7755_v37, 1  ;;  %v2249_v55 = vadd.f32 %v10478_v21, %v2193_v38  ;;  %v10480_v43 = vrot.slane %v7769_v17, 2 }
 0x20c   : > { %v2285_v54 = vsel %vm1631_vm0, %v10474_v57, %v7908_v33  ;;  %10475 = vst [vmem:[#allocation157_spill] sm:$0xff] %v7926_v24  ;;  %v2254_v3 = vadd.f32 %v10476_v58, %v2198_v56  ;;  %v2255_v20 = vadd.f32 %v10479_v34, %v2199_v5  ;;  %v10481_v28 = vrot.slane %v7772_v47, 2  ;;  %v10482_v47 = vld [vmem:[#allocation55_spill] sm:$0xff] }
 0x20d   : > { %v2287_v63 = vsel %vm1631_vm0, %v10477_v40, %v7917_v52  ;;  %v2306_v25 = vadd.f32 %v2285_v54, %v2250_v2  ;;  %v2453_v16 = vsel %vm1881_vm1, %v10480_v43, %v7926_v24  ;;  %v1416_v2 = vsel %vm1403_vm3, %v1364_v32, %v1366_v45 }
 0x20e   : > { %v2307_v57 = vadd.f32 %v2287_v63, %v2251_v12  ;;  %v2455_v56 = vsel %vm1881_vm1, %v10481_v28, %v7928_v50  ;;  %v2310_v37 = vadd.f32 %v7908_v33, %v2254_v3  ;;  %v1417_v21 = vsel %vm1403_vm3, %v1366_v45, %v7682_v4  ;;  %v10483_v28 = vld [vmem:[#allocation112_spill] sm:$0xff] }
 0x20f   : > { %v2362_v58 = vadd.f32 %v2341_v48, %v2306_v25  ;;  %v2311_v38 = vadd.f32 %v7917_v52, %v2255_v20  ;;  %v2128_v17 = vmul.f32 %v6865_v7, %v1416_v2  ;;  %v2129_v5 = vmul.f32 %v10331_v29, %v1417_v21  ;;  %v10484_v3 = vld [vmem:[#allocation16_spill] sm:$0xff] }
 0x210   : > { %v2363_v12 = vadd.f32 %v2343_v59, %v2307_v57  ;;  %v2366_v54 = vadd.f32 %v7872_v60, %v2310_v37  ;;  %v2260_v63 = vmul.f32 %v10483_v28, %v1416_v2  ;;  %v2261_v48 = vmul.f32 %v10484_v3, %v1417_v21  ;;  %v10485_v25 = vld [vmem:[#allocation56_spill] sm:$0xff] }
 0x211   : > { %v2418_v40 = vadd.f32 %v10482_v47, %v2362_v58  ;;  %v2367_v32 = vadd.f32 %v7879_v22, %v2311_v38  ;;  %v7961_v4 = vadd.f32 %v2128_v17, %v7810_v53  ;;  %v7964_v20 = vadd.f32 %v2129_v5, %v7817_v13  ;;  %v10486_v59 = vld [vmem:[#allocation48_spill] sm:$0xff]  ;;  %v10487_v58 = vld [vmem:[#allocation49_spill] sm:$0xff] }
 0x212   : > { %v2419_v34 = vadd.f32 %v10485_v25, %v2363_v12  ;;  %v2422_v45 = vadd.f32 %v10486_v59, %v2366_v54  ;;  %v7967_v43 = vrot.slane %v2260_v63, 1  ;;  %v7969_v37 = vrot.slane %v2261_v48, 1  ;;  %v10488_v17 = vld [vmem:[#allocation36_spill] sm:$0xff]  ;;  %v10490_v54 = vld [vmem:[#allocation26_spill] sm:$0xff] }
 0x213   : > { %v2474_v57 = vadd.f32 %v2453_v16, %v2418_v40  ;;  %v2423_v47 = vadd.f32 %v10487_v58, %v2367_v32  ;;  %v2196_v38 = vadd.f32 %v7812_v42, %v7961_v4  ;;  %v2197_v53 = vadd.f32 %v7823_v44, %v7964_v20  ;;  %v10492_v32 = vld [vmem:[#allocation50_spill] sm:$0xff] }
 0x214   : > { %v2475_v52 = vadd.f32 %v2455_v56, %v2419_v34  ;;  %v2478_v12 = vadd.f32 %v7926_v24, %v2422_v45  ;;  %v10489_v5 = vrot.slane %v10488_v17, 1  ;;  %v10491_v40 = vrot.slane %v10490_v54, 1  ;;  %v10493_v34 = vld [vmem:[#allocation51_spill] sm:$0xff] }
 0x215   : > { %v3239_v13 = vrot.slane %v2474_v57, 2  ;;  %v2479_v56 = vadd.f32 %v7928_v50, %v2423_v47  ;;  %v2252_v25 = vadd.f32 %v10492_v32, %v2196_v38  ;;  %v2253_v59 = vadd.f32 %v10493_v34, %v2197_v53  ;;  %v10497_v38 = vld [vmem:[#allocation140_spill] sm:$0xff] }
 0x216   : > { %v2281_v16 = vsel %vm1631_vm0, %v10489_v5, %v7967_v43  ;;  %v2283_v63 = vsel %vm1631_vm0, %v10491_v40, %v7969_v37  ;;  %v3242_v48 = vrot.slane %v2475_v52, 2  ;;  %v10494_v45 = vrot.slane %v7819_v36, 2  ;;  %v10496_v40 = vld [vmem:[#allocation137_spill] sm:$0xff] }
 0x217   : > { %v3248_v58 = vrot.slane %v2478_v12, 2  ;;  %v2304_v17 = vadd.f32 %v2281_v16, %v2248_v6  ;;  %v2305_v24 = vadd.f32 %v2283_v63, %v2249_v55  ;;  %v10495_v5 = vrot.slane %v7821_v51, 2 }
 0x218   : > { %v3240_v57 = vsel %vm1881_vm1, %v10494_v45, %v3239_v13  ;;  %v3250_v33 = vrot.slane %v2479_v56, 2  ;;  %v2308_v52 = vadd.f32 %v7967_v43, %v2252_v25  ;;  %v2309_v36 = vadd.f32 %v7969_v37, %v2253_v59  ;;  %v1229_v25 = vpop.permute.xlu0 %1228  ;;  %v10499_v59 = vld [vmem:[#allocation60_spill] sm:$0xff] }
 0x219   : > { %v3243_v54 = vsel %vm1881_vm1, %v10495_v5, %v3242_v48  ;;  %v7995_v7 = vadd.f32 %v10496_v40, %v3240_v57  ;;  %v3249_v47 = vsel %vm1881_vm1, %v3239_v13, %v3248_v58  ;;  %v2360_v6 = vadd.f32 %v7835_v35, %v2304_v17  ;;  %v1227_v35 = vpop.permute.xlu1 %1226  ;;  %v10501_v58 = vld [vmem:[#allocation9_spill] sm:$0xff] }
 0x21a   : > { %v8000_v53 = vadd.f32 %v10497_v38, %v3243_v54  ;;  %v3251_v55 = vsel %vm1881_vm1, %v3242_v48, %v3250_v33  ;;  %v8006_v51 = vadd.f32 %v10496_v40, %v3249_v47  ;;  %v2361_v16 = vadd.f32 %v7853_v9, %v2305_v24  ;;  %v10498_v48 = vld [vmem:[#allocation59_spill] sm:$0xff]  ;;  %v10500_v24 = vld [vmem:[#allocation52_spill] sm:$0xff]  ;;  %v10502_v5 = vld [vmem:[#allocation113_spill] sm:$0xff] }
 0x21b   : > { %v4892_v12 = vmul.f32 -1.442695, %v7995_v7  ;;  %v8011_v63 = vadd.f32 %v10497_v38, %v3251_v55  ;;  %v2364_v56 = vadd.f32 %v7814_v49, %v2308_v52  ;;  %v2365_v32 = vadd.f32 %v7825_v18, %v2309_v36  ;;  %v10503_v52 = vld [vmem:[#allocation114_spill] sm:$0xff]  ;;  %v10504_v55 = vld [vmem:[#allocation35_spill] sm:$0xff] }
 0x21c   : > { %v4893_v13 = vmul.f32 -1.442695, %v8000_v53  ;;  %v4896_v33 = vmul.f32 -1.442695, %v8006_v51  ;;  %v2416_v34 = vadd.f32 %v10498_v48, %v2360_v6  ;;  %v2417_v45 = vadd.f32 %v10499_v59, %v2361_v16  ;;  %v10509_v48 = vld [vmem:[#allocation122_spill] sm:$0xff] }
 0x21d   : > { %5431 = vpow2.f32 %v4892_v12  ;;  %v4897_v9 = vmul.f32 -1.442695, %v8011_v63  ;;  %v2420_v57 = vadd.f32 %v10500_v24, %v2364_v56  ;;  %v2421_v17 = vadd.f32 %v10501_v58, %v2365_v32 }
 0x21e   : > { %5433 = vpow2.f32 %v4893_v13  ;;  %v2428_v54 = vmul.f32 %v10502_v5, %v1416_v2  ;;  %v2429_v47 = vmul.f32 %v10503_v52, %v1417_v21  ;;  %v1274_v36 = vsel %vm1258_vm2, %v1227_v35, %v1229_v25  ;;  %v10507_v21 = vld [vmem:[#allocation32_spill] sm:$0xff] }
 0x21f   : > { %5435 = vpow2.f32 %v4896_v33  ;;  %v8027_v12 = vmul.f32 %v7930_v27, %v10504_v55  ;;  %v1327_v6 = vsel %vm1258_vm2, 0.0, %v1227_v35  ;;  %v8031_v16 = vmul.f32 %v6818_v30, %v1274_v36 }
 0x220   : > { %5437 = vpow2.f32 %v4897_v9  ;;  %v3621_v13 = vrot.slane %v7890_v62, 4  ;;  %v8034_v56 = vrot.slane %v2428_v54, 2  ;;  %v8036_v32 = vrot.slane %v2429_v47, 2  ;;  %v10510_v9 = vld [vmem:[#allocation27_spill] sm:$0xff]  ;;  %v10512_v54 = vld [vmem:[#allocation8_spill] sm:$0xff] }
 0x221   : > { %10505 = vst [vmem:[#allocation43_spill] sm:$0xff] %v8027_v12  ;;  %10506 = vst [vmem:[#allocation103_spill] sm:$0xff] %v8031_v16  ;;  %v8039_v2 = vmul.f32 %v10449_v19, %v1327_v6  ;;  %v8043_v33 = vmul.f32 %v7912_v39, %v10507_v21  ;;  %v3232_v27 = vrot.slane %v7757_v15, 2  ;;  %v3235_v35 = vrot.slane %v10509_v48, 2 }
 0x222   : > { %v10511_v24 = vrot.slane %v10510_v9, 2  ;;  %v10513_v47 = vrot.slane %v10512_v54, 2  ;;  %v2476_v40 = vadd.f32 %v8034_v56, %v2420_v57  ;;  %v2477_v39 = vadd.f32 %v8036_v32, %v2421_v17  ;;  %v1231_v9 = vpop.permute.xlu1 %1230 }
 0x223   : > { %10508 = vst [vmem:[#allocation44_spill] sm:$0xff] %v8043_v33  ;;  %v8060_v15 = vadd.f32 %v8027_v12, %v8043_v33  ;;  %v10007_v59 = vrot.slane %v8039_v2, 1  ;;  %v10518_v33 = vld [vmem:[#allocation115_spill] sm:$0xff] }
 0x224   : > { %v2449_v58 = vsel %vm1881_vm1, %v10511_v24, %v8034_v56  ;;  %v2451_v55 = vsel %vm1881_vm1, %v10513_v47, %v8036_v32  ;;  %v8064_v24 = vadd.f32 %v3621_v13, %v7890_v62  ;;  %v3244_v38 = vrot.slane %v2476_v40, 2  ;;  %v10517_v13 = vld [vmem:[#allocation104_spill] sm:$0xff] }
 0x225   : > { %10514 = vst [vmem:[#allocation45_spill] sm:$0xff] %v8060_v15  ;;  %v2472_v21 = vadd.f32 %v2449_v58, %v2416_v34  ;;  %v2473_v48 = vadd.f32 %v2451_v55, %v2417_v45  ;;  %v3246_v54 = vrot.slane %v2477_v39, 2  ;;  %v10516_v47 = vrot.slane %v8031_v16, 1  ;;  %v1233_v58 = vpop.permute.xlu0 %1232 }
 0x226   : > { %10515 = vst [vmem:[#allocation7_spill] sm:$0xff] %v8064_v24  ;;  %v2537_v34 = vsel %vm1631_vm0, %v7812_v42, %v10007_v59  ;;  %v8076_v62 = vmul.f32 %v6815_v1, %v1274_v36  ;;  %v8080_v39 = vmul.f32 %v10517_v13, %v1327_v6  ;;  %v8097_v16 = vpop.permute.xlu1 %1375 }
 0x227   : > { %v2539_v57 = vsel %vm1631_vm0, %v7823_v44, %v10516_v47  ;;  %v3233_v17 = vrot.slane %v2472_v21, 2  ;;  %v3236_v30 = vrot.slane %v2473_v48, 2  ;;  %v5432_v55 = vpop.eup %5431  ;;  %v2564_v40 = vadd.f32 %v2537_v34, %v7961_v4  ;;  %v10520_v4 = vld [vmem:[#allocation116_spill] sm:$0xff] }
 0x228   : > { %v2565_v45 = vadd.f32 %v2539_v57, %v7964_v20  ;;  %v1275_v44 = vsel %vm1258_vm2, %v1229_v25, %v1231_v9  ;;  %v5434_v21 = vpop.eup %5433  ;;  %v3502_v48 = vadd.f32 1.0, %v5432_v55 }
 0x229   : > { %v3234_v47 = vsel %vm1881_vm1, %v3232_v27, %v3233_v17  ;;  %v3237_v42 = vsel %vm1881_vm1, %v3235_v35, %v3236_v30  ;;  %v3245_v20 = vsel %vm1881_vm1, %v3233_v17, %v3244_v38  ;;  %v5436_v57 = vpop.eup %5435  ;;  %v3503_v59 = vadd.f32 1.0, %v5434_v21  ;;  %v10523_v27 = vld [vmem:[#allocation102_spill] sm:$0xff] }
 0x22a   : > { %v3247_v12 = vsel %vm1881_vm1, %v3236_v30, %v3246_v54  ;;  %v8088_v24 = vadd.f32 %v10518_v33, %v3234_v47  ;;  %v8091_v34 = vadd.f32 %v10520_v4, %v3237_v42  ;;  %v5438_v15 = vpop.eup %5437  ;;  %v3506_v25 = vadd.f32 1.0, %v5436_v57  ;;  %v1374_v47 = vpop.permute.xlu0 %1373 }
 0x22b   : > { %5439 = vrcp.f32 %v3502_v48  ;;  %v8094_v55 = vadd.f32 %v10518_v33, %v3245_v20  ;;  %v2480_v35 = vmul.f32 %v10523_v27, %v1327_v6  ;;  %v3507_v38 = vadd.f32 1.0, %v5438_v15 }
 0x22c   : > { %10519 = vst [vmem:[#allocation123_spill] sm:$0xff] %v8088_v24  ;;  %10521 = vst [vmem:[#allocation34_spill] sm:$0xff] %v8091_v34  ;;  %5441 = vrcp.f32 %v3503_v59  ;;  %v8100_v30 = vadd.f32 %v10520_v4, %v3247_v12  ;;  %v8103_v54 = vmul.f32 %v6821_v8, %v1274_v36  ;;  %v4890_v17 = vmul.f32 -1.442695, %v8088_v24 }
 0x22d   : > { %10522 = vst [vmem:[#allocation22_spill] sm:$0xff] %v8094_v55  ;;  %5443 = vrcp.f32 %v3506_v25  ;;  %v4891_v21 = vmul.f32 -1.442695, %v8091_v34  ;;  %v4894_v6 = vmul.f32 -1.442695, %v8094_v55  ;;  %v1276_v42 = vsel %vm1258_vm2, %v1231_v9, %v1233_v58  ;;  %v10525_v25 = vld [vmem:[#allocation127_spill] sm:$0xff] }
 0x22e   : > { %10524 = vst [vmem:[#allocation30_spill] sm:$0xff] %v8100_v30  ;;  %v2482_v59 = vmul.f32 %v6834_v41, %v1275_v44  ;;  %v8112_v12 = vmul.f32 %v6841_v61, %v1275_v44  ;;  %5445 = vrcp.f32 %v3507_v38  ;;  %v2483_v36 = vmul.f32 %v6850_v26, %v1276_v42  ;;  %v10527_v38 = vld [vmem:[#allocation128_spill] sm:$0xff] }
 0x22f   : > { %v8116_v15 = vmul.f32 %v10328_v10, %v1276_v42  ;;  %v8119_v20 = vmul.f32 %v6847_v31, %v1275_v44  ;;  %v4895_v57 = vmul.f32 -1.442695, %v8100_v30  ;;  %v8127_v58 = vmul.f32 %v10330_v23, %v1276_v42  ;;  %v1372_v44 = vpop.permute.xlu1 %1371  ;;  %v10528_v30 = vld [vmem:[#allocation61_spill] sm:$0xff] }
 0x230   : > { %v8123_v48 = vadd.f32 %v10525_v25, %v2482_v59  ;;  %v10019_v9 = vrot.slane %v8112_v12, 1  ;;  %5447 = vpow2.f32 %v4890_v17  ;;  %v8130_v34 = vadd.f32 %v10527_v38, %v2483_v36  ;;  %v8153_v38 = vpop.permute.xlu0 %1379 }
 0x231   : > { %10526 = vst [vmem:[#allocation124_spill] sm:$0xff] %v8127_v58  ;;  %v10018_v4 = vrot.slane %v8116_v15, 1  ;;  %v10017_v55 = vrot.slane %v8119_v20, 2  ;;  %5449 = vpow2.f32 %v4891_v21  ;;  %v10021_v25 = vrot.slane %v8127_v58, 2 }
 0x232   : > { %v2541_v59 = vsel %vm1631_vm0, %v7856_v46, %v10019_v9  ;;  %v2621_v42 = vadd.f32 %v10528_v30, %v2565_v45  ;;  %v1420_v46 = vsel %vm1403_vm3, %v1374_v47, %v8097_v16  ;;  %5451 = vpow2.f32 %v4894_v6  ;;  %v10532_v6 = vld [vmem:[#allocation65_spill] sm:$0xff] }
 0x233   : > { %v2543_v17 = vsel %vm1631_vm0, %v7877_v0, %v10018_v4  ;;  %v2566_v36 = vadd.f32 %v2541_v59, %v7902_v14  ;;  %v8149_v21 = vsel %vm1881_vm1, %v7872_v60, %v10017_v55  ;;  %v8160_v0 = vsel %vm1881_vm1, %v7879_v22, %v10021_v25  ;;  %v10531_v59 = vld [vmem:[#allocation63_spill] sm:$0xff] }
 0x234   : > { %v2567_v45 = vadd.f32 %v2543_v17, %v7906_v11  ;;  %v8163_v14 = vmul.f32 %v10484_v3, %v1420_v46  ;;  %v8166_v60 = vmul.f32 %v10503_v52, %v1420_v46  ;;  %v2620_v55 = vadd.f32 %v10531_v59, %v2564_v40  ;;  %v10533_v17 = vld [vmem:[#allocation126_spill] sm:$0xff]  ;;  %v10534_v52 = vld [vmem:[#allocation125_spill] sm:$0xff] }
 0x235   : > { %v5440_v30 = vpop.eup %5439  ;;  %v1419_v4 = vsel %vm1403_vm3, %v1372_v44, %v1374_v47  ;;  %v8171_v9 = vadd.f32 %v10532_v6, %v2566_v36  ;;  %v2497_v24 = vadd.f32 %v10533_v17, %v8076_v62  ;;  %v2505_v25 = vmul.f32 %v10331_v29, %v1420_v46  ;;  %v1378_v36 = vpop.permute.xlu1 %1377  ;;  %v10536_v59 = vld [vmem:[#allocation110_spill] sm:$0xff] }
 0x236   : > { %10529 = vst [vmem:[#allocation53_spill] sm:$0xff] %v8163_v14  ;;  %10530 = vst [vmem:[#allocation54_spill] sm:$0xff] %v8166_v60  ;;  %v5442_v11 = vpop.eup %5441  ;;  %v10027_v33 = vrot.slane %v8163_v14, 1  ;;  %5453 = vpow2.f32 %v4895_v57  ;;  %v2496_v58 = vadd.f32 %v10534_v52, %v2480_v35  ;;  %v10535_v40 = vrot.slane %v8080_v39, 2  ;;  %v10537_v6 = vld [vmem:[#allocation66_spill] sm:$0xff]  ;;  %v8200_v14 = vpop.permute.xlu0 %1236 }
 0x237   : > { %v5444_v3 = vpop.eup %5443  ;;  %v8184_v44 = vmul.f32 %v10483_v28, %v1419_v4  ;;  %v10031_v46 = vrot.slane %v8166_v60, 2  ;;  %v2504_v57 = vmul.f32 %v10536_v59, %v1419_v4  ;;  %v2623_v52 = vadd.f32 %v10537_v6, %v2567_v45 }
 0x238   : > { %v2705_v47 = vsel %vm1881_vm1, %v7814_v49, %v10535_v40  ;;  %v2651_v62 = vsel %vm1631_vm0, %v7969_v37, %v10027_v33  ;;  %v5446_v35 = vpop.eup %5445  ;;  %v8194_v17 = vmul.f32 %v5444_v3, %v8006_v51  ;;  %v8198_v22 = vmul.f32 %v10502_v5, %v1419_v4 }
 0x239   : > { %v2677_v49 = vadd.f32 %v2651_v62, %v2621_v42  ;;  %v10028_v40 = vrot.slane %v8184_v44, 1  ;;  %v8203_v37 = vmul.f32 %v5440_v30, %v7995_v7  ;;  %v10540_v33 = vrot.slane %v8103_v54, 2 }
 0x23a   : > { %10538 = vst [vmem:[#allocation57_spill] sm:$0xff] %v8194_v17  ;;  %v8209_v6 = vadd.f32 %v2505_v25, %v2497_v24  ;;  %v1421_v3 = vsel %vm1403_vm3, %v8097_v16, %v1378_v36  ;;  %v5448_v51 = vpop.eup %5447  ;;  %v8214_v42 = vmul.f32 %v5442_v11, %v8000_v53  ;;  %v1472_v30 = vsel %vm1403_vm3, %v1378_v36, 0.0  ;;  %v10544_v25 = vld [vmem:[#allocation62_spill] sm:$0xff]  ;;  %v10545_v36 = vld [vmem:[#allocation28_spill] sm:$0xff] }
 0x23b   : > { %10539 = vst [vmem:[#allocation46_spill] sm:$0xff] %v8203_v37  ;;  %v2707_v45 = vsel %vm1881_vm1, %v7825_v18, %v10540_v33  ;;  %v2649_v7 = vsel %vm1631_vm0, %v7967_v43, %v10028_v40  ;;  %v5450_v62 = vpop.eup %5449  ;;  %v8222_v18 = vmul.f32 %v5446_v35, %v8011_v63  ;;  %v2819_v16 = vsel %vm1881_vm1, %v8036_v32, %v10031_v46  ;;  %v10546_v40 = vld [vmem:[#allocation117_spill] sm:$0xff]  ;;  %v1235_v46 = vpop.permute.xlu1 %1234  ;;  %v10550_v11 = vld [vmem:[#allocation64_spill] sm:$0xff] }
 0x23c   : > { %10541 = vst [vmem:[#allocation58_spill] sm:$0xff] %v8214_v42  ;;  %v2733_v4 = vadd.f32 %v2707_v45, %v2677_v49  ;;  %v8228_v33 = vadd.f32 %v2504_v57, %v2496_v58  ;;  %v2676_v53 = vadd.f32 %v2649_v7, %v2620_v55  ;;  %v8232_v24 = vadd.f32 %v8194_v17, %v8203_v37  ;;  %v5452_v63 = vpop.eup %5451  ;;  %v10547_v42 = vld [vmem:[#allocation118_spill] sm:$0xff]  ;;  %v10549_v7 = vld [vmem:[#allocation119_spill] sm:$0xff]  ;;  %v10551_v17 = vld [vmem:[#allocation120_spill] sm:$0xff] }
 0x23d   : > { %10542 = vst [vmem:[#allocation47_spill] sm:$0xff] %v8222_v18  ;;  %v2506_v49 = vmul.f32 %v10545_v36, %v1421_v3  ;;  %v3500_v35 = vadd.f32 1.0, %v5448_v51  ;;  %v2507_v18 = vmul.f32 %v10546_v40, %v1472_v30  ;;  %v8239_v32 = vmul.f32 %v10547_v42, %v1421_v3 }
 0x23e   : > { %10543 = vst [vmem:[#allocation55_spill] sm:$0xff] %v8232_v24  ;;  %v2789_v43 = vadd.f32 %v10544_v25, %v2733_v4  ;;  %v2732_v45 = vadd.f32 %v2705_v47, %v2676_v53  ;;  %v3501_v58 = vadd.f32 1.0, %v5450_v62  ;;  %v8247_v4 = vmul.f32 %v10549_v7, %v1472_v30  ;;  %v8249_v25 = vpop.permute.xlu0 %1240  ;;  %v10553_v24 = vld [vmem:[#allocation121_spill] sm:$0xff] }
 0x23f   : > { %10548 = vst [vmem:[#allocation56_spill] sm:$0xff] %v8239_v32  ;;  %v8244_v57 = vadd.f32 %v2506_v49, %v8123_v48  ;;  %v8253_v47 = vadd.f32 %v2507_v18, %v8130_v34  ;;  %v10036_v53 = vrot.slane %v8239_v32, 1  ;;  %v8257_v62 = vmul.f32 %v10551_v17, %v1421_v3  ;;  %v10554_v34 = vld [vmem:[#allocation33_spill] sm:$0xff] }
 0x240   : > { %v8241_v55 = vadd.f32 %v2819_v16, %v2789_v43  ;;  %v2788_v51 = vadd.f32 %v10550_v11, %v2732_v45  ;;  %v5454_v16 = vpop.eup %5453  ;;  %v3504_v43 = vadd.f32 1.0, %v5452_v63  ;;  %v10552_v48 = vrot.slane %v8198_v22, 2  ;;  %v10555_v45 = vld [vmem:[#allocation39_spill] sm:$0xff] }
 0x241   : > { %v10040_v37 = vrot.slane %v8247_v4, 1  ;;  %v8265_v60 = vmul.f32 %v10553_v24, %v1472_v30  ;;  %v2653_v3 = vsel %vm1631_vm0, %v10554_v34, %v10036_v53  ;;  %v10038_v18 = vrot.slane %v8257_v62, 2  ;;  %v10556_v34 = vld [vmem:[#allocation157_spill] sm:$0xff] }
 0x242   : > { %v2817_v49 = vsel %vm1881_vm1, %v8034_v56, %v10552_v48  ;;  %v1328_v63 = vsel %vm1258_vm2, 0.0, %v1235_v46  ;;  %v2678_v48 = vadd.f32 %v2653_v3, %v8171_v9  ;;  %5455 = vrcp.f32 %v3500_v35  ;;  %v10557_v35 = vld [vmem:[#allocation13_spill] sm:$0xff] }
 0x243   : > { %v8267_v11 = vadd.f32 %v2817_v49, %v2788_v51  ;;  %v2655_v56 = vsel %vm1631_vm0, %v10555_v45, %v10040_v37  ;;  %v10039_v30 = vrot.slane %v8265_v60, 2  ;;  %v1277_v51 = vsel %vm1258_vm2, %v1235_v46, %v8200_v14  ;;  %v8293_v45 = vpop.permute.xlu0 %1381 }
 0x244   : > { %v3505_v49 = vadd.f32 1.0, %v5454_v16  ;;  %v2679_v17 = vadd.f32 %v2655_v56, %v2623_v52  ;;  %v2821_v53 = vsel %vm1881_vm1, %v10556_v34, %v10038_v18  ;;  %5457 = vrcp.f32 %v3501_v58  ;;  %v10558_v58 = vld [vmem:[#allocation67_spill] sm:$0xff]  ;;  %v10559_v18 = vld [vmem:[#allocation68_spill] sm:$0xff] }
 0x245   : > { %v2734_v32 = vadd.f32 %v8149_v21, %v2678_v48  ;;  %v2823_v9 = vsel %vm1881_vm1, %v7928_v50, %v10039_v30  ;;  %v2524_v3 = vmul.f32 %v10449_v19, %v1328_v63  ;;  %v2484_v52 = vmul.f32 %v10523_v27, %v1328_v63 }
 0x246   : > { %v2735_v46 = vadd.f32 %v8160_v0, %v2679_v17  ;;  %v2525_v16 = vmul.f32 %v10557_v35, %v1277_v51  ;;  %v8299_v56 = vmul.f32 %v10517_v13, %v1328_v63  ;;  %v2485_v48 = vmul.f32 %v6815_v1, %v1277_v51 }
 0x247   : > { %v2790_v21 = vadd.f32 %v10558_v58, %v2734_v32  ;;  %v8303_v34 = vrot.slane %v2524_v3, 1  ;;  %v8306_v50 = vmul.f32 %v6821_v8, %v1277_v51  ;;  %5459 = vrcp.f32 %v3504_v43  ;;  %v10561_v43 = vld [vmem:[#allocation103_spill] sm:$0xff]  ;;  %v1239_v3 = vpop.permute.xlu1 %1238  ;;  %v8333_v51 = vpop.permute.xlu0 %1385 }
 0x248   : > { %v2791_v30 = vadd.f32 %v10559_v18, %v2735_v46  ;;  %v8309_v0 = vrot.slane %v2525_v16, 1  ;;  %5461 = vrcp.f32 %v3505_v49  ;;  %v10560_v32 = vrot.slane %v8039_v2, 1  ;;  %v10563_v16 = vld [vmem:[#allocation130_spill] sm:$0xff]  ;;  %v10564_v2 = vld [vmem:[#allocation131_spill] sm:$0xff] }
 0x249   : > { %v8312_v37 = vadd.f32 %v2821_v53, %v2790_v21  ;;  %v10562_v18 = vrot.slane %v10561_v43, 1  ;;  %v2500_v21 = vadd.f32 %v10563_v16, %v2484_v52  ;;  %v8330_v17 = vadd.f32 %v10564_v2, %v2485_v48 }
 0x24a   : > { %v2545_v63 = vsel %vm1631_vm0, %v10560_v32, %v8303_v34  ;;  %v8320_v58 = vadd.f32 %v2823_v9, %v2791_v30  ;;  %v10565_v9 = vrot.slane %v8299_v56, 2  ;;  %v10566_v43 = vrot.slane %v8080_v39, 2 }
 0x24b   : > { %v2547_v46 = vsel %vm1631_vm0, %v10562_v18, %v8309_v0  ;;  %v2568_v49 = vadd.f32 %v2545_v63, %v8228_v33  ;;  %v10567_v63 = vrot.slane %v8306_v50, 2  ;;  %v10568_v52 = vrot.slane %v8103_v54, 2 }
 0x24c   : > { %v2569_v32 = vadd.f32 %v2547_v46, %v8209_v6  ;;  %v2713_v33 = vsel %vm1881_vm1, %v10566_v43, %v10565_v9  ;;  %v1422_v6 = vsel %vm1403_vm3, %v8153_v38, %v8293_v45  ;;  %v10569_v46 = vld [vmem:[#allocation76_spill] sm:$0xff]  ;;  %v8355_v9 = vpop.eup %5455  ;;  %v1278_v54 = vsel %vm1258_vm2, %v8200_v14, %v1239_v3  ;;  %v10570_v38 = vld [vmem:[#allocation81_spill] sm:$0xff] }
 0x24d   : > { %v8346_v48 = vsel %vm1881_vm1, %v10568_v52, %v10567_v63  ;;  %v2508_v18 = vmul.f32 %v10536_v59, %v1422_v6  ;;  %v2624_v16 = vadd.f32 %v10569_v46, %v2568_v49  ;;  %v2636_v2 = vmul.f32 %v10483_v28, %v1422_v6 }
 0x24e   : > { %v2804_v39 = vmul.f32 %v10502_v5, %v1422_v6  ;;  %v1279_v43 = vsel %vm1258_vm2, %v1239_v3, %v8249_v25  ;;  %v1473_v63 = vsel %vm1403_vm3, %v8333_v51, 0.0  ;;  %v8364_v52 = vadd.f32 %v10570_v38, %v2569_v32  ;;  %v8366_v30 = vpop.eup %5457  ;;  %v10573_v38 = vld [vmem:[#allocation132_spill] sm:$0xff] }
 0x24f   : > { %v8368_v49 = vadd.f32 %v2508_v18, %v2500_v21  ;;  %v8370_v46 = vrot.slane %v2636_v2, 1  ;;  %v2486_v53 = vmul.f32 %v6834_v41, %v1278_v54  ;;  %v2487_v14 = vmul.f32 %v6850_v26, %v1279_v43 }
 0x250   : > { %v2824_v6 = vrot.slane %v2804_v39, 2  ;;  %v2526_v5 = vmul.f32 %v6841_v61, %v1278_v54  ;;  %v2527_v25 = vmul.f32 %v10328_v10, %v1279_v43  ;;  %v8377_v3 = vmul.f32 %v6847_v31, %v1278_v54  ;;  %v10574_v54 = vld [vmem:[#allocation133_spill] sm:$0xff] }
 0x251   : > { %v2572_v32 = vadd.f32 %v8303_v34, %v8368_v49  ;;  %v10571_v21 = vrot.slane %v8184_v44, 1  ;;  %v10572_v2 = vrot.slane %v8198_v22, 2  ;;  %v2502_v28 = vadd.f32 %v10573_v38, %v2486_v53  ;;  %v8389_v59 = vpop.eup %5459  ;;  %v10575_v44 = vld [vmem:[#allocation71_spill] sm:$0xff] }
 0x252   : > { %v2503_v26 = vadd.f32 %v10574_v54, %v2487_v14  ;;  %v8392_v31 = vrot.slane %v2526_v5, 1  ;;  %v8394_v8 = vrot.slane %v2527_v25, 1  ;;  %v8396_v41 = vpop.eup %5461  ;;  %v10057_v22 = vrot.slane %v8377_v3, 2 }
 0x253   : > { %v2657_v18 = vsel %vm1631_vm0, %v10571_v21, %v8370_v46  ;;  %v2825_v39 = vsel %vm1881_vm1, %v10572_v2, %v2824_v6  ;;  %v2628_v61 = vadd.f32 %v10575_v44, %v2572_v32  ;;  %v2695_v21 = vmul.f32 %v10330_v23, %v1279_v43 }
 0x254   : > { %v2680_v10 = vadd.f32 %v2657_v18, %v2624_v16  ;;  %v2511_v2 = vmul.f32 %v10546_v40, %v1473_v63  ;;  %v10576_v16 = vrot.slane %v8112_v12, 1  ;;  %v10577_v5 = vrot.slane %v8116_v15, 1 }
 0x255   : > { %v2639_v18 = vmul.f32 %v10549_v7, %v1473_v63  ;;  %v2684_v32 = vadd.f32 %v8370_v46, %v2628_v61  ;;  %v2718_v15 = vrot.slane %v2695_v21, 2  ;;  %v10580_v61 = vrot.slane %v8299_v56, 2  ;;  %v10582_v7 = vld [vmem:[#allocation82_spill] sm:$0xff] }
 0x256   : > { %v2736_v53 = vadd.f32 %v2713_v33, %v2680_v10  ;;  %v2549_v14 = vsel %vm1631_vm0, %v10576_v16, %v8392_v31  ;;  %v2551_v25 = vsel %vm1631_vm0, %v10577_v5, %v8394_v8  ;;  %v10578_v10 = vrot.slane %v8119_v20, 2  ;;  %v10579_v33 = vld [vmem:[#allocation77_spill] sm:$0xff]  ;;  %v1384_v5 = vpop.permute.xlu1 %1383 }
 0x257   : > { %v2570_v43 = vadd.f32 %v2549_v14, %v8244_v57  ;;  %v2571_v38 = vadd.f32 %v2551_v25, %v8253_v47  ;;  %v8422_v44 = vadd.f32 %v2511_v2, %v2503_v26  ;;  %v8424_v16 = vrot.slane %v2639_v18, 1  ;;  %v10581_v14 = vld [vmem:[#allocation79_spill] sm:$0xff]  ;;  %v10586_v2 = vld [vmem:[#allocation69_spill] sm:$0xff] }
 0x258   : > { %v8419_v12 = vsel %vm1881_vm1, %v10578_v10, %v10057_v22  ;;  %v2792_v54 = vadd.f32 %v10579_v33, %v2736_v53  ;;  %v2740_v57 = vadd.f32 %v10580_v61, %v2684_v32  ;;  %v2807_v25 = vmul.f32 %v10553_v24, %v1473_v63  ;;  %v10583_v10 = vld [vmem:[#allocation124_spill] sm:$0xff] }
 0x259   : > { %v2627_v47 = vadd.f32 %v10581_v14, %v2571_v38  ;;  %v2626_v20 = vadd.f32 %v10582_v7, %v2570_v43  ;;  %v10584_v22 = vrot.slane %v10583_v10, 2  ;;  %v2575_v26 = vadd.f32 %v8394_v8, %v8422_v44  ;;  %v10588_v43 = vld [vmem:[#allocation73_spill] sm:$0xff] }
 0x25a   : > { %v2848_v40 = vadd.f32 %v2825_v39, %v2792_v54  ;;  %v10585_v21 = vrot.slane %v8247_v4, 1  ;;  %v10587_v18 = vrot.slane %v10586_v2, 2  ;;  %v2830_v63 = vrot.slane %v2807_v25, 2 }
 0x25b   : > { %v2719_v53 = vsel %vm1881_vm1, %v10584_v22, %v2718_v15  ;;  %v1423_v7 = vsel %vm1403_vm3, %v8293_v45, %v1384_v5  ;;  %v2631_v33 = vadd.f32 %v10588_v43, %v2575_v26  ;;  %v1424_v22 = vsel %vm1403_vm3, %v1384_v5, %v8333_v51  ;;  %v10591_v51 = vld [vmem:[#allocation16_spill] sm:$0xff] }
 0x25c   : > { %v2663_v56 = vsel %vm1631_vm0, %v10585_v21, %v8424_v16  ;;  %v2796_v32 = vadd.f32 %v10587_v18, %v2740_v57  ;;  %v3274_v39 = vrot.slane %v2848_v40, 4  ;;  %v2509_v54 = vmul.f32 %v10331_v29, %v1423_v7 }
 0x25d   : > { %v2683_v38 = vadd.f32 %v2663_v56, %v2627_v47  ;;  %v10589_v14 = vrot.slane %v8265_v60, 2  ;;  %v2510_v57 = vmul.f32 %v10545_v36, %v1424_v22  ;;  %v10590_v47 = vrot.slane %v8267_v11, 4  ;;  %v10593_v60 = vld [vmem:[#allocation80_spill] sm:$0xff] }
 0x25e   : > { %v2852_v61 = vadd.f32 %v2824_v6, %v2796_v32  ;;  %v2687_v40 = vadd.f32 %v8424_v16, %v2631_v33  ;;  %v8457_v25 = vadd.f32 %v2509_v54, %v8330_v17  ;;  %v2637_v5 = vmul.f32 %v10591_v51, %v1423_v7  ;;  %v10592_v6 = vld [vmem:[#allocation115_spill] sm:$0xff] }
 0x25f   : > { %v2739_v4 = vadd.f32 %v2719_v53, %v2683_v38  ;;  %v2831_v10 = vsel %vm1881_vm1, %v10589_v14, %v2830_v63  ;;  %v3275_v45 = vsel %vm3272_vm4, %v10590_v47, %v3274_v39  ;;  %v8464_v56 = vadd.f32 %v2510_v57, %v2502_v28  ;;  %v10594_v28 = vld [vmem:[#allocation70_spill] sm:$0xff]  ;;  %v10597_v57 = vld [vmem:[#allocation53_spill] sm:$0xff] }
 0x260   : > { %v3285_v26 = vrot.slane %v2852_v61, 4  ;;  %v8461_v53 = vadd.f32 %v10592_v6, %v3275_v45  ;;  %v2743_v2 = vadd.f32 %v2718_v15, %v2687_v40  ;;  %v2573_v11 = vadd.f32 %v8309_v0, %v8457_v25  ;;  %v10599_v40 = vld [vmem:[#allocation78_spill] sm:$0xff] }
 0x261   : > { %v2795_v21 = vadd.f32 %v10593_v60, %v2739_v4  ;;  %v2638_v18 = vmul.f32 %v10547_v42, %v1424_v22  ;;  %v8469_v32 = vrot.slane %v2637_v5, 1  ;;  %v2574_v33 = vadd.f32 %v8392_v31, %v8464_v56  ;;  %v10596_v4 = vld [vmem:[#allocation74_spill] sm:$0xff] }
 0x262   : > { %v3286_v17 = vsel %vm3272_vm4, %v3274_v39, %v3285_v26  ;;  %v4898_v38 = vmul.f32 -1.442695, %v8461_v53  ;;  %v10595_v15 = vrot.slane %v10594_v28, 2  ;;  %v2629_v14 = vadd.f32 %v10596_v4, %v2573_v11 }
 0x263   : > { %v2851_v43 = vadd.f32 %v2831_v10, %v2795_v21  ;;  %v8476_v54 = vadd.f32 %v10592_v6, %v3286_v17  ;;  %v10598_v47 = vrot.slane %v10597_v57, 1  ;;  %v2630_v10 = vadd.f32 %v10599_v40, %v2574_v33  ;;  %v8491_v17 = vpop.permute.xlu0 %1246 }
 0x264   : > { %v2799_v61 = vadd.f32 %v10595_v15, %v2743_v2  ;;  %5463 = vpow2.f32 %v4898_v38  ;;  %v8486_v5 = vrot.slane %v2638_v18, 1  ;;  %v2685_v2 = vadd.f32 %v8469_v32, %v2629_v14  ;;  %v10601_v38 = vld [vmem:[#allocation56_spill] sm:$0xff]  ;;  %v10603_v15 = vld [vmem:[#allocation114_spill] sm:$0xff] }
 0x265   : > { %v2659_v45 = vsel %vm1631_vm0, %v10598_v47, %v8469_v32  ;;  %v3283_v39 = vrot.slane %v2851_v43, 4  ;;  %v4902_v26 = vmul.f32 -1.442695, %v8476_v54  ;;  %v10600_v11 = vrot.slane %v8320_v58, 4 }
 0x266   : > { %v2855_v60 = vadd.f32 %v2830_v63, %v2799_v61  ;;  %v2681_v21 = vadd.f32 %v2659_v45, %v8364_v52  ;;  %v10602_v43 = vrot.slane %v10601_v38, 1  ;;  %v2686_v18 = vadd.f32 %v8486_v5, %v2630_v10  ;;  %v10604_v52 = vld [vmem:[#allocation140_spill] sm:$0xff] }
 0x267   : > { %v3284_v28 = vsel %vm3272_vm4, %v10600_v11, %v3283_v39  ;;  %v2805_v4 = vmul.f32 %v10603_v15, %v1423_v7  ;;  %5465 = vpow2.f32 %v4902_v26  ;;  %v10606_v58 = vrot.slane %v8306_v50, 2  ;;  %v10608_v11 = vld [vmem:[#allocation120_spill] sm:$0xff] }
 0x268   : > { %v2661_v33 = vsel %vm1631_vm0, %v10602_v43, %v8486_v5  ;;  %v3291_v63 = vrot.slane %v2855_v60, 4  ;;  %v8503_v61 = vadd.f32 %v10604_v52, %v3284_v28  ;;  %v2737_v57 = vadd.f32 %v8346_v48, %v2681_v21  ;;  %v1243_v43 = vpop.permute.xlu1 %1242  ;;  %v10609_v48 = vld [vmem:[#allocation83_spill] sm:$0xff]  ;;  %v10610_v50 = vld [vmem:[#allocation72_spill] sm:$0xff] }
 0x269   : > { %v2682_v14 = vadd.f32 %v2661_v33, %v2626_v20  ;;  %v2741_v47 = vadd.f32 %v10606_v58, %v2685_v2  ;;  %v10607_v45 = vrot.slane %v8377_v3, 2  ;;  %v2806_v38 = vmul.f32 %v10608_v11, %v1424_v22  ;;  %v10612_v3 = vld [vmem:[#allocation75_spill] sm:$0xff]  ;;  %v10614_v22 = vld [vmem:[#allocation84_spill] sm:$0xff] }
 0x26a   : > { %10605 = vst [vmem:[#allocation48_spill] sm:$0xff] %v8503_v61  ;;  %v3292_v10 = vsel %vm3272_vm4, %v3283_v39, %v3291_v63  ;;  %v4901_v7 = vmul.f32 -1.442695, %v8503_v61  ;;  %v2826_v60 = vrot.slane %v2805_v4, 2  ;;  %v2793_v21 = vadd.f32 %v10609_v48, %v2737_v57  ;;  %v10615_v39 = vld [vmem:[#allocation54_spill] sm:$0xff]  ;;  %v8526_v4 = vpop.permute.xlu0 %1391 }
 0x26b   : > { %v2742_v40 = vadd.f32 %v10607_v45, %v2686_v18  ;;  %v2738_v26 = vadd.f32 %v8419_v12, %v2682_v14  ;;  %v8515_v20 = vadd.f32 %v10604_v52, %v3292_v10  ;;  %v10611_v2 = vrot.slane %v10610_v50, 2  ;;  %v10651_v52 = vld [vmem:[#allocation142_spill] sm:$0xff] }
 0x26c   : > { %v10613_v33 = vrot.slane %v10612_v3, 2  ;;  %5467 = vpow2.f32 %v4901_v7  ;;  %v10616_v63 = vrot.slane %v10615_v39, 2  ;;  %v2828_v12 = vrot.slane %v2806_v38, 2 }
 0x26d   : > { %v2797_v28 = vadd.f32 %v10611_v2, %v2741_v47  ;;  %v2794_v58 = vadd.f32 %v10614_v22, %v2738_v26  ;;  %v4905_v14 = vmul.f32 -1.442695, %v8515_v20  ;;  %v1329_v48 = vsel %vm1258_vm2, 0.0, %v1243_v43  ;;  %v10617_v47 = vld [vmem:[#allocation123_spill] sm:$0xff] }
 0x26e   : > { %v2798_v18 = vadd.f32 %v10613_v33, %v2742_v40  ;;  %v2827_v45 = vsel %vm1881_vm1, %v10616_v63, %v2826_v60  ;;  %v8532_v50 = vmul.f32 %v8355_v9, %v10617_v47  ;;  %v10619_v40 = vrot.slane %v8257_v62, 2  ;;  %v5464_v38 = vpop.eup %5463 }
 0x26f   : > { %v2849_v10 = vadd.f32 %v2827_v45, %v2793_v21  ;;  %v2853_v57 = vadd.f32 %v2826_v60, %v2797_v28  ;;  %v8538_v2 = vmul.f32 %v10449_v19, %v1329_v48  ;;  %5469 = vpow2.f32 %v4905_v14  ;;  %v8540_v60 = vpop.permute.xlu1 %1387  ;;  %v10620_v28 = vld [vmem:[#allocation22_spill] sm:$0xff] }
 0x270   : > { %10618 = vst [vmem:[#allocation49_spill] sm:$0xff] %v8532_v50  ;;  %v2829_v7 = vsel %vm1881_vm1, %v10619_v40, %v2828_v12  ;;  %v2854_v26 = vadd.f32 %v2828_v12, %v2798_v18  ;;  %v8544_v22 = vmul.f32 %v8389_v59, %v10620_v28  ;;  %v3508_v9 = vadd.f32 1.0, %v5464_v38  ;;  %v1245_v40 = vpop.permute.xlu0 %1244  ;;  %v10626_v38 = vld [vmem:[#allocation137_spill] sm:$0xff] }
 0x271   : > { %v2850_v3 = vadd.f32 %v2829_v7, %v2794_v58  ;;  %v3277_v33 = vrot.slane %v2849_v10, 4  ;;  %v3287_v21 = vrot.slane %v2853_v57, 4  ;;  %v10058_v62 = vrot.slane %v8538_v2, 1  ;;  %v5466_v14 = vpop.eup %5465  ;;  %v10623_v10 = vld [vmem:[#allocation116_spill] sm:$0xff] }
 0x272   : > { %10621 = vst [vmem:[#allocation36_spill] sm:$0xff] %v8544_v22  ;;  %v3289_v39 = vrot.slane %v2854_v26, 4  ;;  %v3279_v18 = vrot.slane %v8312_v37, 4  ;;  %v10622_v63 = vrot.slane %v8241_v55, 4  ;;  %5471 = vrcp.f32 %v3508_v9 }
 0x273   : > { %v3280_v12 = vrot.slane %v2850_v3, 4  ;;  %v3288_v58 = vsel %vm3272_vm4, %v3277_v33, %v3287_v21  ;;  %v2856_v47 = vmul.f32 %v10523_v27, %v1329_v48  ;;  %v3512_v7 = vadd.f32 1.0, %v5466_v14 }
 0x274   : > { %v3278_v45 = vsel %vm3272_vm4, %v10622_v63, %v3277_v33  ;;  %v8556_v59 = vadd.f32 %v10623_v10, %v3288_v58  ;;  %v2913_v26 = vsel %vm1631_vm0, %v8303_v34, %v10058_v62  ;;  %v8574_v9 = vmul.f32 %v10517_v13, %v1329_v48  ;;  %v1249_v34 = vpop.permute.xlu1 %1248 }
 0x275   : > { %v8553_v57 = vadd.f32 %v10623_v10, %v3278_v45  ;;  %v3281_v37 = vsel %vm3272_vm4, %v3279_v18, %v3280_v12  ;;  %v3290_v55 = vsel %vm3272_vm4, %v3280_v12, %v3289_v39  ;;  %5473 = vrcp.f32 %v3512_v7  ;;  %v10629_v45 = vld [vmem:[#allocation34_spill] sm:$0xff] }
 0x276   : > { %10625 = vst [vmem:[#allocation50_spill] sm:$0xff] %v8556_v59  ;;  %v8566_v3 = vadd.f32 %v10626_v38, %v3281_v37  ;;  %v8569_v33 = vadd.f32 %v10626_v38, %v3290_v55  ;;  %v4903_v28 = vmul.f32 -1.442695, %v8556_v59  ;;  %v1280_v39 = vsel %vm1258_vm2, %v1243_v43, %v1245_v40  ;;  %v5468_v63 = vpop.eup %5467  ;;  %v10646_v10 = vld [vmem:[#allocation110_spill] sm:$0xff] }
 0x277   : > { %10624 = vst [vmem:[#allocation26_spill] sm:$0xff] %v8553_v57  ;;  %v4899_v21 = vmul.f32 -1.442695, %v8553_v57  ;;  %v1281_v18 = vsel %vm1258_vm2, %v1245_v40, %v8491_v17  ;;  %v8581_v12 = vmul.f32 %v8366_v30, %v10629_v45  ;;  %v2940_v48 = vadd.f32 %v2913_v26, %v8368_v49  ;;  %v10631_v40 = vld [vmem:[#allocation30_spill] sm:$0xff]  ;;  %v10633_v30 = vld [vmem:[#allocation12_spill] sm:$0xff]  ;;  %v10635_v49 = vld [vmem:[#allocation135_spill] sm:$0xff] }
 0x278   : > { %10627 = vst [vmem:[#allocation51_spill] sm:$0xff] %v8566_v3  ;;  %10628 = vst [vmem:[#allocation59_spill] sm:$0xff] %v8569_v33  ;;  %v4900_v58 = vmul.f32 -1.442695, %v8566_v3  ;;  %v4904_v14 = vmul.f32 -1.442695, %v8569_v33  ;;  %v2857_v7 = vmul.f32 %v6815_v1, %v1280_v39  ;;  %v8588_v43 = vmul.f32 %v10557_v35, %v1280_v39 }
 0x279   : > { %10630 = vst [vmem:[#allocation60_spill] sm:$0xff] %v8581_v12  ;;  %5475 = vpow2.f32 %v4899_v21  ;;  %v8592_v37 = vmul.f32 %v8396_v41, %v10631_v40  ;;  %v3511_v55 = vadd.f32 1.0, %v5468_v63  ;;  %v8595_v21 = vmul.f32 %v10633_v30, %v1281_v18  ;;  %v5470_v45 = vpop.eup %5469  ;;  %v8604_v12 = vpop.permute.xlu0 %1254  ;;  %v10636_v63 = vld [vmem:[#allocation14_spill] sm:$0xff]  ;;  %v10644_v33 = vld [vmem:[#allocation85_spill] sm:$0xff] }
 0x27a   : > { %5477 = vpow2.f32 %v4903_v28  ;;  %v8599_v28 = vadd.f32 %v8544_v22, %v8532_v50  ;;  %v2872_v26 = vadd.f32 %v10635_v49, %v2856_v47  ;;  %v10066_v61 = vrot.slane %v8588_v43, 1  ;;  %v10638_v49 = vld [vmem:[#allocation15_spill] sm:$0xff]  ;;  %v1390_v50 = vpop.permute.xlu1 %1389 }
 0x27b   : > { %10632 = vst [vmem:[#allocation52_spill] sm:$0xff] %v8592_v37  ;;  %5479 = vpow2.f32 %v4900_v58  ;;  %v3515_v41 = vadd.f32 1.0, %v5470_v45  ;;  %v2858_v58 = vmul.f32 %v10636_v63, %v1281_v18  ;;  %v10069_v40 = vrot.slane %v8595_v21, 1  ;;  %v10637_v37 = vld [vmem:[#allocation138_spill] sm:$0xff] }
 0x27c   : > { %10634 = vst [vmem:[#allocation9_spill] sm:$0xff] %v8599_v28  ;;  %5481 = vpow2.f32 %v4904_v14  ;;  %v2873_v57 = vadd.f32 %v10637_v37, %v2857_v7  ;;  %v2915_v22 = vsel %vm1631_vm0, %v8309_v0, %v10066_v61  ;;  %v1282_v47 = vsel %vm1258_vm2, %v8491_v17, %v1249_v34  ;;  %v5472_v28 = vpop.eup %5471  ;;  %v10639_v37 = vld [vmem:[#allocation105_spill] sm:$0xff]  ;;  %v10640_v0 = vld [vmem:[#allocation106_spill] sm:$0xff]  ;;  %v10641_v17 = vld [vmem:[#allocation107_spill] sm:$0xff] }
 0x27d   : > { %v2996_v62 = vadd.f32 %v10638_v49, %v2940_v48  ;;  %5483 = vrcp.f32 %v3511_v55  ;;  %v2917_v14 = vsel %vm1631_vm0, %v8392_v31, %v10069_v40  ;;  %v2941_v7 = vadd.f32 %v2915_v22, %v8457_v25  ;;  %v10642_v48 = vld [vmem:[#allocation108_spill] sm:$0xff] }
 0x27e   : > { %v8622_v45 = vmul.f32 %v10639_v37, %v1280_v39  ;;  %5485 = vrcp.f32 %v3515_v41  ;;  %v8625_v61 = vmul.f32 %v10640_v0, %v1281_v18  ;;  %v2859_v34 = vmul.f32 %v10641_v17, %v1282_v47  ;;  %v10645_v39 = vld [vmem:[#allocation141_spill] sm:$0xff] }
 0x27f   : > { %v8629_v49 = vmul.f32 %v10642_v48, %v1282_v47  ;;  %v8632_v55 = vmul.f32 %v10330_v23, %v1282_v47  ;;  %v2997_v3 = vadd.f32 %v10644_v33, %v2941_v7  ;;  %v1425_v31 = vsel %vm1403_vm3, %v8540_v60, %v1390_v50  ;;  %v5474_v22 = vpop.eup %5473  ;;  %v8645_v47 = vpop.permute.xlu0 %1399  ;;  %v10649_v7 = vld [vmem:[#allocation112_spill] sm:$0xff] }
 0x280   : > { %v1426_v25 = vsel %vm1403_vm3, %v1390_v50, %v8526_v4  ;;  %v8640_v18 = vadd.f32 %v10645_v39, %v2858_v58  ;;  %v2942_v41 = vadd.f32 %v2917_v14, %v8464_v56  ;;  %v2880_v6 = vmul.f32 %v10646_v10, %v1425_v31  ;;  %10647 = vst [vmem:[#allocation32_spill] sm:$0xff] %v8645_v47  ;;  %v10653_v14 = vld [vmem:[#allocation113_spill] sm:$0xff] }
 0x281   : > { %10643 = vst [vmem:[#allocation35_spill] sm:$0xff] %v8629_v49  ;;  %v8648_v33 = vmul.f32 %v5474_v22, %v8476_v54  ;;  %v2881_v60 = vmul.f32 %v10331_v29, %v1426_v25  ;;  %v8652_v50 = vmul.f32 %v10649_v7, %v1425_v31  ;;  %v8655_v58 = vmul.f32 %v10591_v51, %v1426_v25 }
 0x282   : > { %v8658_v56 = vmul.f32 %v5472_v28, %v8461_v53  ;;  %v2875_v38 = vadd.f32 %v10651_v52, %v2859_v34  ;;  %v10652_v29 = vrot.slane %v8629_v49, 1  ;;  %v8669_v53 = vadd.f32 %v2880_v6, %v2872_v26  ;;  %v1394_v52 = vpop.permute.xlu1 %1393 }
 0x283   : > { %v5476_v59 = vpop.eup %5475  ;;  %10648 = vst [vmem:[#allocation122_spill] sm:$0xff] %v8648_v33  ;;  %v10082_v10 = vrot.slane %v8652_v50, 1  ;;  %v10081_v28 = vrot.slane %v8655_v58, 1  ;;  %v8673_v40 = vmul.f32 %v10653_v14, %v1425_v31  ;;  %v8679_v49 = vadd.f32 %v2881_v60, %v2873_v57 }
 0x284   : > { %v5478_v39 = vpop.eup %5477  ;;  %10650 = vst [vmem:[#allocation27_spill] sm:$0xff] %v8658_v56  ;;  %v3509_v22 = vadd.f32 1.0, %v5476_v59  ;;  %v2919_v7 = vsel %vm1631_vm0, %v8394_v8, %v10652_v29  ;;  %v8677_v59 = vadd.f32 %v8648_v33, %v8658_v56  ;;  %v10655_v29 = vld [vmem:[#allocation86_spill] sm:$0xff]  ;;  %v8691_v33 = vpop.permute.xlu0 %1395  ;;  %v8696_v56 = vmul.f32 %v10603_v15, %v1426_v25 }
 0x285   : > { %v5480_v54 = vpop.eup %5479  ;;  %v3513_v47 = vadd.f32 1.0, %v5478_v39  ;;  %v3025_v8 = vsel %vm1631_vm0, %v8370_v46, %v10082_v10  ;;  %v2998_v6 = vadd.f32 %v10655_v29, %v2942_v41  ;;  %v2943_v39 = vadd.f32 %v2919_v7, %v8422_v44 }
 0x286   : > { %v5482_v34 = vpop.eup %5481  ;;  %10654 = vst [vmem:[#allocation8_spill] sm:$0xff] %v8677_v59  ;;  %v3510_v26 = vadd.f32 1.0, %v5480_v54  ;;  %v3027_v31 = vsel %vm1631_vm0, %v8469_v32, %v10081_v28  ;;  %v3052_v51 = vadd.f32 %v3025_v8, %v2996_v62  ;;  %5487 = vrcp.f32 %v3509_v22  ;;  %v10662_v28 = vld [vmem:[#allocation119_spill] sm:$0xff] }
 0x287   : > { %v8693_v57 = vpop.eup %5483  ;;  %v3053_v60 = vadd.f32 %v3027_v31, %v2997_v3  ;;  %v1427_v46 = vsel %vm1403_vm3, %v8526_v4, %v1394_v52  ;;  %v3514_v44 = vadd.f32 1.0, %v5482_v34  ;;  %5489 = vrcp.f32 %v3513_v47  ;;  %v10659_v4 = vld [vmem:[#allocation88_spill] sm:$0xff]  ;;  %v10661_v47 = vld [vmem:[#allocation117_spill] sm:$0xff]  ;;  %v10665_v22 = vld [vmem:[#allocation143_spill] sm:$0xff] }
 0x288   : > { %10656 = vst [vmem:[#allocation104_spill] sm:$0xff] %v8693_v57  ;;  %v5486_v41 = vpop.eup %5485  ;;  %v10657_v7 = vrot.slane %v8574_v9, 2  ;;  %v1474_v32 = vsel %vm1403_vm3, %v1394_v52, 0.0  ;;  %v10658_v62 = vrot.slane %v8622_v45, 2  ;;  %v2882_v3 = vmul.f32 %v10545_v36, %v1427_v46  ;;  %v1251_v52 = vpop.permute.xlu1 %1250 }
 0x289   : > { %v8708_v25 = vmul.f32 %v10547_v42, %v1427_v46  ;;  %5491 = vrcp.f32 %v3510_v26  ;;  %v10660_v29 = vrot.slane %v10659_v4, 2  ;;  %v2883_v31 = vmul.f32 %v10661_v47, %v1474_v32 }
 0x28a   : > { %v3104_v54 = vadd.f32 %v10657_v7, %v3052_v51  ;;  %v3105_v8 = vadd.f32 %v10658_v62, %v3053_v60  ;;  %v8714_v51 = vmul.f32 %v10662_v28, %v1474_v32  ;;  %v10663_v7 = vld [vmem:[#allocation89_spill] sm:$0xff]  ;;  %v10087_v62 = vrot.slane %v8696_v56, 2 }
 0x28b   : > { %v10664_v10 = vrot.slane %v10663_v7, 2  ;;  %v2999_v57 = vadd.f32 %v10665_v22, %v2943_v39  ;;  %v10086_v59 = vrot.slane %v8708_v25, 1  ;;  %v8722_v26 = vmul.f32 %v5486_v41, %v8515_v20 }
 0x28c   : > { %v3156_v34 = vadd.f32 %v10660_v29, %v3104_v54  ;;  %5493 = vrcp.f32 %v3514_v44  ;;  %v10085_v54 = vrot.slane %v8714_v51, 1  ;;  %v8726_v4 = vmul.f32 %v10608_v11, %v1427_v46  ;;  %v1253_v29 = vpop.permute.xlu0 %1252 }
 0x28d   : > { %v3157_v60 = vadd.f32 %v10664_v10, %v3105_v8  ;;  %10666 = vst [vmem:[#allocation102_spill] sm:$0xff] %v8722_v26  ;;  %v2890_v15 = vadd.f32 %v2882_v3, %v8640_v18  ;;  %v3029_v10 = vsel %vm1631_vm0, %v8486_v5, %v10086_v59  ;;  %v8734_v39 = vmul.f32 %v10553_v24, %v1474_v32 }
 0x28e   : > { %v1330_v20 = vsel %vm1258_vm2, 0.0, %v1251_v52  ;;  %v10667_v41 = vrot.slane %v8673_v40, 2  ;;  %v8741_v8 = vadd.f32 %v2883_v31, %v2875_v38  ;;  %v3031_v18 = vsel %vm1631_vm0, %v8424_v16, %v10085_v54  ;;  %v10673_v54 = vld [vmem:[#allocation136_spill] sm:$0xff] }
 0x28f   : > { %v3054_v46 = vadd.f32 %v3029_v10, %v2998_v6  ;;  %v3055_v22 = vadd.f32 %v3031_v18, %v2999_v57  ;;  %v8748_v5 = vmul.f32 %v10449_v19, %v1330_v20  ;;  %v8751_v32 = vmul.f32 %v10517_v13, %v1330_v20  ;;  %v10671_v18 = vld [vmem:[#allocation87_spill] sm:$0xff] }
 0x290   : > { %v8739_v44 = vadd.f32 %v10667_v41, %v3156_v34  ;;  %v1283_v3 = vsel %vm1258_vm2, %v1251_v52, %v1253_v29  ;;  %v10668_v34 = vrot.slane %v8625_v61, 2  ;;  %v10092_v38 = vrot.slane %v8726_v4, 2  ;;  %v8760_v6 = vpop.eup %5487 }
 0x291   : > { %v2860_v31 = vmul.f32 %v10523_v27, %v1330_v20  ;;  %v1284_v16 = vsel %vm1258_vm2, %v1253_v29, %v8604_v12  ;;  %10669 = vst [vmem:[#allocation127_spill] sm:$0xff] %v8760_v6  ;;  %v10670_v19 = vrot.slane %v8632_v55, 2  ;;  %v10091_v10 = vrot.slane %v8748_v5, 1  ;;  %v8767_v41 = vpop.eup %5489 }
 0x292   : > { %v3106_v7 = vadd.f32 %v10668_v34, %v3054_v46  ;;  %v10088_v52 = vrot.slane %v8751_v32, 2  ;;  %v10672_v46 = vrot.slane %v10671_v18, 2  ;;  %v2861_v27 = vmul.f32 %v6815_v1, %v1283_v3  ;;  %v1257_v18 = vpop.permute.xlu1 %1256 }
 0x293   : > { %v3107_v57 = vadd.f32 %v10670_v19, %v3055_v22  ;;  %v2862_v29 = vmul.f32 %v10636_v63, %v1284_v16  ;;  %v8774_v20 = vmul.f32 %v10557_v35, %v1283_v3  ;;  %v8778_v22 = vadd.f32 %v10087_v62, %v3157_v60  ;;  %v8788_v63 = vpop.eup %5491  ;;  %v10677_v60 = vld [vmem:[#allocation144_spill] sm:$0xff] }
 0x294   : > { %v3158_v34 = vadd.f32 %v10672_v46, %v3106_v7  ;;  %v10674_v59 = vrot.slane %v10673_v54, 2  ;;  %v10675_v7 = vrot.slane %v8538_v2, 1  ;;  %10676 = vst [vmem:[#allocation128_spill] sm:$0xff] %v8788_v63  ;;  %v8795_v46 = vadd.f32 %v10677_v60, %v2860_v31 }
 0x295   : > { %v10679_v54 = vrot.slane %v8734_v39, 2  ;;  %v10089_v31 = vrot.slane %v8774_v20, 1  ;;  %v10696_v63 = vrot.slane %v8708_v25, 1 }
 0x296   : > { %v3159_v13 = vadd.f32 %v10674_v59, %v3107_v57  ;;  %v2921_v1 = vsel %vm1631_vm0, %v10675_v7, %v10091_v10  ;;  %v8792_v35 = vadd.f32 %v10092_v38, %v3158_v34  ;;  %v10678_v59 = vrot.slane %v8574_v9, 2  ;;  %v10680_v7 = vld [vmem:[#allocation145_spill] sm:$0xff]  ;;  %v8814_v60 = vpop.eup %5493  ;;  %v1398_v10 = vpop.permute.xlu1 %1397  ;;  %v10694_v38 = vld [vmem:[#allocation148_spill] sm:$0xff] }
 0x297   : > { %v2944_v19 = vadd.f32 %v2921_v1, %v8669_v53  ;;  %v8810_v62 = vadd.f32 %v10680_v7, %v2861_v27  ;;  %v2902_v34 = vmul.f32 %v10633_v30, %v1284_v16  ;;  %10681 = vst [vmem:[#allocation61_spill] sm:$0xff] %v8814_v60  ;;  %v10682_v53 = vld [vmem:[#allocation146_spill] sm:$0xff]  ;;  %v8818_v9 = vmul.f32 %v10639_v37, %v1283_v3 }
 0x298   : > { %v8803_v2 = vsel %vm1881_vm1, %v10678_v59, %v10088_v52  ;;  %v8807_v57 = vadd.f32 %v10679_v54, %v3159_v13  ;;  %v2878_v1 = vadd.f32 %v10682_v53, %v2862_v29  ;;  %v8821_v59 = vmul.f32 %v10640_v0, %v1284_v16  ;;  %v10685_v52 = vld [vmem:[#allocation147_spill] sm:$0xff] }
 0x299   : > { %v1285_v13 = vsel %vm1258_vm2, %v8604_v12, %v1257_v18  ;;  %v10683_v30 = vrot.slane %v8588_v43, 1  ;;  %v2924_v7 = vrot.slane %v2902_v34, 1  ;;  %v10090_v3 = vrot.slane %v8818_v9, 2  ;;  %v1402_v12 = vpop.permute.xlu0 %1401 }
 0x29a   : > { %v2863_v29 = vmul.f32 %v10641_v17, %v1285_v13  ;;  %v3088_v0 = vrot.slane %v8821_v59, 2  ;;  %v2903_v16 = vmul.f32 %v10642_v48, %v1285_v13  ;;  %v10684_v18 = vrot.slane %v8595_v21, 1 }
 0x29b   : > { %v2923_v54 = vsel %vm1631_vm0, %v10683_v30, %v10089_v31  ;;  %v3071_v34 = vmul.f32 %v10330_v23, %v1285_v13  ;;  %v10686_v37 = vrot.slane %v8622_v45, 2  ;;  %v10687_v48 = vrot.slane %v8625_v61, 2  ;;  %v10688_v31 = vld [vmem:[#allocation32_spill] sm:$0xff]  ;;  %v10689_v23 = vld [vmem:[#allocation98_spill] sm:$0xff]  ;;  %v10690_v13 = vld [vmem:[#allocation35_spill] sm:$0xff] }
 0x29c   : > { %v2925_v53 = vsel %vm1631_vm0, %v10684_v18, %v2924_v7  ;;  %v2945_v43 = vadd.f32 %v2923_v54, %v8679_v49  ;;  %v2879_v30 = vadd.f32 %v10685_v52, %v2863_v29  ;;  %v2926_v27 = vrot.slane %v2903_v16, 1 }
 0x29d   : > { %v2946_v17 = vadd.f32 %v2925_v53, %v2890_v15  ;;  %v8847_v59 = vsel %vm1881_vm1, %v10686_v37, %v10090_v3  ;;  %v3089_v21 = vsel %vm1881_vm1, %v10687_v48, %v3088_v0  ;;  %v3090_v18 = vrot.slane %v3071_v34, 2  ;;  %v10692_v37 = vld [vmem:[#allocation96_spill] sm:$0xff] }
 0x29e   : > { %v1430_v49 = vsel %vm1403_vm3, %v10688_v31, %v1402_v12  ;;  %v1475_v52 = vsel %vm1403_vm3, %v1402_v12, 0.0  ;;  %v8856_v15 = vadd.f32 %v10689_v23, %v2944_v19  ;;  %v10691_v54 = vrot.slane %v10690_v13, 1 }
 0x29f   : > { %v2886_v29 = vmul.f32 %v10545_v36, %v1430_v49  ;;  %v2887_v61 = vmul.f32 %v10661_v47, %v1475_v52  ;;  %v3002_v53 = vadd.f32 %v10692_v37, %v2946_v17  ;;  %v10693_v34 = vrot.slane %v8632_v55, 2 }
 0x2a0   : > { %v2927_v45 = vsel %vm1631_vm0, %v10691_v54, %v2926_v27  ;;  %v3014_v12 = vmul.f32 %v10547_v42, %v1430_v49  ;;  %v3015_v19 = vmul.f32 %v10662_v28, %v1475_v52  ;;  %v3174_v54 = vmul.f32 %v10608_v11, %v1430_v49 }
 0x2a1   : > { %v2947_v16 = vadd.f32 %v2927_v45, %v8741_v8  ;;  %v3091_v48 = vsel %vm1881_vm1, %v10693_v34, %v3090_v18  ;;  %v2894_v23 = vadd.f32 %v2886_v29, %v2878_v1  ;;  %v2895_v13 = vadd.f32 %v2887_v61, %v2879_v30  ;;  %v10695_v8 = vld [vmem:[#allocation99_spill] sm:$0xff] }
 0x2a2   : > { %v3175_v3 = vmul.f32 %v10553_v24, %v1475_v52  ;;  %v3036_v17 = vrot.slane %v3014_v12, 1  ;;  %v3038_v37 = vrot.slane %v3015_v19, 1  ;;  %v3001_v45 = vadd.f32 %v10695_v8, %v2945_v43  ;;  %v10700_v52 = vld [vmem:[#allocation129_spill] sm:$0xff]  ;;  %v10704_v19 = vld [vmem:[#allocation110_spill] sm:$0xff] }
 0x2a3   : > { %v3003_v26 = vadd.f32 %v10694_v38, %v2947_v16  ;;  %v2950_v55 = vadd.f32 %v2924_v7, %v2894_v23  ;;  %v2951_v6 = vadd.f32 %v2926_v27, %v2895_v13  ;;  %v3192_v34 = vrot.slane %v3174_v54, 2  ;;  %v10698_v27 = vld [vmem:[#allocation90_spill] sm:$0xff] }
 0x2a4   : > { %v3194_v60 = vrot.slane %v3175_v3, 2  ;;  %v3037_v1 = vsel %vm1631_vm0, %v10696_v63, %v3036_v17  ;;  %v10697_v30 = vrot.slane %v8714_v51, 1  ;;  %v8882_v38 = vsel %vm1403_vm3, %v8691_v33, %v1398_v10 }
 0x2a5   : > { %v8886_v43 = vsel %vm1403_vm3, %v1398_v10, %v10688_v31  ;;  %v10699_v7 = vrot.slane %v10698_v27, 1  ;;  %v10701_v29 = vrot.slane %v10700_v52, 1  ;;  %v3058_v61 = vadd.f32 %v3037_v1, %v3002_v53  ;;  %v10705_v31 = vld [vmem:[#allocation111_spill] sm:$0xff]  ;;  %v10706_v53 = vld [vmem:[#allocation112_spill] sm:$0xff]  ;;  %v10708_v27 = vld [vmem:[#allocation97_spill] sm:$0xff] }
 0x2a6   : > { %v3039_v49 = vsel %vm1631_vm0, %v10697_v30, %v3038_v37  ;;  %v10702_v51 = vrot.slane %v8726_v4, 2  ;;  %v10703_v12 = vrot.slane %v8734_v39, 2  ;;  %v2884_v10 = vmul.f32 %v10704_v19, %v8882_v38  ;;  %v10707_v39 = vld [vmem:[#allocation16_spill] sm:$0xff]  ;;  %v10709_v52 = vld [vmem:[#allocation149_spill] sm:$0xff] }
 0x2a7   : > { %v3006_v3 = vadd.f32 %v10699_v7, %v2950_v55  ;;  %v3007_v25 = vadd.f32 %v10701_v29, %v2951_v6  ;;  %v3059_v63 = vadd.f32 %v3039_v49, %v3003_v26  ;;  %v2885_v23 = vmul.f32 %v10705_v31, %v8886_v43  ;;  %v10716_v19 = vld [vmem:[#allocation92_spill] sm:$0xff] }
 0x2a8   : > { %v3193_v16 = vsel %vm1881_vm1, %v10702_v51, %v3192_v34  ;;  %v3195_v33 = vsel %vm1881_vm1, %v10703_v12, %v3194_v60  ;;  %v3110_v8 = vadd.f32 %v3089_v21, %v3058_v61  ;;  %v2892_v26 = vadd.f32 %v2884_v10, %v8795_v46 }
 0x2a9   : > { %v3062_v13 = vadd.f32 %v3036_v17, %v3006_v3  ;;  %v3063_v54 = vadd.f32 %v3038_v37, %v3007_v25  ;;  %v3111_v6 = vadd.f32 %v3091_v48, %v3059_v63  ;;  %v2893_v4 = vadd.f32 %v2885_v23, %v8810_v62  ;;  %v10712_v3 = vld [vmem:[#allocation91_spill] sm:$0xff]  ;;  %v10718_v23 = vld [vmem:[#allocation93_spill] sm:$0xff] }
 0x2aa   : > { %v3012_v55 = vmul.f32 %v10706_v53, %v8882_v38  ;;  %v3013_v1 = vmul.f32 %v10707_v39, %v8886_v43  ;;  %v3162_v7 = vadd.f32 %v10708_v27, %v3110_v8  ;;  %v10710_v17 = vrot.slane %v8748_v5, 1  ;;  %v10714_v63 = vld [vmem:[#allocation139_spill] sm:$0xff] }
 0x2ab   : > { %v3114_v30 = vadd.f32 %v3088_v0, %v3062_v13  ;;  %v3115_v49 = vadd.f32 %v3090_v18, %v3063_v54  ;;  %v3163_v29 = vadd.f32 %v10709_v52, %v3111_v6  ;;  %v10711_v48 = vrot.slane %v8774_v20, 1  ;;  %v10724_v52 = vld [vmem:[#allocation137_spill] sm:$0xff] }
 0x2ac   : > { %v2948_v21 = vadd.f32 %v10710_v17, %v2892_v26  ;;  %v3032_v37 = vrot.slane %v3012_v55, 1  ;;  %v3034_v62 = vrot.slane %v3013_v1, 1  ;;  %v10713_v25 = vrot.slane %v10712_v3, 2 }
 0x2ad   : > { %v2949_v46 = vadd.f32 %v10711_v48, %v2893_v4  ;;  %v10715_v51 = vrot.slane %v10714_v63, 2  ;;  %v3214_v0 = vadd.f32 %v3193_v16, %v3162_v7  ;;  %v3215_v18 = vadd.f32 %v3195_v33, %v3163_v29 }
 0x2ae   : > { %v3166_v61 = vadd.f32 %v10713_v25, %v3114_v30  ;;  %v10717_v10 = vrot.slane %v10716_v19, 1  ;;  %v10719_v13 = vrot.slane %v10718_v23, 1  ;;  %v10720_v54 = vrot.slane %v8652_v50, 1  ;;  %v10734_v23 = vld [vmem:[#allocation114_spill] sm:$0xff] }
 0x2af   : > { %v3167_v12 = vadd.f32 %v10715_v51, %v3115_v49  ;;  %v10721_v8 = vrot.slane %v8655_v58, 1  ;;  %v3321_v53 = vrot.slane %v3214_v0, 6  ;;  %v3324_v55 = vrot.slane %v3215_v18, 6  ;;  %v10732_v18 = vld [vmem:[#allocation95_spill] sm:$0xff] }
 0x2b0   : > { %v3004_v31 = vadd.f32 %v10717_v10, %v2948_v21  ;;  %v3005_v5 = vadd.f32 %v10719_v13, %v2949_v46  ;;  %v3033_v20 = vsel %vm1631_vm0, %v10720_v54, %v3032_v37  ;;  %v3218_v26 = vadd.f32 %v3192_v34, %v3166_v61  ;;  %v10728_v61 = vld [vmem:[#allocation100_spill] sm:$0xff] }
 0x2b1   : > { %v3035_v6 = vsel %vm1631_vm0, %v10721_v8, %v3034_v62  ;;  %v3219_v4 = vadd.f32 %v3194_v60, %v3167_v12  ;;  %v3056_v16 = vadd.f32 %v3033_v20, %v8856_v15  ;;  %v10722_v30 = vrot.slane %v8792_v35, 6  ;;  %v10725_v60 = vld [vmem:[#allocation140_spill] sm:$0xff]  ;;  %v10730_v12 = vld [vmem:[#allocation94_spill] sm:$0xff] }
 0x2b2   : > { %v3057_v33 = vadd.f32 %v3035_v6, %v3001_v45  ;;  %v3060_v39 = vadd.f32 %v3032_v37, %v3004_v31  ;;  %v3061_v1 = vadd.f32 %v3034_v62, %v3005_v5  ;;  %v10723_v50 = vrot.slane %v8807_v57, 6  ;;  %v10735_v5 = vld [vmem:[#allocation151_spill] sm:$0xff] }
 0x2b3   : > { %v3322_v49 = vsel %vm3313_vm5, %v10722_v30, %v3321_v53  ;;  %v3330_v58 = vrot.slane %v3218_v26, 6  ;;  %v3332_v7 = vrot.slane %v3219_v4, 6  ;;  %v3108_v15 = vadd.f32 %v8803_v2, %v3056_v16 }
 0x2b4   : > { %v3325_v27 = vsel %vm3313_vm5, %v10723_v50, %v3324_v55  ;;  %v8936_v34 = vadd.f32 %v10724_v52, %v3322_v49  ;;  %v3109_v45 = vadd.f32 %v8847_v59, %v3057_v33  ;;  %v10726_v57 = vrot.slane %v8751_v32, 2  ;;  %v1346_v59 = vpop.permute.xlu0 %1345  ;;  %v10729_v32 = vld [vmem:[#allocation101_spill] sm:$0xff]  ;;  %v10740_v33 = vld [vmem:[#allocation156_spill] sm:$0xff] }
 0x2b5   : > { %v8939_v29 = vadd.f32 %v10725_v60, %v3325_v27  ;;  %v3331_v35 = vsel %vm3313_vm5, %v3321_v53, %v3330_v58  ;;  %v3333_v17 = vsel %vm3313_vm5, %v3324_v55, %v3332_v7  ;;  %v10727_v48 = vrot.slane %v8818_v9, 2  ;;  %v10736_v55 = vld [vmem:[#allocation31_spill] sm:$0xff]  ;;  %v10745_v7 = vld [vmem:[#allocation18_spill] sm:$0xff] }
 0x2b6   : > { %v3112_v21 = vadd.f32 %v10726_v57, %v3060_v39  ;;  %v3317_v37 = vrot.slane %v8778_v22, 6  ;;  %v8951_v62 = vadd.f32 %v10724_v52, %v3331_v35  ;;  %v4908_v3 = vmul.f32 -1.442695, %v8936_v34 }
 0x2b7   : > { %v3113_v46 = vadd.f32 %v10727_v48, %v3061_v1  ;;  %v4909_v2 = vmul.f32 -1.442695, %v8939_v29  ;;  %v8956_v25 = vadd.f32 %v10725_v60, %v3333_v17  ;;  %v3160_v63 = vadd.f32 %v10728_v61, %v3108_v15  ;;  %v10742_v1 = vld [vmem:[#allocation160_spill] sm:$0xff] }
 0x2b8   : > { %v3161_v51 = vadd.f32 %v10729_v32, %v3109_v45  ;;  %v10731_v9 = vrot.slane %v10730_v12, 2  ;;  %5495 = vpow2.f32 %v4908_v3  ;;  %v4912_v22 = vmul.f32 -1.442695, %v8951_v62  ;;  %v10746_v45 = vld [vmem:[#allocation21_spill] sm:$0xff] }
 0x2b9   : > { %v10733_v19 = vrot.slane %v10732_v18, 2  ;;  %v3172_v31 = vmul.f32 %v10653_v14, %v8882_v38  ;;  %5497 = vpow2.f32 %v4909_v2  ;;  %v3173_v13 = vmul.f32 %v10734_v23, %v8886_v43  ;;  %v10738_v38 = vld [vmem:[#allocation155_spill] sm:$0xff] }
 0x2ba   : > { %v3164_v0 = vadd.f32 %v10731_v9, %v3112_v21  ;;  %v1409_v54 = vsel %vm1403_vm3, %v10735_v5, %v1346_v59  ;;  %v1468_v20 = vsel %vm1403_vm3, %v1346_v59, 0.0  ;;  %5499 = vpow2.f32 %v4912_v22  ;;  %v10749_v22 = vld [vmem:[#allocation11_spill] sm:$0xff] }
 0x2bb   : > { %v3165_v10 = vadd.f32 %v10733_v19, %v3113_v46  ;;  %v3188_v8 = vrot.slane %v3172_v31, 2  ;;  %v1574_v6 = vmul.f32 %v10545_v36, %v1409_v54  ;;  %v1575_v26 = vmul.f32 %v10661_v47, %v1468_v20  ;;  %v10750_v19 = vld [vmem:[#allocation40_spill] sm:$0xff] }
 0x2bc   : > { %v4913_v4 = vmul.f32 -1.442695, %v8956_v25  ;;  %v3190_v53 = vrot.slane %v3173_v13, 2  ;;  %v10737_v14 = vrot.slane %v10736_v55, 1  ;;  %v10739_v16 = vrot.slane %v10738_v38, 1 }
 0x2bd   : > { %v10741_v39 = vrot.slane %v10740_v33, 1  ;;  %v10743_v30 = vrot.slane %v10742_v1, 1  ;;  %v10744_v50 = vrot.slane %v8673_v40, 2  ;;  %v3216_v58 = vadd.f32 %v3188_v8, %v3164_v0  ;;  %v10748_v0 = vld [vmem:[#allocation50_spill] sm:$0xff] }
 0x2be   : > { %v1649_v43 = vsel %vm1631_vm0, %v10739_v16, %v10737_v14  ;;  %v1582_v15 = vadd.f32 %v1574_v6, %v10745_v7  ;;  %v1583_v35 = vadd.f32 %v1575_v26, %v10746_v45  ;;  %v10747_v17 = vrot.slane %v8696_v56, 2  ;;  %v10752_v6 = vld [vmem:[#allocation115_spill] sm:$0xff] }
 0x2bf   : > { %v1651_v49 = vsel %vm1631_vm0, %v10743_v30, %v10741_v39  ;;  %v3189_v27 = vsel %vm1881_vm1, %v10744_v50, %v3188_v8  ;;  %v3217_v48 = vadd.f32 %v3190_v53, %v3165_v10  ;;  %v8994_v46 = vmul.f32 %v10547_v42, %v1409_v54  ;;  %v10754_v16 = vld [vmem:[#allocation159_spill] sm:$0xff] }
 0x2c0   : > { %v3191_v57 = vsel %vm1881_vm1, %v10747_v17, %v3190_v53  ;;  %v3212_v21 = vadd.f32 %v3189_v27, %v3160_v63  ;;  %v3326_v2 = vrot.slane %v3216_v58, 6  ;;  %v1666_v59 = vadd.f32 %v1649_v43, %v1582_v15  ;;  %v10756_v30 = vld [vmem:[#allocation51_spill] sm:$0xff]  ;;  %v10759_v58 = vld [vmem:[#allocation61_spill] sm:$0xff] }
 0x2c1   : > { %v3213_v3 = vadd.f32 %v3191_v57, %v3161_v51  ;;  %v1667_v40 = vadd.f32 %v1651_v49, %v1583_v35  ;;  %v3328_v32 = vrot.slane %v3217_v48, 6  ;;  %v8997_v12 = vmul.f32 %v10662_v28, %v1468_v20  ;;  %v10757_v49 = vld [vmem:[#allocation128_spill] sm:$0xff]  ;;  %v10758_v27 = vld [vmem:[#allocation59_spill] sm:$0xff] }
 0x2c2   : > { %v3315_v61 = vrot.slane %v3212_v21, 6  ;;  %v1805_v9 = vrot.slane %v8994_v46, 1  ;;  %v9002_v56 = vmul.f32 %v8767_v41, %v10748_v0  ;;  %v1749_v18 = vadd.f32 %v10749_v22, %v1666_v59  ;;  %v5496_v5 = vpop.eup %5495 }
 0x2c3   : > { %v3318_v63 = vrot.slane %v3213_v3, 6  ;;  %v1750_v10 = vadd.f32 %v10750_v19, %v1667_v40  ;;  %5501 = vpow2.f32 %v4913_v4  ;;  %v10751_v51 = vrot.slane %v8739_v44, 6  ;;  %v5498_v4 = vpop.eup %5497  ;;  %v10753_v44 = vld [vmem:[#allocation116_spill] sm:$0xff]  ;;  %v10762_v40 = vld [vmem:[#allocation29_spill] sm:$0xff] }
 0x2c4   : > { %v3327_v23 = vsel %vm3313_vm5, %v3315_v61, %v3326_v2  ;;  %v1808_v13 = vrot.slane %v8997_v12, 1  ;;  %v3518_v55 = vadd.f32 1.0, %v5496_v5  ;;  %v10755_v43 = vrot.slane %v10754_v16, 1  ;;  %v5500_v39 = vpop.eup %5499 }
 0x2c5   : > { %v3316_v31 = vsel %vm3313_vm5, %v10751_v51, %v3315_v61  ;;  %v3319_v8 = vsel %vm3313_vm5, %v3317_v37, %v3318_v63  ;;  %v3329_v41 = vsel %vm3313_vm5, %v3318_v63, %v3328_v32  ;;  %v9017_v53 = vadd.f32 %v10752_v6, %v3327_v23  ;;  %v1338_v32 = vpop.permute.xlu1 %1337  ;;  %v10766_v23 = vld [vmem:[#allocation24_spill] sm:$0xff] }
 0x2c6   : > { %v9014_v26 = vadd.f32 %v10752_v6, %v3316_v31  ;;  %v9020_v14 = vadd.f32 %v10753_v44, %v3319_v8  ;;  %v1815_v33 = vsel %vm1631_vm0, %v1805_v9, %v10755_v43  ;;  %v9028_v37 = vmul.f32 %v10608_v11, %v1409_v54  ;;  %v10760_v54 = vld [vmem:[#allocation161_spill] sm:$0xff]  ;;  %v10773_v43 = vld [vmem:[#allocation134_spill] sm:$0xff] }
 0x2c7   : > { %v9032_v50 = vmul.f32 %v10757_v49, %v10756_v30  ;;  %v9036_v7 = vmul.f32 %v10759_v58, %v10758_v27  ;;  %v9039_v15 = vadd.f32 %v10753_v44, %v3329_v41  ;;  %v1832_v45 = vadd.f32 %v1815_v33, %v1749_v18  ;;  %v10764_v18 = vld [vmem:[#allocation150_spill] sm:$0xff]  ;;  %v10769_v6 = vld [vmem:[#allocation153_spill] sm:$0xff] }
 0x2c8   : > { %v3519_v35 = vadd.f32 1.0, %v5498_v4  ;;  %v4906_v17 = vmul.f32 -1.442695, %v9014_v26  ;;  %v4910_v57 = vmul.f32 -1.442695, %v9017_v53  ;;  %v10761_v21 = vrot.slane %v10760_v54, 1 }
 0x2c9   : > { %v3522_v3 = vadd.f32 1.0, %v5500_v39  ;;  %v4907_v2 = vmul.f32 -1.442695, %v9020_v14  ;;  %v1916_v61 = vadd.f32 %v10762_v40, %v1832_v45  ;;  %5503 = vrcp.f32 %v3518_v55  ;;  %v10775_v27 = vld [vmem:[#allocation37_spill] sm:$0xff] }
 0x2ca   : > { %v1817_v48 = vsel %vm1631_vm0, %v1808_v13, %v10761_v21  ;;  %v9051_v0 = vmul.f32 %v10553_v24, %v1468_v20  ;;  %v2055_v63 = vrot.slane %v9028_v37, 2  ;;  %v10763_v22 = vrot.slane %v10738_v38, 1  ;;  %v10771_v38 = vld [vmem:[#allocation23_spill] sm:$0xff]  ;;  %v10774_v37 = vld [vmem:[#allocation42_spill] sm:$0xff] }
 0x2cb   : > { %v1833_v59 = vadd.f32 %v1817_v48, %v1750_v10  ;;  %v10765_v19 = vrot.slane %v10764_v18, 1  ;;  %v4911_v31 = vmul.f32 -1.442695, %v9039_v15  ;;  %v10767_v10 = vld [vmem:[#allocation41_spill] sm:$0xff]  ;;  %v10768_v41 = vrot.slane %v10742_v1, 1 }
 0x2cc   : > { %v1999_v8 = vadd.f32 %v10767_v10, %v1916_v61  ;;  %v10770_v4 = vrot.slane %v10769_v6, 1  ;;  %5505 = vpow2.f32 %v4906_v17  ;;  %v2058_v55 = vrot.slane %v9051_v0, 2  ;;  %v3794_v10 = vld [vmem:[%s9813_s6 + $0x180] sm:$0xff]  ;;  %v3795_v6 = vld [vmem:[%s9813_s6 + $0x188] sm:$0xff] }
 0x2cd   : > { %v1640_v51 = vsel %vm1631_vm0, %v10765_v19, %v10763_v22  ;;  %v1917_v5 = vadd.f32 %v10766_v23, %v1833_v59  ;;  %v10772_v44 = vrot.slane %v10771_v38, 2  ;;  %v1406_v33 = vsel %vm1403_vm3, %v10773_v43, %v1338_v32  ;;  %v5502_v49 = vpop.eup %5501  ;;  %v10777_v59 = vld [vmem:[#allocation152_spill] sm:$0xff]  ;;  %v3762_v19 = vld [vmem:[%s9813_s6 + $0x80] sm:$0xff]  ;;  %v10780_v43 = vld [vmem:[#allocation19_spill] sm:$0xff] }
 0x2ce   : > { %v1643_v20 = vsel %vm1631_vm0, %v10770_v4, %v10768_v41  ;;  %5507 = vpow2.f32 %v4907_v2  ;;  %v1467_v1 = vsel %vm1403_vm3, %v1338_v32, 0.0  ;;  %v10776_v58 = vrot.slane %v10775_v27, 2  ;;  %v3778_v4 = vld [vmem:[%s9813_s6 + $0x100] sm:$0xff]  ;;  %v3797_v27 = vld [vmem:[%s9813_s6 + $0x198] sm:$0xff] }
 0x2cf   : > { %v2065_v16 = vsel %vm1881_vm1, %v2055_v63, %v10772_v44  ;;  %v2000_v39 = vadd.f32 %v10774_v37, %v1917_v5  ;;  %5509 = vpow2.f32 %v4910_v57  ;;  %v1570_v17 = vmul.f32 %v10545_v36, %v1406_v33  ;;  %v10778_v57 = vld [vmem:[#allocation109_spill] sm:$0xff]  ;;  %v3764_v37 = vld [vmem:[%s9813_s6 + $0x90] sm:$0xff]  ;;  %v9254_v0 = vld [vmem:[%s9813_s6 + $0xc0] sm:$0xff] }
 0x2d0   : > { %v2082_v30 = vadd.f32 %v2065_v16, %v1999_v8  ;;  %v2067_v45 = vsel %vm1881_vm1, %v2058_v55, %v10776_v58  ;;  %v1571_v54 = vmul.f32 %v10661_v47, %v1467_v1  ;;  %5511 = vpow2.f32 %v4911_v31  ;;  %v10779_v44 = vld [vmem:[#allocation17_spill] sm:$0xff] }
 0x2d1   : > { %v2083_v21 = vadd.f32 %v2067_v45, %v2000_v39  ;;  %v1776_v2 = vmul.f32 %v10547_v42, %v1406_v33  ;;  %v1578_v40 = vadd.f32 %v1570_v17, %v10777_v59  ;;  %v1777_v32 = vmul.f32 %v10662_v28, %v1467_v1  ;;  %v3763_v42 = vld [vmem:[%s9813_s6 + $0x88] sm:$0xff]  ;;  %v3765_v39 = vld [vmem:[%s9813_s6 + $0x98] sm:$0xff] }
 0x2d2   : > { %v9083_v48 = vadd.f32 %v10724_v52, %v2082_v30  ;;  %v1579_v61 = vadd.f32 %v1571_v54, %v10778_v57  ;;  %v2026_v22 = vmul.f32 %v10608_v11, %v1406_v33  ;;  %5513 = vrcp.f32 %v3522_v3  ;;  %v3746_v11 = vld [vmem:[%s9813_s6] sm:$0xff]  ;;  %v3747_v3 = vld [vmem:[%s9813_s6 + $0x8] sm:$0xff]  ;;  %v9163_v54 = vld [vmem:[%s9813_s6 + $0x118] sm:$0xff] }
 0x2d3   : > { %v9091_v36 = vadd.f32 %v10725_v60, %v2083_v21  ;;  %v1804_v18 = vrot.slane %v1776_v2, 1  ;;  %v1662_v31 = vadd.f32 %v1640_v51, %v1578_v40  ;;  %v1807_v28 = vrot.slane %v1777_v32, 1  ;;  %v9124_v38 = vpop.eup %5503  ;;  %v9168_v21 = vld [vmem:[%s9813_s6 + $0xa0] sm:$0xff]  ;;  %v3767_v32 = vld [vmem:[%s9813_s6 + $0xa8] sm:$0xff] }
 0x2d4   : > { %v4888_v47 = vmul.f32 -1.442695, %v9083_v48  ;;  %v1663_v23 = vadd.f32 %v1643_v20, %v1579_v61  ;;  %v2054_v5 = vrot.slane %v2026_v22, 2  ;;  %v9109_v8 = vadd.f32 1.0, %v5502_v49  ;;  %v3779_v20 = vld [vmem:[%s9813_s6 + $0x108] sm:$0xff]  ;;  %v3796_v49 = vld [vmem:[%s9813_s6 + $0x190] sm:$0xff] }
 0x2d5   : > { %v4889_v51 = vmul.f32 -1.442695, %v9091_v36  ;;  %v9113_v41 = vmul.f32 %v10553_v24, %v1467_v1  ;;  %v1745_v16 = vadd.f32 %v10779_v44, %v1662_v31  ;;  %v1806_v33 = vsel %vm1631_vm0, %v1804_v18, %v1805_v9  ;;  %v3749_v1 = vld [vmem:[%s9813_s6 + $0x18] sm:$0xff]  ;;  %v9177_v22 = vld [vmem:[%s9813_s6 + $0x20] sm:$0xff]  ;;  %v9208_v44 = vld [vmem:[%s9813_s6 + $0xb0] sm:$0xff] }
 0x2d6   : > { %5515 = vpow2.f32 %v4888_v47  ;;  %v1746_v24 = vadd.f32 %v10780_v43, %v1663_v23  ;;  %v1809_v46 = vsel %vm1631_vm0, %v1807_v28, %v1808_v13  ;;  %v2056_v9 = vsel %vm1881_vm1, %v2054_v5, %v2055_v63  ;;  %v5506_v58 = vpop.eup %5505  ;;  %v9158_v63 = vld [vmem:[%s9813_s6 + $0x110] sm:$0xff]  ;;  %v9182_v47 = vld [vmem:[%s9813_s6 + $0x28] sm:$0xff]  ;;  %v10782_v23 = vld [vmem:[#allocation25_spill] sm:$0xff] }
 0x2d7   : > { %5517 = vrcp.f32 %v3519_v35  ;;  %v9140_v35 = vld [vmem:[%s9813_s6 + $0x10] sm:$0xff]  ;;  %v5111_v30 = vpack.c.bf16 %v3763_v42, %v3762_v19  ;;  %v1828_v45 = vadd.f32 %v1806_v33, %v1745_v16  ;;  %v5113_v17 = vpack.c.bf16 %v3747_v3, %v3746_v11  ;;  %v10781_v42 = vld [vmem:[#allocation154_spill] sm:$0xff]  ;;  %v3799_v3 = vld [vmem:[%s9813_s6 + $0x1a8] sm:$0xff] }
 0x2d8   : > { %5519 = vpow2.f32 %v4889_v51  ;;  %v1829_v12 = vadd.f32 %v1809_v46, %v1746_v24  ;;  %v5143_v13 = vpack.c.bf16 %v3795_v6, %v3794_v10  ;;  %v5508_v2 = vpop.eup %5507  ;;  %v3516_v59 = vadd.f32 1.0, %v5506_v58  ;;  %v3798_v11 = vld [vmem:[%s9813_s6 + $0x1a0] sm:$0xff]  ;;  %v9213_v16 = vld [vmem:[%s9813_s6 + $0xb8] sm:$0xff]  ;;  %v10783_v24 = vld [vmem:[#allocation20_spill] sm:$0xff] }
 0x2d9   : > { %v2057_v40 = vrot.slane %v9113_v41, 2  ;;  %5112 = vmatprep.subr.bf16.mxu0 %v5111_v30  ;;  %v5145_v57 = vpack.c.bf16 %v3779_v20, %v3778_v4  ;;  %v5115_v61 = vpack.c.bf16 %v3765_v39, %v3764_v37  ;;  %v5510_v18 = vpop.eup %5509  ;;  %v3517_v19 = vadd.f32 1.0, %v5508_v2  ;;  %v9196_v10 = vld [vmem:[%s9813_s6 + $0x120] sm:$0xff]  ;;  %v9203_v20 = vld [vmem:[%s9813_s6 + $0x128] sm:$0xff]  ;;  %v9225_v46 = vld [vmem:[%s9813_s6 + $0x38] sm:$0xff] }
 0x2da   : > { %v1912_v31 = vadd.f32 %v10781_v42, %v1828_v45  ;;  %v1913_v28 = vadd.f32 %v10782_v23, %v1829_v12  ;;  %5114 = vmatpush3.bf16.msra.mxu0 %v5113_v17  ;;  %5144 = vmatprep.subr.bf16.mxu1 %v5143_v13  ;;  %v5117_v5 = vpack.c.bf16 %v3749_v1, %v9140_v35  ;;  %v5512_v51 = vpop.eup %5511  ;;  %v3520_v41 = vadd.f32 1.0, %v5510_v18  ;;  %v10784_v37 = vld [vmem:[#allocation158_spill] sm:$0xff]  ;;  %v9220_v35 = vld [vmem:[%s9813_s6 + $0x30] sm:$0xff]  ;;  %v9235_v1 = vld [vmem:[%s9813_s6 + $0x1b8] sm:$0xff] }
 0x2db   : > { %5521 = vrcp.f32 %v3516_v59  ;;  %5146 = vmatpush3.bf16.msra.mxu1 %v5145_v57  ;;  %5116 = vmatprep.subr.bf16.mxu0 %v5115_v61  ;;  %v5147_v6 = vpack.c.bf16 %v3797_v27, %v3796_v49  ;;  %v5149_v4 = vpack.c.bf16 %v9163_v54, %v9158_v63  ;;  %v3521_v43 = vadd.f32 1.0, %v5512_v51  ;;  %v9230_v30 = vld [vmem:[%s9813_s6 + $0x1b0] sm:$0xff]  ;;  %v9249_v17 = vld [vmem:[%s9813_s6 + $0x138] sm:$0xff]  ;;  %v9271_v2 = vld [vmem:[%s9813_s6 + $0x48] sm:$0xff] }
 0x2dc   : > { %5523 = vrcp.f32 %v3517_v19  ;;  %v1995_v33 = vadd.f32 %v10783_v24, %v1912_v31  ;;  %v1996_v39 = vadd.f32 %v10784_v37, %v1913_v28  ;;  %v5514_v49 = vpop.eup %5513  ;;  %v2059_v27 = vsel %vm1881_vm1, %v2057_v40, %v2058_v55  ;;  %v9244_v12 = vld [vmem:[%s9813_s6 + $0x130] sm:$0xff]  ;;  %v9259_v55 = vld [vmem:[%s9813_s6 + $0xc8] sm:$0xff]  ;;  %v9276_v59 = vld [vmem:[%s9813_s6 + $0x1c0] sm:$0xff] }
 0x2dd   : > { %5525 = vrcp.f32 %v3520_v41  ;;  %5148 = vmatprep.subr.bf16.mxu1 %v5147_v6  ;;  %v5119_v58 = vpack.c.bf16 %v3767_v32, %v9168_v21  ;;  %v5151_v45 = vpack.c.bf16 %v3799_v3, %v3798_v11  ;;  %v5121_v54 = vpack.c.bf16 %v9182_v47, %v9177_v22  ;;  %v9266_v21 = vld [vmem:[%s9813_s6 + $0x40] sm:$0xff]  ;;  %v9291_v57 = vld [vmem:[%s9813_s6 + $0x148] sm:$0xff]  ;;  %v9305_v18 = vld [vmem:[%s9813_s6 + $0xd0] sm:$0xff] }
 0x2de   : > { %5527 = vrcp.f32 %v3521_v43  ;;  %v2078_v13 = vadd.f32 %v2056_v9, %v1995_v33  ;;  %v2079_v63 = vadd.f32 %v2059_v27, %v1996_v39  ;;  %5118 = vmatpush3.bf16.msra.mxu0 %v5117_v5  ;;  %v9281_v9 = vld [vmem:[%s9813_s6 + $0x1c8] sm:$0xff]  ;;  %v9286_v40 = vld [vmem:[%s9813_s6 + $0x140] sm:$0xff]  ;;  %v9295_v32 = vadd.f32 %v9036_v7, %v9032_v50  ;;  %v9310_v19 = vld [vmem:[%s9813_s6 + $0xd8] sm:$0xff] }
 0x2df   : > { %5529 = vrcp.f32 %v9109_v8  ;;  %5150 = vmatpush3.bf16.msra.mxu1 %v5149_v4  ;;  %5120 = vmatprep.subr.bf16.mxu0 %v5119_v58  ;;  %v5153_v22 = vpack.c.bf16 %v9203_v20, %v9196_v10  ;;  %v5123_v47 = vpack.c.bf16 %v9213_v16, %v9208_v44  ;;  %v9315_v8 = vld [vmem:[%s9813_s6 + $0x50] sm:$0xff]  ;;  %v9320_v42 = vld [vmem:[%s9813_s6 + $0x58] sm:$0xff]  ;;  %v5155_v10 = vpack.c.bf16 %v9235_v1, %v9230_v30  ;;  %v9374_v16 = vld [vmem:[%s9813_s6 + $0x60] sm:$0xff] }
 0x2e0   : > { %v5516_v61 = vpop.eup %5515  ;;  %v9325_v31 = vld [vmem:[%s9813_s6 + $0x1d0] sm:$0xff]  ;;  %v9330_v23 = vld [vmem:[%s9813_s6 + $0x1d8] sm:$0xff]  ;;  %v9335_v11 = vadd.f32 %v10724_v52, %v2078_v13  ;;  %v9338_v3 = vadd.f32 %v10725_v60, %v2079_v63  ;;  %5152 = vmatprep.subr.bf16.mxu1 %v5151_v45  ;;  %v9355_v52 = vld [vmem:[%s9813_s6 + $0xe0] sm:$0xff]  ;;  %v9364_v4 = vmul.f32 %v9124_v38, %v8936_v34  ;;  %v9367_v20 = vmul.f32 %v5514_v49, %v8951_v62 }
 0x2e1   : > { %v9332_v28 = vpop.eup %5517  ;;  %v3498_v5 = vadd.f32 1.0, %v5516_v61  ;;  %v9345_v51 = vld [vmem:[%s9813_s6 + $0x150] sm:$0xff]  ;;  %v9350_v41 = vld [vmem:[%s9813_s6 + $0x158] sm:$0xff]  ;;  %v9360_v60 = vld [vmem:[%s9813_s6 + $0xe8] sm:$0xff]  ;;  %v5125_v44 = vpack.c.bf16 %v9225_v46, %v9220_v35  ;;  %v5157_v37 = vpack.c.bf16 %v9249_v17, %v9244_v12  ;;  %v5127_v39 = vpack.c.bf16 %v9259_v55, %v9254_v0 }
 0x2e2   : > { %v5520_v6 = vpop.eup %5519  ;;  %v9379_v43 = vld [vmem:[%s9813_s6 + $0x68] sm:$0xff]  ;;  %v9384_v34 = vld [vmem:[%s9813_s6 + $0x1e0] sm:$0xff]  ;;  %v10785_v62 = vld [vmem:[#allocation45_spill] sm:$0xff]  ;;  %v4884_v24 = vmul.f32 -1.442695, %v9335_v11  ;;  %5122 = vmatpush3.bf16.msra.mxu0 %v5121_v54  ;;  %v5129_v1 = vpack.c.bf16 %v9271_v2, %v9266_v21  ;;  %v5159_v49 = vpack.c.bf16 %v9281_v9, %v9276_v59  ;;  %v5161_v27 = vpack.c.bf16 %v9291_v57, %v9286_v40 }
 0x2e3   : > { %v3628_v38 = vrot.slane %v10785_v62, 4  ;;  %v4885_v33 = vmul.f32 -1.442695, %v9338_v3  ;;  %v9396_v35 = vld [vmem:[%s9813_s6 + $0x1e8] sm:$0xff]  ;;  %v9401_v46 = vld [vmem:[%s9813_s6 + $0x160] sm:$0xff]  ;;  %v3499_v30 = vadd.f32 1.0, %v5520_v6  ;;  %5154 = vmatpush3.bf16.msra.mxu1 %v5153_v22  ;;  %5124 = vmatprep.subr.bf16.mxu0 %v5123_v47  ;;  %5531 = vrcp.f32 %v3498_v5 }
 0x2e4   : > { %v9412_v58 = vld [vmem:[%s9813_s6 + $0x168] sm:$0xff]  ;;  %v9417_v45 = vld [vmem:[%s9813_s6 + $0xf0] sm:$0xff]  ;;  %v9422_v12 = vld [vmem:[%s9813_s6 + $0xf8] sm:$0xff]  ;;  %5156 = vmatprep.subr.bf16.mxu1 %v5155_v10  ;;  %v5131_v17 = vpack.c.bf16 %v9310_v19, %v9305_v18  ;;  %v5133_v0 = vpack.c.bf16 %v9320_v42, %v9315_v8  ;;  %v5163_v55 = vpack.c.bf16 %v9330_v23, %v9325_v31  ;;  %5533 = vpow2.f32 %v4884_v24 }
 0x2e5   : > { %v5522_v13 = vpop.eup %5521  ;;  %v5165_v63 = vpack.c.bf16 %v9350_v41, %v9345_v51  ;;  %v5135_v54 = vpack.c.bf16 %v9360_v60, %v9355_v52  ;;  %v5137_v21 = vpack.c.bf16 %v9379_v43, %v9374_v16  ;;  %5535 = vpow2.f32 %v4885_v33  ;;  %v10786_v22 = vld [vmem:[#allocation26_spill] sm:$0xff]  ;;  %v10787_v47 = vld [vmem:[#allocation127_spill] sm:$0xff]  ;;  %v10788_v23 = vld [vmem:[#allocation60_spill] sm:$0xff] }
 0x2e6   : > { %v5524_v2 = vpop.eup %5523  ;;  %5126 = vmatpush3.bf16.msra.mxu0 %v5125_v44  ;;  %v5167_v59 = vpack.c.bf16 %v9396_v35, %v9384_v34  ;;  %v5169_v9 = vpack.c.bf16 %v9412_v58, %v9401_v46  ;;  %v9443_v61 = vmul.f32 %v5522_v13, %v9014_v26  ;;  %5537 = vrcp.f32 %v3499_v30  ;;  %v9458_v26 = vld [vmem:[%s9813_s6 + $0x70] sm:$0xff]  ;;  %v10790_v51 = vld [vmem:[#allocation7_spill] sm:$0xff]  ;;  %v9479_v60 = vld [vmem:[%s9813_s6 + $0x1f8] sm:$0xff] }
 0x2e7   : > { %v5526_v57 = vpop.eup %5525  ;;  %5158 = vmatpush3.bf16.msra.mxu1 %v5157_v37  ;;  %5128 = vmatprep.subr.bf16.mxu0 %v5127_v39  ;;  %v9447_v18 = vmul.f32 %v10787_v47, %v10786_v22  ;;  %v9450_v19 = vmul.f32 %v5524_v2, %v9020_v14  ;;  %v3629_v31 = vadd.f32 %v3628_v38, %v10785_v62  ;;  %v10789_v5 = vld [vmem:[#allocation52_spill] sm:$0xff]  ;;  %v3623_v41 = vrot.slane %v10790_v51, 2  ;;  %v10791_v34 = vld [vmem:[#allocation9_spill] sm:$0xff] }
 0x2e8   : > { %v5528_v8 = vpop.eup %5527  ;;  %v9453_v42 = vmul.f32 %v5526_v57, %v9017_v53  ;;  %5160 = vmatprep.subr.bf16.mxu1 %v5159_v49  ;;  %v3655_v10 = vadd.f32 %v10789_v5, %v10788_v23  ;;  %v9469_v53 = vld [vmem:[%s9813_s6 + $0x78] sm:$0xff]  ;;  %v9474_v14 = vld [vmem:[%s9813_s6 + $0x1f0] sm:$0xff]  ;;  %v3649_v62 = vrot.slane %v10791_v34, 4 }
 0x2e9   : > { %v9464_v52 = vpop.eup %5529  ;;  %v9482_v6 = vmul.f32 %v5528_v8, %v9039_v15  ;;  %v3683_v44 = vadd.f32 %v9002_v56, %v9447_v18  ;;  %v10792_v38 = vld [vmem:[#allocation8_spill] sm:$0xff]  ;;  %v9496_v37 = vld [vmem:[%s9813_s6 + $0x178] sm:$0xff]  ;;  %v3630_v15 = vrot.slane %v3629_v31, 2  ;;  %v3624_v35 = vadd.f32 %v3623_v41, %v10790_v51 }
 0x2ea   : > { %v3677_v24 = vrot.slane %v10792_v38, 4  ;;  %5130 = vmatpush3.bf16.msra.mxu0 %v5129_v1  ;;  %v9491_v33 = vld [vmem:[%s9813_s6 + $0x170] sm:$0xff]  ;;  %v3656_v39 = vrot.slane %v3655_v10, 4  ;;  %v3704_v30 = vadd.f32 %v9453_v42, %v9443_v61  ;;  %v3650_v13 = vadd.f32 %v3649_v62, %v10791_v34 }
 0x2eb   : > { %5162 = vmatpush3.bf16.msra.mxu1 %v5161_v27  ;;  %5132 = vmatprep.subr.bf16.mxu0 %v5131_v17  ;;  %v3684_v1 = vrot.slane %v3683_v44, 4  ;;  %v3711_v49 = vadd.f32 %v9482_v6, %v9450_v19  ;;  %v5141_v57 = vpack.c.bf16 %v9469_v53, %v9458_v26  ;;  %v5171_v22 = vpack.c.bf16 %v9479_v60, %v9474_v14 }
 0x2ec   : > { %v3678_v2 = vadd.f32 %v3677_v24, %v10792_v38  ;;  %5164 = vmatprep.subr.bf16.mxu1 %v5163_v55  ;;  %v3631_v47 = vadd.f32 %v3630_v15, %v3629_v31  ;;  %v3657_v8 = vadd.f32 %v3656_v39, %v3655_v10  ;;  %v5173_v27 = vpack.c.bf16 %v9496_v37, %v9491_v33 }
 0x2ed   : > { %v3685_v17 = vadd.f32 %v3684_v1, %v3683_v44  ;;  %v3712_v51 = vrot.slane %v3711_v49, 4  ;;  %v3651_v41 = vrot.slane %v3650_v13, 2  ;;  %v9511_v40 = vpop.eup %5531  ;;  %v3705_v62 = vrot.slane %v3704_v30, 4 }
 0x2ee   : > { %5134 = vmatpush3.bf16.msra.mxu0 %v5133_v0  ;;  %v3658_v34 = vrot.slane %v3657_v8, 2  ;;  %v3679_v55 = vrot.slane %v3678_v2, 2  ;;  %v5534_v38 = vpop.eup %5533  ;;  %v3625_v31 = vrot.slane %v3624_v35, 1  ;;  %v3632_v44 = vrot.slane %v3631_v47, 1 }
 0x2ef   : > { %5166 = vmatpush3.bf16.msra.mxu1 %v5165_v63  ;;  %5136 = vmatprep.subr.bf16.mxu0 %v5135_v54  ;;  %v3686_v26 = vrot.slane %v3685_v17, 2  ;;  %v3713_v53 = vadd.f32 %v3712_v51, %v3711_v49  ;;  %v3652_v10 = vadd.f32 %v3651_v41, %v3650_v13  ;;  %v5536_v14 = vpop.eup %5535  ;;  %v3494_v60 = vadd.f32 1.0, %v5534_v38 }
 0x2f0   : > { %5168 = vmatprep.subr.bf16.mxu1 %v5167_v59  ;;  %v3659_v24 = vadd.f32 %v3658_v34, %v3657_v8  ;;  %v3680_v33 = vadd.f32 %v3679_v55, %v3678_v2  ;;  %v5538_v37 = vpop.eup %5537  ;;  %v3495_v15 = vadd.f32 1.0, %v5536_v14  ;;  %v3706_v49 = vadd.f32 %v3705_v62, %v3704_v30  ;;  %v10794_v34 = vld [vmem:[#allocation48_spill] sm:$0xff] }
 0x2f1   : > { %v3687_v0 = vadd.f32 %v3686_v26, %v3685_v17  ;;  %v3714_v39 = vrot.slane %v3713_v53, 2  ;;  %v3653_v1 = vrot.slane %v3652_v10, 1  ;;  %5539 = vrcp.f32 %v3494_v60  ;;  %v10795_v55 = vld [vmem:[#allocation104_spill] sm:$0xff] }
 0x2f2   : > { %5138 = vmatpush3.bf16.msra.mxu0 %v5137_v21  ;;  %v3660_v63 = vrot.slane %v3659_v24, 1  ;;  %v3681_v54 = vrot.slane %v3680_v33, 1  ;;  %5541 = vrcp.f32 %v3495_v15  ;;  %v10793_v59 = vpack.c.bf16 %v9422_v12, %v9417_v45 }
 0x2f3   : > { %5170 = vmatpush3.bf16.msra.mxu1 %v5169_v9  ;;  %v3688_v13 = vrot.slane %v3687_v0, 1  ;;  %v3715_v2 = vadd.f32 %v3714_v39, %v3713_v53  ;;  %v3626_v8 = vadd.f32 %v3625_v31, %v3624_v35  ;;  %v3633_v17 = vadd.f32 %v3632_v44, %v3631_v47  ;;  %v10797_v47 = vld [vmem:[#allocation47_spill] sm:$0xff] }
 0x2f4   : > { %5140 = vmatprep.subr.bf16.mxu0 %v10793_v59  ;;  %5172 = vmatprep.subr.bf16.mxu1 %v5171_v22  ;;  %v3661_v51 = vadd.f32 %v3660_v63, %v3659_v24  ;;  %v3654_v16 = vadd.f32 %v3653_v1, %v3652_v10  ;;  %v3707_v43 = vrot.slane %v3706_v49, 2  ;;  %v3682_v30 = vadd.f32 %v3681_v54, %v3680_v33  ;;  %v10796_v22 = vld [vmem:[#allocation58_spill] sm:$0xff] }
 0x2f5   : > { %v3689_v21 = vadd.f32 %v3688_v13, %v3687_v0  ;;  %v3716_v41 = vrot.slane %v3715_v2, 1  ;;  %v9524_v62 = vmul.f32 %v10795_v55, %v10794_v34  ;;  %v9529_v45 = vmul.f32 %v9332_v28, %v8939_v29  ;;  %v10799_v29 = vld [vmem:[#allocation55_spill] sm:$0xff] }
 0x2f6   : > { %5142 = vmatpush3.bf16.msra.mxu0 %v5141_v57  ;;  %v3734_v46 = vsel %vm3732_vm6, %v3633_v17, %v3661_v51  ;;  %v3708_v58 = vadd.f32 %v3707_v43, %v3706_v49  ;;  %v9533_v12 = vmul.f32 %v9464_v52, %v8956_v25  ;;  %v3669_v38 = vadd.f32 %v10797_v47, %v10796_v22  ;;  %v10798_v57 = vld [vmem:[#allocation102_spill] sm:$0xff] }
 0x2f7   : > { %5174 = vmatpush3.bf16.msra.mxu1 %v5173_v27  ;;  %v3717_v9 = vadd.f32 %v3716_v41, %v3715_v2  ;;  %v3738_v35 = vsel %vm3313_vm5, %v3734_v46, %v3689_v21  ;;  %v3697_v26 = vadd.f32 %v10798_v57, %v9524_v62  ;;  %v3663_v28 = vrot.slane %v10799_v29, 4 }
 0x2f8   : > { %v3709_v53 = vrot.slane %v3708_v58, 1  ;;  %v3725_v31 = vadd.f32 %v9533_v12, %v9529_v45  ;;  %v3691_v10 = vrot.slane %v9295_v32, 4  ;;  %v3670_v52 = vrot.slane %v3669_v38, 4 }
 0x2f9   : > { %v3743_v25 = vsel %vm3741_vm7, %v3738_v35, %v3717_v9  ;;  %v3698_v27 = vrot.slane %v3697_v26, 4  ;;  %v3718_v14 = vadd.f32 %v9367_v20, %v9364_v4  ;;  %v3733_v44 = vsel %vm3732_vm6, %v3626_v8, %v3654_v16 }
 0x2fa   : > { %3881 = vmatprep.mubr.f32.mxu0 %v3743_v25  ;;  %v3710_v60 = vadd.f32 %v3709_v53, %v3708_v58  ;;  %v3726_v24 = vrot.slane %v3725_v31, 4  ;;  %v9550_v33 = vmul.f32 %v9511_v40, %v9083_v48  ;;  %v3737_v15 = vsel %vm3313_vm5, %v3733_v44, %v3682_v30 }
 0x2fb   : > { %v3664_v0 = vadd.f32 %v3663_v28, %v10799_v29  ;;  %v3719_v39 = vrot.slane %v3718_v14, 4  ;;  %v5540_v1 = vpop.eup %5539  ;;  %v9555_v63 = vmul.f32 %v5538_v37, %v9091_v36  ;;  %v3671_v49 = vadd.f32 %v3670_v52, %v3669_v38 }
 0x2fc   : > { %v3742_v54 = vsel %vm3741_vm7, %v3737_v15, %v3710_v60  ;;  %v3692_v59 = vadd.f32 %v3691_v10, %v9295_v32  ;;  %v5542_v13 = vpop.eup %5541  ;;  %v9560_v2 = vmul.f32 %v5540_v1, %v9335_v11  ;;  %v3699_v48 = vadd.f32 %v3698_v27, %v3697_v26 }
 0x2fd   : > { %3882 = vmatmul.mubr.f32.vlgmr.msra.gmra.mrb[20].mxu0 %v3742_v54  ;;  %v3720_v40 = vadd.f32 %v3719_v39, %v3718_v14  ;;  %v9563_v8 = vmul.f32 %v5542_v13, %v9338_v3  ;;  %v3727_v17 = vadd.f32 %v3726_v24, %v3725_v31  ;;  %v3665_v37 = vrot.slane %v3664_v0, 2 }
 0x2fe   : > { %v3634_v36 = vadd.f32 %v9550_v33, %v9560_v2  ;;  %v3672_v16 = vrot.slane %v3671_v49, 2  ;;  %v3693_v32 = vrot.slane %v3692_v59, 2  ;;  %v3700_v21 = vrot.slane %v3699_v48, 2 }
 0x2ff   : > { %v3641_v51 = vadd.f32 %v9555_v63, %v9563_v8  ;;  %v3721_v11 = vrot.slane %v3720_v40, 2  ;;  %v3728_v30 = vrot.slane %v3727_v17, 2  ;;  %v3666_v55 = vadd.f32 %v3665_v37, %v3664_v0 }
 0x300   : > { %v3635_v43 = vrot.slane %v3634_v36, 4  ;;  %v3673_v3 = vadd.f32 %v3672_v16, %v3671_v49  ;;  %v3694_v58 = vadd.f32 %v3693_v32, %v3692_v59  ;;  %v3701_v9 = vadd.f32 %v3700_v21, %v3699_v48 }
 0x301   : > { %v3642_v41 = vrot.slane %v3641_v51, 4  ;;  %v3722_v38 = vadd.f32 %v3721_v11, %v3720_v40  ;;  %v3729_v53 = vadd.f32 %v3728_v30, %v3727_v17  ;;  %v3667_v29 = vrot.slane %v3666_v55, 1 }
 0x302   : > { %v3636_v34 = vadd.f32 %v3635_v43, %v3634_v36  ;;  %v3674_v10 = vrot.slane %v3673_v3, 1  ;;  %v3695_v25 = vrot.slane %v3694_v58, 1  ;;  %v3702_v52 = vrot.slane %v3701_v9, 1 }
 0x303   : > { %v3643_v46 = vadd.f32 %v3642_v41, %v3641_v51  ;;  %v3723_v14 = vrot.slane %v3722_v38, 1  ;;  %v3730_v44 = vrot.slane %v3729_v53, 1  ;;  %v3668_v15 = vadd.f32 %v3667_v29, %v3666_v55  ;;  %v3964_v51 = vld [vmem:[%s9815_s8] sm:$0xff] }
 0x304   : > { %v3637_v35 = vrot.slane %v3636_v34, 2  ;;  %v3675_v39 = vadd.f32 %v3674_v10, %v3673_v3  ;;  %v3696_v1 = vadd.f32 %v3695_v25, %v3694_v58  ;;  %v3703_v54 = vadd.f32 %v3702_v52, %v3701_v9  ;;  %v10800_v41 = vld [vmem:[#allocation2_spill] sm:$0xff] }
 0x305   : > { %v3644_v26 = vrot.slane %v3643_v46, 2  ;;  %v3724_v49 = vadd.f32 %v3723_v14, %v3722_v38  ;;  %v3731_v13 = vadd.f32 %v3730_v44, %v3729_v53  ;;  %v5583_v16 = vmov 1983009808   ;;  %v4914_v38 = vld [vmem:[%s9814_s7] ss:$0 sm:$0xff] }
 0x306   : > { %v3638_v31 = vadd.f32 %v3637_v35, %v3636_v34  ;;  %v3990_v32 = vunpack.c.l.s4 %v5583_v16  ;;  %v5584_v43 = vmov 0.0   ;;  %v3988_v11 = vcombine.high %v3964_v51, %v3964_v51  ;;  %v5240_v44 = vld [vmem:[%s9817_s10 + $0xc0] sm:$0xff]  }
 0x307   : > { %v3645_v28 = vadd.f32 %v3644_v26, %v3643_v46  ;;  %4081 = vmatprep.mubr.f32.mxu0 %v5584_v43  ;;  %v5256_v16 = vld [vmem:[%s9817_s10 + $0xe0] sm:$0xff]  }
 0x308   : > { %v3639_v27 = vrot.slane %v3638_v31, 1  ;;  %v3991_v21 = vunpack.c.0.s8 %v3990_v32  ;;  %v5257_v32 = vld [vmem:[%s9817_s10 + $0x20] sm:$0xff]  }
 0x309   : > { %v3646_v60 = vrot.slane %v3645_v28, 1 }
 0x30a   : > { %v3640_v24 = vadd.f32 %v3639_v27, %v3638_v31  ;;  %v3994_v30 = vsub.s32 %v3991_v21, %v10800_v41  ;;  %v5259_v21 = vld [vmem:[%s9817_s10 + $0x68] sm:$0xff]  }
 0x30b   : > { %v3647_v0 = vadd.f32 %v3646_v60, %v3645_v28  ;;  %v5239_v60 = vld [vmem:[%s9817_s10 + $0x40] sm:$0xff]   ;;  %v5261_v41 = vld [vmem:[%s9817_s10 + $0x28] sm:$0xff]  }
 0x30c   : > { %v3735_v59 = vsel %vm3732_vm6, %v3640_v24, %v3668_v15  ;;  %v3995_v34 = vrot.slane %v3964_v51, %v3994_v30  ;;  %v4002_v55 = vrot.slane %v3988_v11, %v3994_v30  ;;  %v5241_v24 = vld [vmem:[%s9817_s10] sm:$0xff]   ;;  %v5260_v11 = vld [vmem:[%s9817_s10 + $0xe8] sm:$0xff]  }
 0x30d   : > { %v3736_v48 = vsel %vm3732_vm6, %v3647_v0, %v3675_v39  ;;  %v3739_v40 = vsel %vm3313_vm5, %v3735_v59, %v3696_v1  ;;  %v5242_v15 = vld [vmem:[%s9817_s10 + $0x80] sm:$0xff]   ;;  %v5243_v0 = vld [vmem:[%s9817_s10 + $0x48] sm:$0xff]   ;;  %v5248_v59 = vld [vmem:[%s9817_s10 + $0xd0] sm:$0xff]  }
 0x30e   : > { %v3740_v17 = vsel %vm3313_vm5, %v3736_v48, %v3703_v54  ;;  %v3744_v36 = vsel %vm3741_vm7, %v3739_v40, %v3724_v49  ;;  %v4003_v46 = vcombine.high %v3995_v34, %v3995_v34  ;;  %v4004_v3 = vcombine.high %v4002_v55, %v4002_v55  ;;  %v5244_v39 = vld [vmem:[%s9817_s10 + $0xc8] sm:$0xff]   ;;  %v5247_v49 = vld [vmem:[%s9817_s10 + $0x50] sm:$0xff]   ;;  %v5251_v40 = vld [vmem:[%s9817_s10 + $0x58] sm:$0xff]  }
 0x30f   : > { %v3745_v37 = vsel %vm3741_vm7, %v3740_v17, %v3731_v13  ;;  %v5245_v1 = vld [vmem:[%s9817_s10 + $0x8] sm:$0xff]   ;;  %v5249_v13 = vld [vmem:[%s9817_s10 + $0x10] sm:$0xff]   ;;  %v5252_v17 = vld [vmem:[%s9817_s10 + $0xd8] sm:$0xff]  }
 0x310   : > { %3951 = vmatprep.mubr.f32.mxu1 %v3745_v37  ;;  %4916 = vmatprep.subr.msk.mxu0 %vm3313_vm5, %v4003_v46  ;;  %v5246_v54 = vld [vmem:[%s9817_s10 + $0x88] sm:$0xff]   ;;  %v5250_v48 = vld [vmem:[%s9817_s10 + $0x90] sm:$0xff]   ;;  %v5254_v37 = vld [vmem:[%s9817_s10 + $0x98] sm:$0xff]  }
 0x311   : > { %3952 = vmatmul.mubr.f32.vlgmr.msra.gmra.mrb[20].mxu1 %v3744_v36  ;;  %4919 = vmatprep.subr.msk.mxu1 %vm3313_vm5, %v4004_v3  ;;  %v5253_v36 = vld [vmem:[%s9817_s10 + $0x18] sm:$0xff]   ;;  %v5255_v51 = vld [vmem:[%s9817_s10 + $0x60] sm:$0xff]   ;;  %v5262_v30 = vld [vmem:[%s9817_s10 + $0xa8] sm:$0xff]  }
 0x312   : > { %4152 = vmatprep.mubr.f32.mxu1 %v5584_v43  ;;  %4917 = vmatpush1.msk.msra.mxu0 %vm3313_vm5, %v3995_v34  ;;  %v5258_v43 = vld [vmem:[%s9817_s10 + $0xa0] sm:$0xff]   ;;  %v5263_v34 = vld [vmem:[%s9817_s10 + $0x70] sm:$0xff]  }
 0x313   : > { %4920 = vmatpush1.msk.msra.mxu1 %vm3313_vm5, %v4002_v55  ;;  %5031 = vmatprep.subr.bf16.mxu0 %v5239_v60  ;;  %v5264_v55 = vld [vmem:[%s9817_s10 + $0xf0] sm:$0xff]  }
 0x314   : > { %5071 = vmatprep.subr.bf16.mxu1 %v5240_v44  ;;  %v5265_v46 = vld [vmem:[%s9817_s10 + $0x30] sm:$0xff]  }
 0x315   : > { %v5266_v3 = vld [vmem:[%s9817_s10 + $0xb0] sm:$0xff]  }
 0x3d0   : > { %v4993_v58 = vpop.f32.mrb[20].mxu0 }
 0x3d1   : > { %v4994_v9 = vpop.f32.mrb[21].mxu0 }
 0x3d2   : > { %v4995_v35 = vadd.f32 %v4994_v9, %v4993_v58  ;;  %v5267_v58 = vld [vmem:[%s9817_s10 + $0x78] sm:$0xff]  }
 0x3d3   : > { %v5268_v9 = vld [vmem:[%s9817_s10 + $0xf8] sm:$0xff]  }
 0x3d4   : > { %v3884_v26 = vadd.f32 %v4995_v35, %v4914_v38  ;;  %v5269_v35 = vld [vmem:[%s9817_s10 + $0x38] sm:$0xff]  }
 0x3d5   : > { %v5270_v38 = vld [vmem:[%s9817_s10 + $0xb8] sm:$0xff]  }
 0x3e4   : > { %v5028_v53 = vpop.f32.mrb[20].mxu1 }
 0x3e5   : > { %v5029_v31 = vpop.f32.mrb[21].mxu1 }
 0x3e6   : > { %v5030_v29 = vadd.f32 %v5029_v31, %v5028_v53  ;;  %v10801_v53 = vld [vmem:[#allocation3_spill] sm:$0xff] }
 0x3e8   : > { %v3954_v28 = vadd.f32 %v5030_v29, %v3884_v26  ;;  %v3965_v26 = vld [vmem:[%s9816_s9] sm:$0xf]  ;;  %v10802_v29 = vld [vmem:[#allocation4_spill] sm:$0xff] }
 0x3e9   : > { %v3970_v31 = vrot.slane %v3965_v26, %v10801_v53 }
 0x3ea   : > { %v4915_v10 = vmul.f32 -1.442695, %v3954_v28 }
 0x3ec   : > { %5543 = vpow2.f32 %v4915_v10  ;;  %v10803_v10 = vld [vmem:[#allocation5_spill] sm:$0xff] }
 0x3f6   : > { %v5544_v25 = vpop.eup %5543 }
 0x3f7   : > { %v3960_v52 = vadd.f32 1.0, %v5544_v25  ;;  %v3974_v25 = vrot.slane %v3965_v26, %v10803_v10 }
 0x3f9   : > { %5545 = vrcp.f32 %v3960_v52  ;;  %v10804_v52 = vld [vmem:[#allocation6_spill] sm:$0xff] }
 0x403   : > { %v5546_v27 = vpop.eup %5545 }
 0x404   : > { %v3963_v14 = vmul.f32 %v5546_v27, %v3954_v28  ;;  %v3978_v28 = vrot.slane %v3965_v26, %v10802_v29  ;;  %v3982_v27 = vrot.slane %v3965_v26, %v10804_v52 }
 0x406   : > { %4918 = vmatmul.mubr.msk.f32.vlgmr.msra.gmra.mrb[22].mxu0 %vm4005_vm8, %v3963_v14  ;;  %4921 = vmatmul.mubr.msk.f32.vlgmr.msra.gmra.mrb[22].mxu1 %vm4005_vm8, %v3963_v14 }
 0x407   : > { %5032 = vmatpush3.bf16.msra.mxu0 %v5241_v24  ;;  %5072 = vmatpush3.bf16.msra.mxu1 %v5242_v15 }
 0x408   : > { %5033 = vmatprep.subr.bf16.mxu0 %v5243_v0  ;;  %5073 = vmatprep.subr.bf16.mxu1 %v5244_v39 }
 0x40b   : > { %5034 = vmatpush3.bf16.msra.mxu0 %v5245_v1  ;;  %5074 = vmatpush3.bf16.msra.mxu1 %v5246_v54 }
 0x40c   : > { %5035 = vmatprep.subr.bf16.mxu0 %v5247_v49  ;;  %5075 = vmatprep.subr.bf16.mxu1 %v5248_v59 }
 0x40f   : > { %5036 = vmatpush3.bf16.msra.mxu0 %v5249_v13  ;;  %5076 = vmatpush3.bf16.msra.mxu1 %v5250_v48 }
 0x410   : > { %5037 = vmatprep.subr.bf16.mxu0 %v5251_v40  ;;  %5077 = vmatprep.subr.bf16.mxu1 %v5252_v17 }
 0x413   : > { %5038 = vmatpush3.bf16.msra.mxu0 %v5253_v36  ;;  %5078 = vmatpush3.bf16.msra.mxu1 %v5254_v37 }
 0x414   : > { %5039 = vmatprep.subr.bf16.mxu0 %v5255_v51  ;;  %5079 = vmatprep.subr.bf16.mxu1 %v5256_v16 }
 0x417   : > { %5040 = vmatpush3.bf16.msra.mxu0 %v5257_v32  ;;  %5080 = vmatpush3.bf16.msra.mxu1 %v5258_v43 }
 0x418   : > { %5041 = vmatprep.subr.bf16.mxu0 %v5259_v21  ;;  %5081 = vmatprep.subr.bf16.mxu1 %v5260_v11 }
 0x41b   : > { %5042 = vmatpush3.bf16.msra.mxu0 %v5261_v41  ;;  %5082 = vmatpush3.bf16.msra.mxu1 %v5262_v30 }
 0x41c   : > { %5043 = vmatprep.subr.bf16.mxu0 %v5263_v34  ;;  %5083 = vmatprep.subr.bf16.mxu1 %v5264_v55 }
 0x41f   : > { %5044 = vmatpush3.bf16.msra.mxu0 %v5265_v46  ;;  %5084 = vmatpush3.bf16.msra.mxu1 %v5266_v3  ;;  %v10805_v46 = vld [vmem:[#allocation10_spill] sm:$0xff] }
 0x420   : > { %5045 = vmatprep.subr.bf16.mxu0 %v5267_v58  ;;  %5085 = vmatprep.subr.bf16.mxu1 %v5268_v9 }
 0x423   : > { %5046 = vmatpush3.bf16.msra.mxu0 %v5269_v35  ;;  %5086 = vmatpush3.bf16.msra.mxu1 %v5270_v38  ;;  %v10806_v35 = vld [vmem:[#allocation38_spill] sm:$0xff] }
 0x4d9   : > { %v4083_v14 = vpop.f32.mrb[22].mxu0  ;;  %v4154_v60 = vpop.f32.mrb[22].mxu1 }
 0x4da   : > { %v4084_v44 = vadd.f32 %v4083_v14, %v3970_v31  ;;  %v4155_v24 = vadd.f32 %v4154_v60, %v3978_v28  ;;  %v4085_v15 = vpop.f32.mrb[23].mxu0  ;;  %v4156_v0 = vpop.f32.mrb[23].mxu1  ;;  %v10807_v28 = vld [vmem:[#allocation44_spill] sm:$0xff] }
 0x4db   : > { %v4086_v39 = vadd.f32 %v4085_v15, %v3974_v25  ;;  %v4157_v1 = vadd.f32 %v4156_v0, %v3982_v27  ;;  %v10808_v27 = vld [vmem:[#allocation43_spill] sm:$0xff] }
 0x4dc   : > { %v4922_v54 = vmul.f32 -1.442695, %v4084_v44  ;;  %v4924_v49 = vmul.f32 -1.442695, %v4155_v24 }
 0x4dd   : > { %v4923_v59 = vmul.f32 -1.442695, %v4086_v39  ;;  %v4925_v13 = vmul.f32 -1.442695, %v4157_v1 }
 0x4de   : > { %5547 = vpow2.f32 %v4922_v54 }
 0x4df   : > { %5549 = vpow2.f32 %v4924_v49 }
 0x4e0   : > { %5551 = vpow2.f32 %v4923_v59 }
 0x4e1   : > { %5553 = vpow2.f32 %v4925_v13  ;;  %v10810_v13 = vld [vmem:[#allocation36_spill] sm:$0xff] }
 0x4e8   : > { %v5548_v48 = vpop.eup %5547 }
 0x4e9   : > { %v5550_v40 = vpop.eup %5549  ;;  %v4171_v17 = vadd.f32 1.0, %v5548_v48 }
 0x4ea   : > { %v5552_v36 = vpop.eup %5551  ;;  %v4173_v37 = vadd.f32 1.0, %v5550_v40  ;;  %v10811_v40 = vld [vmem:[#allocation46_spill] sm:$0xff] }
 0x4eb   : > { %v5554_v51 = vpop.eup %5553  ;;  %5555 = vrcp.f32 %v4171_v17  ;;  %v4172_v16 = vadd.f32 1.0, %v5552_v36  ;;  %v10812_v36 = vld [vmem:[#allocation57_spill] sm:$0xff] }
 0x4ec   : > { %5557 = vrcp.f32 %v4173_v37  ;;  %v4174_v32 = vadd.f32 1.0, %v5554_v51 }
 0x4ed   : > { %5559 = vrcp.f32 %v4172_v16 }
 0x4ee   : > { %5561 = vrcp.f32 %v4174_v32 }
 0x4f5   : > { %v9689_v43 = vpop.eup %5555 }
 0x4f6   : > { %v9691_v21 = vpop.eup %5557  ;;  %v4186_v11 = vrot.slane %v9689_v43, %v10801_v53  ;;  %v4210_v49 = vrot.slane %v9689_v43, %v10803_v10 }
 0x4f7   : > { %v5560_v41 = vpop.eup %5559  ;;  %v4194_v30 = vrot.slane %v9691_v21, %v10801_v53 }
 0x4f8   : > { %v5562_v34 = vpop.eup %5561  ;;  %v4190_v55 = vrot.slane %v5560_v41, %v10801_v53  ;;  %v4199_v3 = vmul.f32 %v4186_v11, %v10805_v46  ;;  %v4214_v58 = vrot.slane %v5560_v41, %v10803_v10  ;;  %v4203_v38 = vmul.f32 %v4186_v11, %v10806_v35 }
 0x4f9   : > { %v4198_v9 = vrot.slane %v5562_v34, %v10801_v53  ;;  %v4201_v26 = vmul.f32 %v4194_v30, %v9560_v2  ;;  %v4222_v31 = vrot.slane %v5562_v34, %v10803_v10  ;;  %v4205_v60 = vmul.f32 %v4194_v30, %v9550_v33 }
 0x4fa   : > { %v4200_v25 = vmul.f32 %v4190_v55, %v10807_v28  ;;  %v4204_v14 = vmul.f32 %v4190_v55, %v10808_v27  ;;  %v4224_v44 = vmul.f32 %v4214_v58, %v10788_v23  ;;  %v4228_v53 = vmul.f32 %v4214_v58, %v10789_v5 }
 0x4fb   : > { %v4202_v24 = vmul.f32 %v4198_v9, %v9563_v8  ;;  %v4206_v15 = vmul.f32 %v4198_v9, %v9555_v63  ;;  %v4226_v39 = vmul.f32 %v4222_v31, %v10796_v22  ;;  %v4230_v2 = vmul.f32 %v4222_v31, %v10797_v47  ;;  %v10809_v47 = vld [vmem:[#allocation49_spill] sm:$0xff] }
 0x4fc   : > { %v4280_v0 = vpack.c.bf16 %v4204_v14, %v4200_v25  ;;  %v4279_v54 = vpack.c.bf16 %v4203_v38, %v4199_v3  ;;  %v4281_v33 = vpack.c.bf16 %v4205_v60, %v4201_v26  ;;  %v4284_v59 = vpack.c.bf16 %v4228_v53, %v4224_v44  ;;  %v5564_v44 = vld [vmem:[%s5745_s14 + $0x8] sm:$0xff] }
 0x4fd   : > { %v4282_v1 = vpack.c.bf16 %v4206_v15, %v4202_v24  ;;  %v4218_v23 = vrot.slane %v9691_v21, %v10803_v10  ;;  %v4238_v63 = vrot.slane %v5560_v41, %v10802_v29  ;;  %v4286_v5 = vpack.c.bf16 %v4230_v2, %v4226_v39  ;;  %v5565_v15 = vld [vmem:[%s5745_s14 + $0x10] sm:$0xff]  ;;  %v5567_v39 = vld [vmem:[%s5745_s14 + $0x20] sm:$0xff] }
 0x4fe   : > { %4590 = vmatprep.mubr.bf16.mxu0 %v4280_v0  ;;  %v4246_v22 = vrot.slane %v5562_v34, %v10802_v29  ;;  %v4223_v8 = vmul.f32 %v4210_v49, %v10809_v47  ;;  %v4227_v48 = vmul.f32 %v4210_v49, %v10810_v13  ;;  %v4234_v30 = vrot.slane %v9689_v43, %v10802_v29  ;;  %v5568_v49 = vld [vmem:[%s5745_s14 + $0x28] sm:$0xff]  ;;  %v5570_v47 = vld [vmem:[%s5745_s14 + $0x38] sm:$0xff] }
 0x4ff   : > { %4655 = vmatprep.mubr.bf16.mxu1 %v4282_v1  ;;  %4591 = vmatmul.mubr.bf16.vlgmr.msra.gmra.mrb[24].mxu0 %v4279_v54  ;;  %v4225_v17 = vmul.f32 %v4218_v23, %v10811_v40  ;;  %v4229_v37 = vmul.f32 %v4218_v23, %v10812_v36  ;;  %v4248_v10 = vmul.f32 %v4238_v63, %v9447_v18  ;;  %v4692_v24 = vrot.slane %v5564_v44, 1  ;;  %v5569_v23 = vld [vmem:[%s5745_s14 + $0x30] sm:$0xff] }
 0x500   : > { %4656 = vmatmul.mubr.bf16.vlgmr.msra.gmra.mrb[24].mxu1 %v4281_v33  ;;  %4598 = vmatprep.mubr.bf16.mxu0 %v4284_v59  ;;  %v4252_v51 = vmul.f32 %v4238_v63, %v9002_v56  ;;  %v4250_v16 = vmul.f32 %v4246_v22, %v9524_v62  ;;  %v4254_v32 = vmul.f32 %v4246_v22, %v10798_v57  ;;  %v10813_v56 = vld [vmem:[#allocation27_spill] sm:$0xff]  ;;  %v10814_v57 = vld [vmem:[#allocation122_spill] sm:$0xff]  ;;  %v4704_v2 = vrot.slane %v5567_v39, 3 }
 0x501   : > { %4663 = vmatprep.mubr.bf16.mxu1 %v4286_v5  ;;  %v4283_v11 = vpack.c.bf16 %v4227_v48, %v4223_v8  ;;  %v4285_v55 = vpack.c.bf16 %v4229_v37, %v4225_v17  ;;  %v4242_v3 = vrot.slane %v9691_v21, %v10802_v29  ;;  %v4262_v58 = vrot.slane %v5560_v41, %v10804_v52  ;;  %v5571_v48 = vld [vmem:[%s5745_s14 + $0x40] sm:$0xff] }
 0x502   : > { %v4288_v46 = vpack.c.bf16 %v4252_v51, %v4248_v10  ;;  %v4290_v9 = vpack.c.bf16 %v4254_v32, %v4250_v16  ;;  %v4270_v18 = vrot.slane %v5562_v34, %v10804_v52  ;;  %v4247_v62 = vmul.f32 %v4234_v30, %v10813_v56  ;;  %v9777_v51 = vld [vmem:[%s9818_s11] ss:$0 sm:$0xff] }
 0x503   : > { %v4251_v35 = vmul.f32 %v4234_v30, %v10814_v57  ;;  %v4249_v38 = vmul.f32 %v4242_v3, %v9032_v50  ;;  %v4253_v26 = vmul.f32 %v4242_v3, %v9036_v7  ;;  %v4272_v31 = vmul.f32 %v4262_v58, %v9450_v19 }
 0x504   : > { %v4276_v29 = vmul.f32 %v4262_v58, %v9482_v6  ;;  %v4274_v41 = vmul.f32 %v4270_v18, %v9529_v45  ;;  %v4278_v28 = vmul.f32 %v4270_v18, %v9533_v12  ;;  %v4258_v25 = vrot.slane %v9689_v43, %v10804_v52 }
 0x505   : > { %v4287_v34 = vpack.c.bf16 %v4251_v35, %v4247_v62  ;;  %v4289_v27 = vpack.c.bf16 %v4253_v26, %v4249_v38  ;;  %v4266_v50 = vrot.slane %v9691_v21, %v10804_v52  ;;  %v5563_v52 = vld [vmem:[%s5745_s14] sm:$0xff]  ;;  %v4710_v54 = vrot.slane %v5567_v39, 5 }
 0x506   : > { %v4292_v14 = vpack.c.bf16 %v4276_v29, %v4272_v31  ;;  %v4294_v7 = vpack.c.bf16 %v4278_v28, %v4274_v41  ;;  %v4271_v19 = vmul.f32 %v4258_v25, %v9443_v61  ;;  %v4275_v6 = vmul.f32 %v4258_v25, %v9453_v42 }
 0x507   : > { %4599 = vmatmul.mubr.bf16.gmra.mrb[28].mxu0 %v4283_v11  ;;  %v4273_v45 = vmul.f32 %v4266_v50, %v9364_v4  ;;  %v4277_v12 = vmul.f32 %v4266_v50, %v9367_v20  ;;  %v4691_v21 = vrot.slane %v5563_v52, 1  ;;  %v4694_v61 = vrot.slane %v5565_v15, 1  ;;  %v5566_v20 = vld [vmem:[%s5745_s14 + $0x18] sm:$0xff]  ;;  %s4805_s14 = sshll.u32 %s10818_s29, 3 }
 0x508   : > { %4664 = vmatmul.mubr.bf16.gmra.mrb[28].mxu1 %v4285_v55  ;;  %4606 = vmatprep.mubr.bf16.mxu0 %v4288_v46  ;;  %v4291_v43 = vpack.c.bf16 %v4275_v6, %v4271_v19  ;;  %v4701_v4 = vrot.slane %v5565_v15, 3  ;;  %v4702_v0 = vrot.slane %v5566_v20, 3  ;;  %v4711_v33 = vrot.slane %v5568_v49, 5  ;;  %s9784_s16 = scalar_lea.vmem %s9819_s12, %s4805_s14 }
 0x509   : > { %4671 = vmatprep.mubr.bf16.mxu1 %v4290_v9  ;;  %v4293_v60 = vpack.c.bf16 %v4277_v12, %v4273_v45  ;;  %v4693_v42 = vsel %vm1631_vm0, %v4691_v21, %v4692_v24  ;;  %v4695_v53 = vsel %vm1631_vm0, %v4692_v24, %v4694_v61  ;;  %v4713_v63 = vrot.slane %v5569_v23, 5 }
 0x50a   : > { %v4703_v1 = vsel %vm4700_vm9, %v4701_v4, %v4702_v0  ;;  %v4705_v59 = vsel %vm4700_vm9, %v4702_v0, %v4704_v2  ;;  %v9759_v5 = vsel %vm3741_vm7, %v4710_v54, %v4711_v33  ;;  %v4719_v22 = vrot.slane %v5569_v23, 7 }
 0x50b   : > { %v4720_v8 = vrot.slane %v5570_v47, 7  ;;  %v9763_v13 = vsel %vm3741_vm7, %v4711_v33, %v4713_v63  ;;  %v4722_v40 = vrot.slane %v5571_v48, 7 }
 0x50d   : > { %v9767_v17 = vsel %vm3732_vm6, %v4719_v22, %v4720_v8  ;;  %v9770_v36 = vsel %vm3732_vm6, %v4720_v8, %v4722_v40 }
 0x50f   : > { %4607 = vmatmul.mubr.bf16.gmra.mrb[32].mxu0 %v4287_v34 }
 0x510   : > { %4672 = vmatmul.mubr.bf16.gmra.mrb[32].mxu1 %v4289_v27  ;;  %4614 = vmatprep.mubr.bf16.mxu0 %v4292_v14 }
 0x511   : > { %4679 = vmatprep.mubr.bf16.mxu1 %v4294_v7 }
 0x517   : > { %4615 = vmatmul.mubr.bf16.gmra.mrb[36].mxu0 %v4291_v43 }
 0x518   : > { %4680 = vmatmul.mubr.bf16.gmra.mrb[36].mxu1 %v4293_v60 }
 0x5d2   : > { %v5047_v37 = vpop.f32.mrb[24].mxu0 }
 0x5d3   : > { %v5087_v10 = vpop.f32.mrb[24].mxu1  ;;  %v5048_v16 = vpop.f32.mrb[25].mxu0 }
 0x5d4   : > { %v5049_v32 = vadd.f32 %v5048_v16, %v5047_v37  ;;  %v5088_v11 = vpop.f32.mrb[25].mxu1  ;;  %v5050_v30 = vpop.f32.mrb[26].mxu0 }
 0x5d5   : > { %v5089_v55 = vadd.f32 %v5088_v11, %v5087_v10  ;;  %v5090_v46 = vpop.f32.mrb[26].mxu1  ;;  %v5051_v3 = vpop.f32.mrb[27].mxu0 }
 0x5d6   : > { %v4593_v58 = vadd.f32 %v5049_v32, %v9777_v51  ;;  %v5052_v9 = vadd.f32 %v5051_v3, %v5050_v30  ;;  %v5091_v18 = vpop.f32.mrb[27].mxu1 }
 0x5d7   : > { %v5092_v56 = vadd.f32 %v5091_v18, %v5090_v46 }
 0x5d8   : > { %v4658_v62 = vadd.f32 %v5089_v55, %v4593_v58  ;;  %v4596_v57 = vadd.f32 %v5052_v9, %v9777_v51 }
 0x5da   : > { %v4726_v35 = vadd.f32 %v4693_v42, %v4658_v62  ;;  %v4661_v38 = vadd.f32 %v5092_v56, %v4596_v57  ;;  %v5053_v26 = vpop.f32.mrb[28].mxu0 }
 0x5db   : > { %v5093_v31 = vpop.f32.mrb[28].mxu1  ;;  %v5054_v29 = vpop.f32.mrb[29].mxu0 }
 0x5dc   : > { %4734 = vst [vmem:[%s9784_s16] sm:$0xff] %v4726_v35  ;;  %v4727_v41 = vadd.f32 %v4695_v53, %v4661_v38  ;;  %v5055_v28 = vadd.f32 %v5054_v29, %v5053_v26  ;;  %v5094_v34 = vpop.f32.mrb[29].mxu1  ;;  %v5056_v25 = vpop.f32.mrb[30].mxu0 }
 0x5dd   : > { %v5095_v27 = vadd.f32 %v5094_v34, %v5093_v31  ;;  %v5096_v14 = vpop.f32.mrb[30].mxu1  ;;  %v5057_v50 = vpop.f32.mrb[31].mxu0 }
 0x5de   : > { %4735 = vst [vmem:[%s9784_s16 + $0x8] sm:$0xff] %v4727_v41  ;;  %v4601_v7 = vadd.f32 %v5055_v28, %v9777_v51  ;;  %v5058_v19 = vadd.f32 %v5057_v50, %v5056_v25  ;;  %v5097_v6 = vpop.f32.mrb[31].mxu1 }
 0x5df   : > { %v5098_v45 = vadd.f32 %v5097_v6, %v5096_v14 }
 0x5e0   : > { %v4666_v12 = vadd.f32 %v5095_v27, %v4601_v7  ;;  %v4604_v43 = vadd.f32 %v5058_v19, %v9777_v51 }
 0x5e2   : > { %v4728_v60 = vadd.f32 %v4703_v1, %v4666_v12  ;;  %v4669_v52 = vadd.f32 %v5098_v45, %v4604_v43  ;;  %v5059_v21 = vpop.f32.mrb[32].mxu0 }
 0x5e3   : > { %v5099_v44 = vpop.f32.mrb[32].mxu1  ;;  %v5060_v24 = vpop.f32.mrb[33].mxu0 }
 0x5e4   : > { %4736 = vst [vmem:[%s9784_s16 + $0x10] sm:$0xff] %v4728_v60  ;;  %v4729_v15 = vadd.f32 %v4705_v59, %v4669_v52  ;;  %v5061_v61 = vadd.f32 %v5060_v24, %v5059_v21  ;;  %v5100_v42 = vpop.f32.mrb[33].mxu1  ;;  %v5062_v53 = vpop.f32.mrb[34].mxu0 }
 0x5e5   : > { %v5101_v4 = vadd.f32 %v5100_v42, %v5099_v44  ;;  %v5102_v20 = vpop.f32.mrb[34].mxu1  ;;  %v5063_v0 = vpop.f32.mrb[35].mxu0 }
 0x5e6   : > { %4737 = vst [vmem:[%s9784_s16 + $0x18] sm:$0xff] %v4729_v15  ;;  %v4609_v39 = vadd.f32 %v5061_v61, %v9777_v51  ;;  %v5064_v2 = vadd.f32 %v5063_v0, %v5062_v53  ;;  %v5103_v54 = vpop.f32.mrb[35].mxu1 }
 0x5e7   : > { %v5104_v49 = vadd.f32 %v5103_v54, %v5102_v20 }
 0x5e8   : > { %v4674_v1 = vadd.f32 %v5101_v4, %v4609_v39  ;;  %v4612_v33 = vadd.f32 %v5064_v2, %v9777_v51 }
 0x5ea   : > { %v4730_v23 = vadd.f32 %v9759_v5, %v4674_v1  ;;  %v4677_v59 = vadd.f32 %v5104_v49, %v4612_v33  ;;  %v5065_v63 = vpop.f32.mrb[36].mxu0 }
 0x5eb   : > { %v5105_v22 = vpop.f32.mrb[36].mxu1  ;;  %v5066_v47 = vpop.f32.mrb[37].mxu0 }
 0x5ec   : > { %4738 = vst [vmem:[%s9784_s16 + $0x20] sm:$0xff] %v4730_v23  ;;  %v4731_v8 = vadd.f32 %v9763_v13, %v4677_v59  ;;  %v5067_v48 = vadd.f32 %v5066_v47, %v5065_v63  ;;  %v5106_v40 = vpop.f32.mrb[37].mxu1  ;;  %v5068_v37 = vpop.f32.mrb[38].mxu0 }
 0x5ed   : > { %v5107_v10 = vadd.f32 %v5106_v40, %v5105_v22  ;;  %v5108_v16 = vpop.f32.mrb[38].mxu1  ;;  %v5069_v32 = vpop.f32.mrb[39].mxu0 }
 0x5ee   : > { %4739 = vst [vmem:[%s9784_s16 + $0x28] sm:$0xff] %v4731_v8  ;;  %v4617_v11 = vadd.f32 %v5067_v48, %v9777_v51  ;;  %v5070_v30 = vadd.f32 %v5069_v32, %v5068_v37  ;;  %v5109_v5 = vpop.f32.mrb[39].mxu1 }
 0x5ef   : > { %v5110_v55 = vadd.f32 %v5109_v5, %v5108_v16 }
 0x5f0   : > { %v4682_v46 = vadd.f32 %v5107_v10, %v4617_v11  ;;  %v4620_v3 = vadd.f32 %v5070_v30, %v9777_v51 }
 0x5f2   : > { %v4732_v58 = vadd.f32 %v9767_v17, %v4682_v46  ;;  %v4685_v13 = vadd.f32 %v5110_v55, %v4620_v3 }
 0x5f4   : > { %4740 = vst [vmem:[%s9784_s16 + $0x30] sm:$0xff] %v4732_v58  ;;  %v4733_v9 = vadd.f32 %v9770_v36, %v4685_v13 }
 0x5f6   : > { %4741 = vst [vmem:[%s9784_s16 + $0x38] sm:$0xff] %v4733_v9 }
 0x5f7 PF: > { %s22_s21 = sadd.s32 1, %s5578_s21  }
 0x5f8   : > { %p19_p5 = scmp.ge.s32.totalorder %s22_s21, 4  }
 0x5fa   :  { %21 = sbr.rel (!%p19_p5) target bundleno = 1 (0x1), region = 106 }

</bundles_post_ra>
